<compile_context>
chip_gen: v5e
topology: v5e:2x2
jax: 0.10.0
libtpu: 0.0.40
codegen_flags: <defaults>
</compile_context>

<pallas_src>
import functools

import jax
import jax.numpy as jnp
from jax.experimental import pallas as pl
from jax.experimental.pallas import tpu as pltpu

POINT_BASE_CHANNEL = 16
BN_EPS = 1e-5


def _round_up(x, m):
    return (x + m - 1) // m * m


# ----------------------------- Pallas kernel -----------------------------

def _point_block_kernel(x_ref, w1_ref, b1_ref, w2_ref, b2_ref, w3_ref, b3_ref,
                        o_ref, *, slots):
    """PointBlock MLP (eval-BN folded, ReLU) + max over the `slots` points/cell.

    x_ref : (slots, C_in, tile_pts)  channels-first, cells on the lane axis.
    o_ref : (C_out=64, tile_pts)     lane-dense output block (tile_pts % 128 == 0).
    """
    for s in range(slots):
        xs = x_ref[s]                                             # (C_in, T)
        h = jnp.dot(w1_ref[...], xs,
                    preferred_element_type=jnp.float32) + b1_ref[...]
        h = jnp.maximum(h, 0.0)
        h = jnp.dot(w2_ref[...], h,
                    preferred_element_type=jnp.float32) + b2_ref[...]
        h = jnp.maximum(h, 0.0)
        h = jnp.dot(w3_ref[...], h,
                    preferred_element_type=jnp.float32) + b3_ref[...]
        h = jnp.maximum(h, 0.0)                                   # (64, T)
        # MaxPool2d((1, slots)): running max accumulated in VMEM (o_ref), which
        # also bounds the per-slot vreg live ranges (no giant straight-line blob).
        if s == 0:
            o_ref[...] = h
        else:
            o_ref[...] = jnp.maximum(o_ref[...], h)


def point_block_and_pool(x_slc, params, *, tile_pts):
    """x_slc: [slots, C_in, n_cells]  ->  pooled grid features [C_out, n_cells]."""
    (w1, b1), (w2, b2), (w3, b3) = params
    slots, c_in, n_cells = x_slc.shape
    c_out = w3.shape[0]

    # Lane-dense tiles: tile_pts must be a multiple of 128 lanes.
    tile_pts = _round_up(max(tile_pts, 128), 128)
    n_cells_pad = _round_up(n_cells, tile_pts)
    if n_cells_pad != n_cells:
        x_slc = jnp.pad(x_slc, ((0, 0), (0, 0), (0, n_cells_pad - n_cells)))
    grid = (n_cells_pad // tile_pts,)

    kernel = functools.partial(_point_block_kernel, slots=slots)
    const_spec = lambda shape: pl.BlockSpec(shape, lambda i: (0, 0))

    # Explicit VMEM budget: double-buffered in/out blocks + weights + headroom,
    # clamped so a tile_pts sweep stays within v7x's 64 MiB VMEM.
    in_block_bytes = slots * _round_up(c_in, 8) * tile_pts * 4
    out_block_bytes = c_out * tile_pts * 4
    vmem_limit = max(32 << 20,
                     min(4 * (in_block_bytes + out_block_bytes) + (8 << 20),
                         48 << 20))

    out = pl.pallas_call(
        kernel,
        out_shape=jax.ShapeDtypeStruct((c_out, n_cells_pad), jnp.float32),
        grid_spec=pltpu.PrefetchScalarGridSpec(
            num_scalar_prefetch=0,
            grid=grid,
            in_specs=[
                pl.BlockSpec((slots, c_in, tile_pts), lambda i: (0, 0, i)),
                const_spec(w1.shape), const_spec(b1.shape),
                const_spec(w2.shape), const_spec(b2.shape),
                const_spec(w3.shape), const_spec(b3.shape),
            ],
            out_specs=pl.BlockSpec((c_out, tile_pts), lambda i: (0, i)),
        ),
        compiler_params=pltpu.CompilerParams(
            dimension_semantics=("parallel",),
            vmem_limit_bytes=vmem_limit),
    )(x_slc, w1, b1, w2, b2, w3, b3)
    return out[:, :n_cells]


# ----------------------------- glue / params -----------------------------

def fold_conv_bn(w, b, gamma, beta, mean, var, eps=BN_EPS):
    """Fold eval-mode BatchNorm into a 1x1 conv.

    w: [C_in, C_out] -> returns transposed (w_t: [C_out, C_in], bias: [C_out, 1])
    for the channels-first kernel layout.
    """
    scale = gamma / jnp.sqrt(var + eps)
    w_t = (w * scale[None, :]).T                  # [C_out, C_in]
    b_f = (b - mean) * scale + beta
    return w_t, b_f[:, None]                      # bias as a lane-broadcast column


def init_params(key, c_in=4, base=POINT_BASE_CHANNEL):
    dims = [(c_in, base), (base, base * 2), (base * 2, base * 4)]
    params = []
    for i, (ci, co) in enumerate(dims):
        k = jax.random.fold_in(key, i)
        kw, kb, kg, kbeta, km, kv = jax.random.split(k, 6)
        w = jax.random.normal(kw, (ci, co), jnp.float32) * 0.2
        b = jax.random.normal(kb, (co,), jnp.float32) * 0.1
        gamma = 1.0 + 0.1 * jax.random.normal(kg, (co,), jnp.float32)
        beta = 0.1 * jax.random.normal(kbeta, (co,), jnp.float32)
        mean = 0.05 * jax.random.normal(km, (co,), jnp.float32)
        var = 1.0 + 0.1 * jax.nn.sigmoid(jax.random.normal(kv, (co,), jnp.float32))
        params.append(fold_conv_bn(w, b, gamma, beta, mean, var))
    return params


def lane_model_seg_forward(x_nchw, params, *, grid_height, grid_width,
                           tile_pts=256):
    """x_nchw: [bs, C_in, P, D] with P == grid_height*grid_width."""
    bs, c_in, P, D = x_nchw.shape
    assert P == grid_height * grid_width
    # NCHW -> slot-major, channels-first, cells-on-lanes: [D, C_in, bs*P]
    x_slc = jnp.transpose(x_nchw, (3, 1, 0, 2)).reshape(D, c_in, bs * P)
    pooled = point_block_and_pool(x_slc, params, tile_pts=tile_pts)   # [64, bs*P]
    # [64, bs*P] -> NCHW grid feature map [bs, 64, grid_h, grid_w]
    feat = pooled.reshape(-1, bs, P)
    feat = jnp.transpose(feat, (1, 0, 2)).reshape(bs, -1, grid_height, grid_width)
    # TODO(synk): x = self.unet(feat) omitted (SimpleUNet definition not supplied).
    return {"pred": feat}


def reference_forward(x_nchw, params, *, grid_height, grid_width):
    """Pure-JAX reference of the same math (for verification)."""
    bs, c_in, P, D = x_nchw.shape
    h = jnp.transpose(x_nchw, (1, 0, 2, 3)).reshape(c_in, bs * P * D)
    for w_t, b in params:
        h = jnp.maximum(
            jnp.dot(w_t, h, preferred_element_type=jnp.float32) + b, 0.0)
    h = h.reshape(-1, bs, P, D).max(axis=3)               # [64, bs, P]
    return jnp.transpose(h, (1, 0, 2)).reshape(bs, -1, grid_height, grid_width)


# --------------------------------- main ----------------------------------

if __name__ == "__main__":
    key = jax.random.PRNGKey(0)
    k_x, k_p = jax.random.split(key)

    bs = 2
    input_channel = 4
    grid_height, grid_width = 16, 16
    max_points_in_grid = 8            # D (points per grid cell)
    P = grid_height * grid_width      # 256 grid cells per image
    tile_pts = 256                    # cells per Pallas block -> 2048 point-rows/step,
                                      # grid = (2,): both v7x TensorCores get work

    # x: [bs, 4, M*N, dim] with dim == max_points_in_grid
    x = jax.random.normal(k_x, (bs, input_channel, P, max_points_in_grid),
                          jnp.float32)
    params = init_params(k_p, c_in=input_channel)

    out = lane_model_seg_forward(x, params,
                                 grid_height=grid_height,
                                 grid_width=grid_width,
                                 tile_pts=tile_pts)
    pred = jax.block_until_ready(out["pred"])

    ref = reference_forward(x, params,
                            grid_height=grid_height, grid_width=grid_width)
    assert pred.shape == (bs, POINT_BASE_CHANNEL * 4, grid_height, grid_width)
    assert jnp.allclose(pred, ref, atol=1e-3, rtol=1e-3), "mismatch vs reference"

    print("KERNEL_OK")
</pallas_src>

<mosaic_0001>
module attributes {stable_mosaic.version = 11 : i64} {
  func.func @_point_block_kernel(%arg0: i32, %arg1: memref<8x4x256xf32, #tpu.memory_space<vmem>>, %arg2: memref<16x4xf32, #tpu.memory_space<vmem>>, %arg3: memref<16x1xf32, #tpu.memory_space<vmem>>, %arg4: memref<32x16xf32, #tpu.memory_space<vmem>>, %arg5: memref<32x1xf32, #tpu.memory_space<vmem>>, %arg6: memref<64x32xf32, #tpu.memory_space<vmem>>, %arg7: memref<64x1xf32, #tpu.memory_space<vmem>>, %arg8: memref<64x256xf32, #tpu.memory_space<vmem>>) attributes {dimension_semantics = [#tpu.dimension_semantics<parallel>], iteration_bounds = array<i64: 2>, scalar_prefetch = 0 : i64, scratch_operands = 0 : i64, tpu.core_type = #tpu.core_type<tc>, window_params = [{transform_indices = @transform_0, window_bounds = array<i64: 8, 4, 256>}, {pipeline_mode = #tpu.pipeline_mode<synchronous>, transform_indices = @transform_1, window_bounds = array<i64: 16, 4>}, {pipeline_mode = #tpu.pipeline_mode<synchronous>, transform_indices = @transform_2, window_bounds = array<i64: 16, 1>}, {pipeline_mode = #tpu.pipeline_mode<synchronous>, transform_indices = @transform_3, window_bounds = array<i64: 32, 16>}, {pipeline_mode = #tpu.pipeline_mode<synchronous>, transform_indices = @transform_4, window_bounds = array<i64: 32, 1>}, {pipeline_mode = #tpu.pipeline_mode<synchronous>, transform_indices = @transform_5, window_bounds = array<i64: 64, 32>}, {pipeline_mode = #tpu.pipeline_mode<synchronous>, transform_indices = @transform_6, window_bounds = array<i64: 64, 1>}, {transform_indices = @transform_7, window_bounds = array<i64: 64, 256>}]} {
    %c0 = arith.constant 0 : index
    %c0_0 = arith.constant 0 : index
    %c0_1 = arith.constant 0 : index
    %0 = vector.load %arg1[%c0, %c0_0, %c0_1] : memref<8x4x256xf32, #tpu.memory_space<vmem>>, vector<1x4x256xf32>
    %1 = vector.shape_cast %0 : vector<1x4x256xf32> to vector<4x256xf32>
    %c0_2 = arith.constant 0 : index
    %c0_3 = arith.constant 0 : index
    %2 = vector.load %arg2[%c0_2, %c0_3] : memref<16x4xf32, #tpu.memory_space<vmem>>, vector<16x4xf32>
    %cst = arith.constant dense<0.000000e+00> : vector<16x256xf32>
    %3 = tpu.matmul %2, %1, %cst {dimension_numbers = #tpu.dot_dimension_numbers<[1], [0], [0], [1], [0, 0, 1, 1], [], []>} : vector<16x4xf32>, vector<4x256xf32>, vector<16x256xf32> -> vector<16x256xf32>
    %c0_4 = arith.constant 0 : index
    %c0_5 = arith.constant 0 : index
    %4 = vector.load %arg3[%c0_4, %c0_5] : memref<16x1xf32, #tpu.memory_space<vmem>>, vector<16x1xf32>
    %5 = vector.broadcast %4 : vector<16x1xf32> to vector<16x256xf32>
    %6 = arith.addf %3, %5 : vector<16x256xf32>
    %cst_6 = arith.constant 0.000000e+00 : f32
    %7 = vector.broadcast %cst_6 : f32 to vector<16x256xf32>
    %8 = arith.maximumf %6, %7 : vector<16x256xf32>
    %c0_7 = arith.constant 0 : index
    %c0_8 = arith.constant 0 : index
    %9 = vector.load %arg4[%c0_7, %c0_8] : memref<32x16xf32, #tpu.memory_space<vmem>>, vector<32x16xf32>
    %cst_9 = arith.constant dense<0.000000e+00> : vector<32x256xf32>
    %10 = tpu.matmul %9, %8, %cst_9 {dimension_numbers = #tpu.dot_dimension_numbers<[1], [0], [0], [1], [0, 0, 1, 1], [], []>} : vector<32x16xf32>, vector<16x256xf32>, vector<32x256xf32> -> vector<32x256xf32>
    %c0_10 = arith.constant 0 : index
    %c0_11 = arith.constant 0 : index
    %11 = vector.load %arg5[%c0_10, %c0_11] : memref<32x1xf32, #tpu.memory_space<vmem>>, vector<32x1xf32>
    %12 = vector.broadcast %11 : vector<32x1xf32> to vector<32x256xf32>
    %13 = arith.addf %10, %12 : vector<32x256xf32>
    %cst_12 = arith.constant 0.000000e+00 : f32
    %14 = vector.broadcast %cst_12 : f32 to vector<32x256xf32>
    %15 = arith.maximumf %13, %14 : vector<32x256xf32>
    %c0_13 = arith.constant 0 : index
    %c0_14 = arith.constant 0 : index
    %16 = vector.load %arg6[%c0_13, %c0_14] : memref<64x32xf32, #tpu.memory_space<vmem>>, vector<64x32xf32>
    %cst_15 = arith.constant dense<0.000000e+00> : vector<64x256xf32>
    %17 = tpu.matmul %16, %15, %cst_15 {dimension_numbers = #tpu.dot_dimension_numbers<[1], [0], [0], [1], [0, 0, 1, 1], [], []>} : vector<64x32xf32>, vector<32x256xf32>, vector<64x256xf32> -> vector<64x256xf32>
    %c0_16 = arith.constant 0 : index
    %c0_17 = arith.constant 0 : index
    %18 = vector.load %arg7[%c0_16, %c0_17] : memref<64x1xf32, #tpu.memory_space<vmem>>, vector<64x1xf32>
    %19 = vector.broadcast %18 : vector<64x1xf32> to vector<64x256xf32>
    %20 = arith.addf %17, %19 : vector<64x256xf32>
    %cst_18 = arith.constant 0.000000e+00 : f32
    %21 = vector.broadcast %cst_18 : f32 to vector<64x256xf32>
    %22 = arith.maximumf %20, %21 : vector<64x256xf32>
    %c0_19 = arith.constant 0 : index
    %c0_20 = arith.constant 0 : index
    %23 = vector.load %arg8[%c0_19, %c0_20] : memref<64x256xf32, #tpu.memory_space<vmem>>, vector<64x256xf32>
    tpu.vector_store %arg8[%c0_19, %c0_20], %22 {strides = array<i32>} : memref<64x256xf32, #tpu.memory_space<vmem>>, vector<64x256xf32>,
    %c1 = arith.constant 1 : index
    %c0_21 = arith.constant 0 : index
    %c0_22 = arith.constant 0 : index
    %24 = vector.load %arg1[%c1, %c0_21, %c0_22] : memref<8x4x256xf32, #tpu.memory_space<vmem>>, vector<1x4x256xf32>
    %25 = vector.shape_cast %24 : vector<1x4x256xf32> to vector<4x256xf32>
    %c0_23 = arith.constant 0 : index
    %c0_24 = arith.constant 0 : index
    %26 = vector.load %arg2[%c0_23, %c0_24] : memref<16x4xf32, #tpu.memory_space<vmem>>, vector<16x4xf32>
    %cst_25 = arith.constant dense<0.000000e+00> : vector<16x256xf32>
    %27 = tpu.matmul %26, %25, %cst_25 {dimension_numbers = #tpu.dot_dimension_numbers<[1], [0], [0], [1], [0, 0, 1, 1], [], []>} : vector<16x4xf32>, vector<4x256xf32>, vector<16x256xf32> -> vector<16x256xf32>
    %c0_26 = arith.constant 0 : index
    %c0_27 = arith.constant 0 : index
    %28 = vector.load %arg3[%c0_26, %c0_27] : memref<16x1xf32, #tpu.memory_space<vmem>>, vector<16x1xf32>
    %29 = vector.broadcast %28 : vector<16x1xf32> to vector<16x256xf32>
    %30 = arith.addf %27, %29 : vector<16x256xf32>
    %cst_28 = arith.constant 0.000000e+00 : f32
    %31 = vector.broadcast %cst_28 : f32 to vector<16x256xf32>
    %32 = arith.maximumf %30, %31 : vector<16x256xf32>
    %c0_29 = arith.constant 0 : index
    %c0_30 = arith.constant 0 : index
    %33 = vector.load %arg4[%c0_29, %c0_30] : memref<32x16xf32, #tpu.memory_space<vmem>>, vector<32x16xf32>
    %cst_31 = arith.constant dense<0.000000e+00> : vector<32x256xf32>
    %34 = tpu.matmul %33, %32, %cst_31 {dimension_numbers = #tpu.dot_dimension_numbers<[1], [0], [0], [1], [0, 0, 1, 1], [], []>} : vector<32x16xf32>, vector<16x256xf32>, vector<32x256xf32> -> vector<32x256xf32>
    %c0_32 = arith.constant 0 : index
    %c0_33 = arith.constant 0 : index
    %35 = vector.load %arg5[%c0_32, %c0_33] : memref<32x1xf32, #tpu.memory_space<vmem>>, vector<32x1xf32>
    %36 = vector.broadcast %35 : vector<32x1xf32> to vector<32x256xf32>
    %37 = arith.addf %34, %36 : vector<32x256xf32>
    %cst_34 = arith.constant 0.000000e+00 : f32
    %38 = vector.broadcast %cst_34 : f32 to vector<32x256xf32>
    %39 = arith.maximumf %37, %38 : vector<32x256xf32>
    %c0_35 = arith.constant 0 : index
    %c0_36 = arith.constant 0 : index
    %40 = vector.load %arg6[%c0_35, %c0_36] : memref<64x32xf32, #tpu.memory_space<vmem>>, vector<64x32xf32>
    %cst_37 = arith.constant dense<0.000000e+00> : vector<64x256xf32>
    %41 = tpu.matmul %40, %39, %cst_37 {dimension_numbers = #tpu.dot_dimension_numbers<[1], [0], [0], [1], [0, 0, 1, 1], [], []>} : vector<64x32xf32>, vector<32x256xf32>, vector<64x256xf32> -> vector<64x256xf32>
    %c0_38 = arith.constant 0 : index
    %c0_39 = arith.constant 0 : index
    %42 = vector.load %arg7[%c0_38, %c0_39] : memref<64x1xf32, #tpu.memory_space<vmem>>, vector<64x1xf32>
    %43 = vector.broadcast %42 : vector<64x1xf32> to vector<64x256xf32>
    %44 = arith.addf %41, %43 : vector<64x256xf32>
    %cst_40 = arith.constant 0.000000e+00 : f32
    %45 = vector.broadcast %cst_40 : f32 to vector<64x256xf32>
    %46 = arith.maximumf %44, %45 : vector<64x256xf32>
    %c0_41 = arith.constant 0 : index
    %c0_42 = arith.constant 0 : index
    %47 = vector.load %arg8[%c0_41, %c0_42] : memref<64x256xf32, #tpu.memory_space<vmem>>, vector<64x256xf32>
    %48 = arith.maximumf %47, %46 : vector<64x256xf32>
    %c0_43 = arith.constant 0 : index
    %c0_44 = arith.constant 0 : index
    %49 = vector.load %arg8[%c0_43, %c0_44] : memref<64x256xf32, #tpu.memory_space<vmem>>, vector<64x256xf32>
    tpu.vector_store %arg8[%c0_43, %c0_44], %48 {strides = array<i32>} : memref<64x256xf32, #tpu.memory_space<vmem>>, vector<64x256xf32>,
    %c2 = arith.constant 2 : index
    %c0_45 = arith.constant 0 : index
    %c0_46 = arith.constant 0 : index
    %50 = vector.load %arg1[%c2, %c0_45, %c0_46] : memref<8x4x256xf32, #tpu.memory_space<vmem>>, vector<1x4x256xf32>
    %51 = vector.shape_cast %50 : vector<1x4x256xf32> to vector<4x256xf32>
    %c0_47 = arith.constant 0 : index
    %c0_48 = arith.constant 0 : index
    %52 = vector.load %arg2[%c0_47, %c0_48] : memref<16x4xf32, #tpu.memory_space<vmem>>, vector<16x4xf32>
    %cst_49 = arith.constant dense<0.000000e+00> : vector<16x256xf32>
    %53 = tpu.matmul %52, %51, %cst_49 {dimension_numbers = #tpu.dot_dimension_numbers<[1], [0], [0], [1], [0, 0, 1, 1], [], []>} : vector<16x4xf32>, vector<4x256xf32>, vector<16x256xf32> -> vector<16x256xf32>
    %c0_50 = arith.constant 0 : index
    %c0_51 = arith.constant 0 : index
    %54 = vector.load %arg3[%c0_50, %c0_51] : memref<16x1xf32, #tpu.memory_space<vmem>>, vector<16x1xf32>
    %55 = vector.broadcast %54 : vector<16x1xf32> to vector<16x256xf32>
    %56 = arith.addf %53, %55 : vector<16x256xf32>
    %cst_52 = arith.constant 0.000000e+00 : f32
    %57 = vector.broadcast %cst_52 : f32 to vector<16x256xf32>
    %58 = arith.maximumf %56, %57 : vector<16x256xf32>
    %c0_53 = arith.constant 0 : index
    %c0_54 = arith.constant 0 : index
    %59 = vector.load %arg4[%c0_53, %c0_54] : memref<32x16xf32, #tpu.memory_space<vmem>>, vector<32x16xf32>
    %cst_55 = arith.constant dense<0.000000e+00> : vector<32x256xf32>
    %60 = tpu.matmul %59, %58, %cst_55 {dimension_numbers = #tpu.dot_dimension_numbers<[1], [0], [0], [1], [0, 0, 1, 1], [], []>} : vector<32x16xf32>, vector<16x256xf32>, vector<32x256xf32> -> vector<32x256xf32>
    %c0_56 = arith.constant 0 : index
    %c0_57 = arith.constant 0 : index
    %61 = vector.load %arg5[%c0_56, %c0_57] : memref<32x1xf32, #tpu.memory_space<vmem>>, vector<32x1xf32>
    %62 = vector.broadcast %61 : vector<32x1xf32> to vector<32x256xf32>
    %63 = arith.addf %60, %62 : vector<32x256xf32>
    %cst_58 = arith.constant 0.000000e+00 : f32
    %64 = vector.broadcast %cst_58 : f32 to vector<32x256xf32>
    %65 = arith.maximumf %63, %64 : vector<32x256xf32>
    %c0_59 = arith.constant 0 : index
    %c0_60 = arith.constant 0 : index
    %66 = vector.load %arg6[%c0_59, %c0_60] : memref<64x32xf32, #tpu.memory_space<vmem>>, vector<64x32xf32>
    %cst_61 = arith.constant dense<0.000000e+00> : vector<64x256xf32>
    %67 = tpu.matmul %66, %65, %cst_61 {dimension_numbers = #tpu.dot_dimension_numbers<[1], [0], [0], [1], [0, 0, 1, 1], [], []>} : vector<64x32xf32>, vector<32x256xf32>, vector<64x256xf32> -> vector<64x256xf32>
    %c0_62 = arith.constant 0 : index
    %c0_63 = arith.constant 0 : index
    %68 = vector.load %arg7[%c0_62, %c0_63] : memref<64x1xf32, #tpu.memory_space<vmem>>, vector<64x1xf32>
    %69 = vector.broadcast %68 : vector<64x1xf32> to vector<64x256xf32>
    %70 = arith.addf %67, %69 : vector<64x256xf32>
    %cst_64 = arith.constant 0.000000e+00 : f32
    %71 = vector.broadcast %cst_64 : f32 to vector<64x256xf32>
    %72 = arith.maximumf %70, %71 : vector<64x256xf32>
    %c0_65 = arith.constant 0 : index
    %c0_66 = arith.constant 0 : index
    %73 = vector.load %arg8[%c0_65, %c0_66] : memref<64x256xf32, #tpu.memory_space<vmem>>, vector<64x256xf32>
    %74 = arith.maximumf %73, %72 : vector<64x256xf32>
    %c0_67 = arith.constant 0 : index
    %c0_68 = arith.constant 0 : index
    %75 = vector.load %arg8[%c0_67, %c0_68] : memref<64x256xf32, #tpu.memory_space<vmem>>, vector<64x256xf32>
    tpu.vector_store %arg8[%c0_67, %c0_68], %74 {strides = array<i32>} : memref<64x256xf32, #tpu.memory_space<vmem>>, vector<64x256xf32>,
    %c3 = arith.constant 3 : index
    %c0_69 = arith.constant 0 : index
    %c0_70 = arith.constant 0 : index
    %76 = vector.load %arg1[%c3, %c0_69, %c0_70] : memref<8x4x256xf32, #tpu.memory_space<vmem>>, vector<1x4x256xf32>
    %77 = vector.shape_cast %76 : vector<1x4x256xf32> to vector<4x256xf32>
    %c0_71 = arith.constant 0 : index
    %c0_72 = arith.constant 0 : index
    %78 = vector.load %arg2[%c0_71, %c0_72] : memref<16x4xf32, #tpu.memory_space<vmem>>, vector<16x4xf32>
    %cst_73 = arith.constant dense<0.000000e+00> : vector<16x256xf32>
    %79 = tpu.matmul %78, %77, %cst_73 {dimension_numbers = #tpu.dot_dimension_numbers<[1], [0], [0], [1], [0, 0, 1, 1], [], []>} : vector<16x4xf32>, vector<4x256xf32>, vector<16x256xf32> -> vector<16x256xf32>
    %c0_74 = arith.constant 0 : index
    %c0_75 = arith.constant 0 : index
    %80 = vector.load %arg3[%c0_74, %c0_75] : memref<16x1xf32, #tpu.memory_space<vmem>>, vector<16x1xf32>
    %81 = vector.broadcast %80 : vector<16x1xf32> to vector<16x256xf32>
    %82 = arith.addf %79, %81 : vector<16x256xf32>
    %cst_76 = arith.constant 0.000000e+00 : f32
    %83 = vector.broadcast %cst_76 : f32 to vector<16x256xf32>
    %84 = arith.maximumf %82, %83 : vector<16x256xf32>
    %c0_77 = arith.constant 0 : index
    %c0_78 = arith.constant 0 : index
    %85 = vector.load %arg4[%c0_77, %c0_78] : memref<32x16xf32, #tpu.memory_space<vmem>>, vector<32x16xf32>
    %cst_79 = arith.constant dense<0.000000e+00> : vector<32x256xf32>
    %86 = tpu.matmul %85, %84, %cst_79 {dimension_numbers = #tpu.dot_dimension_numbers<[1], [0], [0], [1], [0, 0, 1, 1], [], []>} : vector<32x16xf32>, vector<16x256xf32>, vector<32x256xf32> -> vector<32x256xf32>
    %c0_80 = arith.constant 0 : index
    %c0_81 = arith.constant 0 : index
    %87 = vector.load %arg5[%c0_80, %c0_81] : memref<32x1xf32, #tpu.memory_space<vmem>>, vector<32x1xf32>
    %88 = vector.broadcast %87 : vector<32x1xf32> to vector<32x256xf32>
    %89 = arith.addf %86, %88 : vector<32x256xf32>
    %cst_82 = arith.constant 0.000000e+00 : f32
    %90 = vector.broadcast %cst_82 : f32 to vector<32x256xf32>
    %91 = arith.maximumf %89, %90 : vector<32x256xf32>
    %c0_83 = arith.constant 0 : index
    %c0_84 = arith.constant 0 : index
    %92 = vector.load %arg6[%c0_83, %c0_84] : memref<64x32xf32, #tpu.memory_space<vmem>>, vector<64x32xf32>
    %cst_85 = arith.constant dense<0.000000e+00> : vector<64x256xf32>
    %93 = tpu.matmul %92, %91, %cst_85 {dimension_numbers = #tpu.dot_dimension_numbers<[1], [0], [0], [1], [0, 0, 1, 1], [], []>} : vector<64x32xf32>, vector<32x256xf32>, vector<64x256xf32> -> vector<64x256xf32>
    %c0_86 = arith.constant 0 : index
    %c0_87 = arith.constant 0 : index
    %94 = vector.load %arg7[%c0_86, %c0_87] : memref<64x1xf32, #tpu.memory_space<vmem>>, vector<64x1xf32>
    %95 = vector.broadcast %94 : vector<64x1xf32> to vector<64x256xf32>
    %96 = arith.addf %93, %95 : vector<64x256xf32>
    %cst_88 = arith.constant 0.000000e+00 : f32
    %97 = vector.broadcast %cst_88 : f32 to vector<64x256xf32>
    %98 = arith.maximumf %96, %97 : vector<64x256xf32>
    %c0_89 = arith.constant 0 : index
    %c0_90 = arith.constant 0 : index
    %99 = vector.load %arg8[%c0_89, %c0_90] : memref<64x256xf32, #tpu.memory_space<vmem>>, vector<64x256xf32>
    %100 = arith.maximumf %99, %98 : vector<64x256xf32>
    %c0_91 = arith.constant 0 : index
    %c0_92 = arith.constant 0 : index
    %101 = vector.load %arg8[%c0_91, %c0_92] : memref<64x256xf32, #tpu.memory_space<vmem>>, vector<64x256xf32>
    tpu.vector_store %arg8[%c0_91, %c0_92], %100 {strides = array<i32>} : memref<64x256xf32, #tpu.memory_space<vmem>>, vector<64x256xf32>,
    %c4 = arith.constant 4 : index
    %c0_93 = arith.constant 0 : index
    %c0_94 = arith.constant 0 : index
    %102 = vector.load %arg1[%c4, %c0_93, %c0_94] : memref<8x4x256xf32, #tpu.memory_space<vmem>>, vector<1x4x256xf32>
    %103 = vector.shape_cast %102 : vector<1x4x256xf32> to vector<4x256xf32>
    %c0_95 = arith.constant 0 : index
    %c0_96 = arith.constant 0 : index
    %104 = vector.load %arg2[%c0_95, %c0_96] : memref<16x4xf32, #tpu.memory_space<vmem>>, vector<16x4xf32>
    %cst_97 = arith.constant dense<0.000000e+00> : vector<16x256xf32>
    %105 = tpu.matmul %104, %103, %cst_97 {dimension_numbers = #tpu.dot_dimension_numbers<[1], [0], [0], [1], [0, 0, 1, 1], [], []>} : vector<16x4xf32>, vector<4x256xf32>, vector<16x256xf32> -> vector<16x256xf32>
    %c0_98 = arith.constant 0 : index
    %c0_99 = arith.constant 0 : index
    %106 = vector.load %arg3[%c0_98, %c0_99] : memref<16x1xf32, #tpu.memory_space<vmem>>, vector<16x1xf32>
    %107 = vector.broadcast %106 : vector<16x1xf32> to vector<16x256xf32>
    %108 = arith.addf %105, %107 : vector<16x256xf32>
    %cst_100 = arith.constant 0.000000e+00 : f32
    %109 = vector.broadcast %cst_100 : f32 to vector<16x256xf32>
    %110 = arith.maximumf %108, %109 : vector<16x256xf32>
    %c0_101 = arith.constant 0 : index
    %c0_102 = arith.constant 0 : index
    %111 = vector.load %arg4[%c0_101, %c0_102] : memref<32x16xf32, #tpu.memory_space<vmem>>, vector<32x16xf32>
    %cst_103 = arith.constant dense<0.000000e+00> : vector<32x256xf32>
    %112 = tpu.matmul %111, %110, %cst_103 {dimension_numbers = #tpu.dot_dimension_numbers<[1], [0], [0], [1], [0, 0, 1, 1], [], []>} : vector<32x16xf32>, vector<16x256xf32>, vector<32x256xf32> -> vector<32x256xf32>
    %c0_104 = arith.constant 0 : index
    %c0_105 = arith.constant 0 : index
    %113 = vector.load %arg5[%c0_104, %c0_105] : memref<32x1xf32, #tpu.memory_space<vmem>>, vector<32x1xf32>
    %114 = vector.broadcast %113 : vector<32x1xf32> to vector<32x256xf32>
    %115 = arith.addf %112, %114 : vector<32x256xf32>
    %cst_106 = arith.constant 0.000000e+00 : f32
    %116 = vector.broadcast %cst_106 : f32 to vector<32x256xf32>
    %117 = arith.maximumf %115, %116 : vector<32x256xf32>
    %c0_107 = arith.constant 0 : index
    %c0_108 = arith.constant 0 : index
    %118 = vector.load %arg6[%c0_107, %c0_108] : memref<64x32xf32, #tpu.memory_space<vmem>>, vector<64x32xf32>
    %cst_109 = arith.constant dense<0.000000e+00> : vector<64x256xf32>
    %119 = tpu.matmul %118, %117, %cst_109 {dimension_numbers = #tpu.dot_dimension_numbers<[1], [0], [0], [1], [0, 0, 1, 1], [], []>} : vector<64x32xf32>, vector<32x256xf32>, vector<64x256xf32> -> vector<64x256xf32>
    %c0_110 = arith.constant 0 : index
    %c0_111 = arith.constant 0 : index
    %120 = vector.load %arg7[%c0_110, %c0_111] : memref<64x1xf32, #tpu.memory_space<vmem>>, vector<64x1xf32>
    %121 = vector.broadcast %120 : vector<64x1xf32> to vector<64x256xf32>
    %122 = arith.addf %119, %121 : vector<64x256xf32>
    %cst_112 = arith.constant 0.000000e+00 : f32
    %123 = vector.broadcast %cst_112 : f32 to vector<64x256xf32>
    %124 = arith.maximumf %122, %123 : vector<64x256xf32>
    %c0_113 = arith.constant 0 : index
    %c0_114 = arith.constant 0 : index
    %125 = vector.load %arg8[%c0_113, %c0_114] : memref<64x256xf32, #tpu.memory_space<vmem>>, vector<64x256xf32>
    %126 = arith.maximumf %125, %124 : vector<64x256xf32>
    %c0_115 = arith.constant 0 : index
    %c0_116 = arith.constant 0 : index
    %127 = vector.load %arg8[%c0_115, %c0_116] : memref<64x256xf32, #tpu.memory_space<vmem>>, vector<64x256xf32>
    tpu.vector_store %arg8[%c0_115, %c0_116], %126 {strides = array<i32>} : memref<64x256xf32, #tpu.memory_space<vmem>>, vector<64x256xf32>,
    %c5 = arith.constant 5 : index
    %c0_117 = arith.constant 0 : index
    %c0_118 = arith.constant 0 : index
    %128 = vector.load %arg1[%c5, %c0_117, %c0_118] : memref<8x4x256xf32, #tpu.memory_space<vmem>>, vector<1x4x256xf32>
    %129 = vector.shape_cast %128 : vector<1x4x256xf32> to vector<4x256xf32>
    %c0_119 = arith.constant 0 : index
    %c0_120 = arith.constant 0 : index
    %130 = vector.load %arg2[%c0_119, %c0_120] : memref<16x4xf32, #tpu.memory_space<vmem>>, vector<16x4xf32>
    %cst_121 = arith.constant dense<0.000000e+00> : vector<16x256xf32>
    %131 = tpu.matmul %130, %129, %cst_121 {dimension_numbers = #tpu.dot_dimension_numbers<[1], [0], [0], [1], [0, 0, 1, 1], [], []>} : vector<16x4xf32>, vector<4x256xf32>, vector<16x256xf32> -> vector<16x256xf32>
    %c0_122 = arith.constant 0 : index
    %c0_123 = arith.constant 0 : index
    %132 = vector.load %arg3[%c0_122, %c0_123] : memref<16x1xf32, #tpu.memory_space<vmem>>, vector<16x1xf32>
    %133 = vector.broadcast %132 : vector<16x1xf32> to vector<16x256xf32>
    %134 = arith.addf %131, %133 : vector<16x256xf32>
    %cst_124 = arith.constant 0.000000e+00 : f32
    %135 = vector.broadcast %cst_124 : f32 to vector<16x256xf32>
    %136 = arith.maximumf %134, %135 : vector<16x256xf32>
    %c0_125 = arith.constant 0 : index
    %c0_126 = arith.constant 0 : index
    %137 = vector.load %arg4[%c0_125, %c0_126] : memref<32x16xf32, #tpu.memory_space<vmem>>, vector<32x16xf32>
    %cst_127 = arith.constant dense<0.000000e+00> : vector<32x256xf32>
    %138 = tpu.matmul %137, %136, %cst_127 {dimension_numbers = #tpu.dot_dimension_numbers<[1], [0], [0], [1], [0, 0, 1, 1], [], []>} : vector<32x16xf32>, vector<16x256xf32>, vector<32x256xf32> -> vector<32x256xf32>
    %c0_128 = arith.constant 0 : index
    %c0_129 = arith.constant 0 : index
    %139 = vector.load %arg5[%c0_128, %c0_129] : memref<32x1xf32, #tpu.memory_space<vmem>>, vector<32x1xf32>
    %140 = vector.broadcast %139 : vector<32x1xf32> to vector<32x256xf32>
    %141 = arith.addf %138, %140 : vector<32x256xf32>
    %cst_130 = arith.constant 0.000000e+00 : f32
    %142 = vector.broadcast %cst_130 : f32 to vector<32x256xf32>
    %143 = arith.maximumf %141, %142 : vector<32x256xf32>
    %c0_131 = arith.constant 0 : index
    %c0_132 = arith.constant 0 : index
    %144 = vector.load %arg6[%c0_131, %c0_132] : memref<64x32xf32, #tpu.memory_space<vmem>>, vector<64x32xf32>
    %cst_133 = arith.constant dense<0.000000e+00> : vector<64x256xf32>
    %145 = tpu.matmul %144, %143, %cst_133 {dimension_numbers = #tpu.dot_dimension_numbers<[1], [0], [0], [1], [0, 0, 1, 1], [], []>} : vector<64x32xf32>, vector<32x256xf32>, vector<64x256xf32> -> vector<64x256xf32>
    %c0_134 = arith.constant 0 : index
    %c0_135 = arith.constant 0 : index
    %146 = vector.load %arg7[%c0_134, %c0_135] : memref<64x1xf32, #tpu.memory_space<vmem>>, vector<64x1xf32>
    %147 = vector.broadcast %146 : vector<64x1xf32> to vector<64x256xf32>
    %148 = arith.addf %145, %147 : vector<64x256xf32>
    %cst_136 = arith.constant 0.000000e+00 : f32
    %149 = vector.broadcast %cst_136 : f32 to vector<64x256xf32>
    %150 = arith.maximumf %148, %149 : vector<64x256xf32>
    %c0_137 = arith.constant 0 : index
    %c0_138 = arith.constant 0 : index
    %151 = vector.load %arg8[%c0_137, %c0_138] : memref<64x256xf32, #tpu.memory_space<vmem>>, vector<64x256xf32>
    %152 = arith.maximumf %151, %150 : vector<64x256xf32>
    %c0_139 = arith.constant 0 : index
    %c0_140 = arith.constant 0 : index
    %153 = vector.load %arg8[%c0_139, %c0_140] : memref<64x256xf32, #tpu.memory_space<vmem>>, vector<64x256xf32>
    tpu.vector_store %arg8[%c0_139, %c0_140], %152 {strides = array<i32>} : memref<64x256xf32, #tpu.memory_space<vmem>>, vector<64x256xf32>,
    %c6 = arith.constant 6 : index
    %c0_141 = arith.constant 0 : index
    %c0_142 = arith.constant 0 : index
    %154 = vector.load %arg1[%c6, %c0_141, %c0_142] : memref<8x4x256xf32, #tpu.memory_space<vmem>>, vector<1x4x256xf32>
    %155 = vector.shape_cast %154 : vector<1x4x256xf32> to vector<4x256xf32>
    %c0_143 = arith.constant 0 : index
    %c0_144 = arith.constant 0 : index
    %156 = vector.load %arg2[%c0_143, %c0_144] : memref<16x4xf32, #tpu.memory_space<vmem>>, vector<16x4xf32>
    %cst_145 = arith.constant dense<0.000000e+00> : vector<16x256xf32>
    %157 = tpu.matmul %156, %155, %cst_145 {dimension_numbers = #tpu.dot_dimension_numbers<[1], [0], [0], [1], [0, 0, 1, 1], [], []>} : vector<16x4xf32>, vector<4x256xf32>, vector<16x256xf32> -> vector<16x256xf32>
    %c0_146 = arith.constant 0 : index
    %c0_147 = arith.constant 0 : index
    %158 = vector.load %arg3[%c0_146, %c0_147] : memref<16x1xf32, #tpu.memory_space<vmem>>, vector<16x1xf32>
    %159 = vector.broadcast %158 : vector<16x1xf32> to vector<16x256xf32>
    %160 = arith.addf %157, %159 : vector<16x256xf32>
    %cst_148 = arith.constant 0.000000e+00 : f32
    %161 = vector.broadcast %cst_148 : f32 to vector<16x256xf32>
    %162 = arith.maximumf %160, %161 : vector<16x256xf32>
    %c0_149 = arith.constant 0 : index
    %c0_150 = arith.constant 0 : index
    %163 = vector.load %arg4[%c0_149, %c0_150] : memref<32x16xf32, #tpu.memory_space<vmem>>, vector<32x16xf32>
    %cst_151 = arith.constant dense<0.000000e+00> : vector<32x256xf32>
    %164 = tpu.matmul %163, %162, %cst_151 {dimension_numbers = #tpu.dot_dimension_numbers<[1], [0], [0], [1], [0, 0, 1, 1], [], []>} : vector<32x16xf32>, vector<16x256xf32>, vector<32x256xf32> -> vector<32x256xf32>
    %c0_152 = arith.constant 0 : index
    %c0_153 = arith.constant 0 : index
    %165 = vector.load %arg5[%c0_152, %c0_153] : memref<32x1xf32, #tpu.memory_space<vmem>>, vector<32x1xf32>
    %166 = vector.broadcast %165 : vector<32x1xf32> to vector<32x256xf32>
    %167 = arith.addf %164, %166 : vector<32x256xf32>
    %cst_154 = arith.constant 0.000000e+00 : f32
    %168 = vector.broadcast %cst_154 : f32 to vector<32x256xf32>
    %169 = arith.maximumf %167, %168 : vector<32x256xf32>
    %c0_155 = arith.constant 0 : index
    %c0_156 = arith.constant 0 : index
    %170 = vector.load %arg6[%c0_155, %c0_156] : memref<64x32xf32, #tpu.memory_space<vmem>>, vector<64x32xf32>
    %cst_157 = arith.constant dense<0.000000e+00> : vector<64x256xf32>
    %171 = tpu.matmul %170, %169, %cst_157 {dimension_numbers = #tpu.dot_dimension_numbers<[1], [0], [0], [1], [0, 0, 1, 1], [], []>} : vector<64x32xf32>, vector<32x256xf32>, vector<64x256xf32> -> vector<64x256xf32>
    %c0_158 = arith.constant 0 : index
    %c0_159 = arith.constant 0 : index
    %172 = vector.load %arg7[%c0_158, %c0_159] : memref<64x1xf32, #tpu.memory_space<vmem>>, vector<64x1xf32>
    %173 = vector.broadcast %172 : vector<64x1xf32> to vector<64x256xf32>
    %174 = arith.addf %171, %173 : vector<64x256xf32>
    %cst_160 = arith.constant 0.000000e+00 : f32
    %175 = vector.broadcast %cst_160 : f32 to vector<64x256xf32>
    %176 = arith.maximumf %174, %175 : vector<64x256xf32>
    %c0_161 = arith.constant 0 : index
    %c0_162 = arith.constant 0 : index
    %177 = vector.load %arg8[%c0_161, %c0_162] : memref<64x256xf32, #tpu.memory_space<vmem>>, vector<64x256xf32>
    %178 = arith.maximumf %177, %176 : vector<64x256xf32>
    %c0_163 = arith.constant 0 : index
    %c0_164 = arith.constant 0 : index
    %179 = vector.load %arg8[%c0_163, %c0_164] : memref<64x256xf32, #tpu.memory_space<vmem>>, vector<64x256xf32>
    tpu.vector_store %arg8[%c0_163, %c0_164], %178 {strides = array<i32>} : memref<64x256xf32, #tpu.memory_space<vmem>>, vector<64x256xf32>,
    %c7 = arith.constant 7 : index
    %c0_165 = arith.constant 0 : index
    %c0_166 = arith.constant 0 : index
    %180 = vector.load %arg1[%c7, %c0_165, %c0_166] : memref<8x4x256xf32, #tpu.memory_space<vmem>>, vector<1x4x256xf32>
    %181 = vector.shape_cast %180 : vector<1x4x256xf32> to vector<4x256xf32>
    %c0_167 = arith.constant 0 : index
    %c0_168 = arith.constant 0 : index
    %182 = vector.load %arg2[%c0_167, %c0_168] : memref<16x4xf32, #tpu.memory_space<vmem>>, vector<16x4xf32>
    %cst_169 = arith.constant dense<0.000000e+00> : vector<16x256xf32>
    %183 = tpu.matmul %182, %181, %cst_169 {dimension_numbers = #tpu.dot_dimension_numbers<[1], [0], [0], [1], [0, 0, 1, 1], [], []>} : vector<16x4xf32>, vector<4x256xf32>, vector<16x256xf32> -> vector<16x256xf32>
    %c0_170 = arith.constant 0 : index
    %c0_171 = arith.constant 0 : index
    %184 = vector.load %arg3[%c0_170, %c0_171] : memref<16x1xf32, #tpu.memory_space<vmem>>, vector<16x1xf32>
    %185 = vector.broadcast %184 : vector<16x1xf32> to vector<16x256xf32>
    %186 = arith.addf %183, %185 : vector<16x256xf32>
    %cst_172 = arith.constant 0.000000e+00 : f32
    %187 = vector.broadcast %cst_172 : f32 to vector<16x256xf32>
    %188 = arith.maximumf %186, %187 : vector<16x256xf32>
    %c0_173 = arith.constant 0 : index
    %c0_174 = arith.constant 0 : index
    %189 = vector.load %arg4[%c0_173, %c0_174] : memref<32x16xf32, #tpu.memory_space<vmem>>, vector<32x16xf32>
    %cst_175 = arith.constant dense<0.000000e+00> : vector<32x256xf32>
    %190 = tpu.matmul %189, %188, %cst_175 {dimension_numbers = #tpu.dot_dimension_numbers<[1], [0], [0], [1], [0, 0, 1, 1], [], []>} : vector<32x16xf32>, vector<16x256xf32>, vector<32x256xf32> -> vector<32x256xf32>
    %c0_176 = arith.constant 0 : index
    %c0_177 = arith.constant 0 : index
    %191 = vector.load %arg5[%c0_176, %c0_177] : memref<32x1xf32, #tpu.memory_space<vmem>>, vector<32x1xf32>
    %192 = vector.broadcast %191 : vector<32x1xf32> to vector<32x256xf32>
    %193 = arith.addf %190, %192 : vector<32x256xf32>
    %cst_178 = arith.constant 0.000000e+00 : f32
    %194 = vector.broadcast %cst_178 : f32 to vector<32x256xf32>
    %195 = arith.maximumf %193, %194 : vector<32x256xf32>
    %c0_179 = arith.constant 0 : index
    %c0_180 = arith.constant 0 : index
    %196 = vector.load %arg6[%c0_179, %c0_180] : memref<64x32xf32, #tpu.memory_space<vmem>>, vector<64x32xf32>
    %cst_181 = arith.constant dense<0.000000e+00> : vector<64x256xf32>
    %197 = tpu.matmul %196, %195, %cst_181 {dimension_numbers = #tpu.dot_dimension_numbers<[1], [0], [0], [1], [0, 0, 1, 1], [], []>} : vector<64x32xf32>, vector<32x256xf32>, vector<64x256xf32> -> vector<64x256xf32>
    %c0_182 = arith.constant 0 : index
    %c0_183 = arith.constant 0 : index
    %198 = vector.load %arg7[%c0_182, %c0_183] : memref<64x1xf32, #tpu.memory_space<vmem>>, vector<64x1xf32>
    %199 = vector.broadcast %198 : vector<64x1xf32> to vector<64x256xf32>
    %200 = arith.addf %197, %199 : vector<64x256xf32>
    %cst_184 = arith.constant 0.000000e+00 : f32
    %201 = vector.broadcast %cst_184 : f32 to vector<64x256xf32>
    %202 = arith.maximumf %200, %201 : vector<64x256xf32>
    %c0_185 = arith.constant 0 : index
    %c0_186 = arith.constant 0 : index
    %203 = vector.load %arg8[%c0_185, %c0_186] : memref<64x256xf32, #tpu.memory_space<vmem>>, vector<64x256xf32>
    %204 = arith.maximumf %203, %202 : vector<64x256xf32>
    %c0_187 = arith.constant 0 : index
    %c0_188 = arith.constant 0 : index
    %205 = vector.load %arg8[%c0_187, %c0_188] : memref<64x256xf32, #tpu.memory_space<vmem>>, vector<64x256xf32>
    tpu.vector_store %arg8[%c0_187, %c0_188], %204 {strides = array<i32>} : memref<64x256xf32, #tpu.memory_space<vmem>>, vector<64x256xf32>,
    return
  }
  func.func @transform_0(%arg0: i32) -> (i32, i32, i32) {
    %c0_i32 = arith.constant 0 : i32
    %c0_i32_0 = arith.constant 0 : i32
    %c0_i32_1 = arith.constant 0 : i32
    return %c0_i32, %c0_i32_0, %arg0 : i32, i32, i32
  }
  func.func @transform_1(%arg0: i32) -> (i32, i32) {
    %c0_i32 = arith.constant 0 : i32
    %c0_i32_0 = arith.constant 0 : i32
    %c0_i32_1 = arith.constant 0 : i32
    return %c0_i32, %c0_i32_0 : i32, i32
  }
  func.func @transform_2(%arg0: i32) -> (i32, i32) {
    %c0_i32 = arith.constant 0 : i32
    %c0_i32_0 = arith.constant 0 : i32
    %c0_i32_1 = arith.constant 0 : i32
    return %c0_i32, %c0_i32_0 : i32, i32
  }
  func.func @transform_3(%arg0: i32) -> (i32, i32) {
    %c0_i32 = arith.constant 0 : i32
    %c0_i32_0 = arith.constant 0 : i32
    %c0_i32_1 = arith.constant 0 : i32
    return %c0_i32, %c0_i32_0 : i32, i32
  }
  func.func @transform_4(%arg0: i32) -> (i32, i32) {
    %c0_i32 = arith.constant 0 : i32
    %c0_i32_0 = arith.constant 0 : i32
    %c0_i32_1 = arith.constant 0 : i32
    return %c0_i32, %c0_i32_0 : i32, i32
  }
  func.func @transform_5(%arg0: i32) -> (i32, i32) {
    %c0_i32 = arith.constant 0 : i32
    %c0_i32_0 = arith.constant 0 : i32
    %c0_i32_1 = arith.constant 0 : i32
    return %c0_i32, %c0_i32_0 : i32, i32
  }
  func.func @transform_6(%arg0: i32) -> (i32, i32) {
    %c0_i32 = arith.constant 0 : i32
    %c0_i32_0 = arith.constant 0 : i32
    %c0_i32_1 = arith.constant 0 : i32
    return %c0_i32, %c0_i32_0 : i32, i32
  }
  func.func @transform_7(%arg0: i32) -> (i32, i32) {
    %c0_i32 = arith.constant 0 : i32
    %c0_i32_0 = arith.constant 0 : i32
    return %c0_i32, %arg0 : i32, i32
  }
}

</mosaic_0001>

<bundles_post_ra>
// kernel: tpu_custom_call.1
= control target key start
LH: loop header
LB: loop body
LE: loop exit
PB: predicated region body
PF: predicated region fallthrough
CT: control target
= control target key end

     0   :  { %12 = vsyncpa [#allocation4], 0  ;;  %s5620_s0 = inlined_call_operand.vmem [shape: f32[8,4,512], index: 0, kind: input, shape index: {}]   ;;  %s5621_s1 = inlined_call_operand.vmem [shape: f32[16,4], index: 1, kind: input, shape index: {}]   ;;  %s5622_s2 = inlined_call_operand.vmem [shape: f32[16,1], index: 2, kind: input, shape index: {}]   ;;  %s5623_s3 = inlined_call_operand.vmem [shape: f32[32,16], index: 3, kind: input, shape index: {}]   ;;  %s5624_s4 = inlined_call_operand.vmem [shape: f32[32,1], index: 4, kind: input, shape index: {}]   ;;  %s5625_s5 = inlined_call_operand.vmem [shape: f32[64,32], index: 5, kind: input, shape index: {}]   ;;  %s5626_s6 = inlined_call_operand.vmem [shape: f32[64,1], index: 6, kind: input, shape index: {}]   ;;  %s5627_s7 = inlined_call_operand.hbm [shape: f32[64,512], index: 7, kind: output, shape index: {}]  }
   0x1   :  { %14 = vsyncpa [#allocation4 + $0x1], 0  ;;  %s4111_s24 = smov 0   ;;  %s4113_s25 = smov 0  }
   0x2   :  { %s4115_s26 = smov 0   ;;  %s4117_s27 = smov 0  }
   0x3 LB: > { %s3693_s28 = sadd.s32 4294967295, %s4065_s27   ;;  %s3694_s29 = sadd.s32 4294967294, %s4065_s27   ;;  %s4065_s27 = sphi %s4117_s27, %s5815_s27   ;;  %s4061_s26 = sphi %s4115_s26, %s5814_s26   ;;  %s4057_s25 = sphi %s4113_s25, %s5813_s25   ;;  %s4053_s24 = sphi %s4111_s24, %s5812_s24  }
   0x4   : > { %s4134_s30 = sadd.s32 1, %s4065_s27   ;;  %s27_s8 = sadd.s32 1, %s4061_s26 }
   0x5   : > { %s24_s9 = ssub.s32 %s4065_s27, %s4134_s30  ;;  %p34_p0 = scmp.ne.s32.totalorder %s4061_s26, %s4057_s25 }
   0x6   : > { %p25_p1 = scmp.eq.s32.totalorder %s24_s9, 0  ;;  %p35_p2 = scmp.eq.s32.totalorder %s4065_s27, 0 }
   0x7   : > { %p190_p3 = scmp.eq.s32.totalorder %s3693_s28, 1  ;;  %p195_p4 = scmp.ne.s32.totalorder %s4057_s25, %s4053_s24 }
   0x8   : > { %s4147_s10 = scalar_select %p25_p1, %s4061_s26, %s27_s8  }
   0x9   : > { %p36_p5 = por %p35_p2, %p34_p0  ;;  %p4149_p6 = por %p190_p3, %p34_p0 }
   0xa   : > { %p196_p7 = scmp.eq.s32.totalorder %s3694_s29, 1  ;;  %p3696_p9 = scmp.ge.s32.totalorder %s4065_s27, 2 }
   0xc   : > { %p4153_p8 = por %p196_p7, %p195_p4  ;;  %230 = sbr.rel (%p3696_p9) target bundleno = 29 (0x1d), region = 40 }
  0x11   : > { %233 = sbr.rel (!%p36_p5) target bundleno = 29 (0x1d), region = 44  ;;  %s235_s13 = sand.u32 (%p36_p5), 1, %s4061_s26  }
  0x12   : > { %s3955_s14 = sshll.u32 (%p36_p5), %s4065_s27, 3  ;;  %s3697_s15 = sshll.u32 (%p36_p5), %s235_s13, 6 }
  0x13   : > { %s240_s18 = scalar_lea.vmem (%p36_p5), %s5620_s0, %s3955_s14  ;;  %s237_s19 = scalar_lea.vmem (%p36_p5), [#allocation2], %s3697_s15 }
  0x14   : > { %v283_v0 = vld [vmem:[%s240_s18] sm:$0xff] (%p36_p5)  ;;  %v285_v1 = vld [vmem:[%s240_s18 + $0x10] sm:$0xff] (%p36_p5) }
  0x15   : > { %v287_v2 = vld [vmem:[%s240_s18 + $0x20] sm:$0xff] (%p36_p5)  ;;  %284 = vst [vmem:[%s237_s19] sm:$0xff] (%p36_p5), %v283_v0  ;;  %v289_v3 = vld [vmem:[%s240_s18 + $0x30] sm:$0xff] (%p36_p5) }
  0x16   : > { %286 = vst [vmem:[%s237_s19 + $0x8] sm:$0xff] %v285_v1  ;;  %v291_v4 = vld [vmem:[%s240_s18 + $0x40] sm:$0xff]  ;;  %v293_v5 = vld [vmem:[%s240_s18 + $0x50] sm:$0xff] }
  0x17   : > { %288 = vst [vmem:[%s237_s19 + $0x10] sm:$0xff] %v287_v2  ;;  %v295_v6 = vld [vmem:[%s240_s18 + $0x60] sm:$0xff]  ;;  %v297_v7 = vld [vmem:[%s240_s18 + $0x70] sm:$0xff] }
  0x18   : > { %290 = vst [vmem:[%s237_s19 + $0x18] sm:$0xff] %v289_v3 }
  0x19   : > { %292 = vst [vmem:[%s237_s19 + $0x20] sm:$0xff] %v291_v4 }
  0x1a   : > { %294 = vst [vmem:[%s237_s19 + $0x28] sm:$0xff] %v293_v5 }
  0x1b   : > { %296 = vst [vmem:[%s237_s19 + $0x30] sm:$0xff] %v295_v6 }
  0x1c   : > { %298 = vst [vmem:[%s237_s19 + $0x38] sm:$0xff] %v297_v7 }
  0x1d PF: > { %p3700_p10 = scmp.ge.s32.totalorder %s4065_s27, 1  ;;  %p303_p11 = scmp.lt.s32.totalorder %s4065_s27, 3 }
  0x1f   : > { %p304_p12 = pnand %p3700_p10, %p303_p11 }
  0x21   : > { %307 = sbr.rel (%p304_p12) target bundleno = 1875 (0x753), region = 82 }
  0x26   : > { %v4170_v8 = vld [vmem:[%s5622_s2 + $0x8] sm:$0xff]  ;;  %s4173_s22 = sand.u32 1, %s4057_s25   ;;  %v4067_v9 = vmov 0   ;;  %v4184_v11 = vld [vmem:[%s5624_s4 + $0x18] sm:$0xff]  ;;  %v4190_v12 = vld [vmem:[%s5622_s2] sm:$0xff]  ;;  %vm369_vm0 = vcmask 1043456  }
  0x27   : > { %4001 = vset.pattern.permute.xlu1 %v4067_v9  ;;  %4000 = vset.pattern.permute.xlu0 %v4067_v9  ;;  %s3701_s23 = sshll.u32 %s4173_s22, 6  ;;  %v4198_v14 = vld [vmem:[%s5621_s1] sm:$0xff]  ;;  %vm362_vm1 = vcmask 31744   ;;  %v4209_v17 = vld [vmem:[%s5624_s4 + $0x10] sm:$0xff]  ;;  %v4220_v19 = vld [vmem:[%s5624_s4 + $0x8] sm:$0xff]  ;;  %vm452_vm2 = vcmask 130048  }
  0x28   : > { %739 = vperm.xlu1 %4001, %v4170_v8   ;;  %355 = vperm.xlu0 %4000, %v4170_v8   ;;  %s4178_s29 = scalar_lea.vmem [#allocation2], %s3701_s23  ;;  %v4215_v18 = vld [vmem:[%s5624_s4] sm:$0xff]  ;;  %v4227_v20 = vld [vmem:[%s5621_s1 + $0x8] sm:$0xff]  ;;  %v4276_v23 = vld [vmem:[%s5626_s6 + $0x10] sm:$0xff]  ;;  %vm587_vm3 = vcmask 261120   ;;  %s3702_s23 = sshll.u32 %s4173_s22, 7 }
  0x29   : > { %v343_v10 = vld [vmem:[%s4178_s29] sm:$0xff]  ;;  %4002 = vset.pattern.permute.xlu2 %v4067_v9  ;;  %v3733_v13 = vld [vmem:[%s4178_s29 + $0x8] sm:$0xff]  ;;  %v4269_v22 = vld [vmem:[%s5626_s6] sm:$0xff]  ;;  %s5542_s8 = scalar_lea.vmem [#allocation3], %s3702_s23  ;;  %s3956_s9 = sshll.u32 %s3693_s28, 4 }
  0x2a   : > { %359 = vst [vmem:[#allocation1] ss:$2 sm:$0xff] %v343_v10  ;;  %449 = vperm.xlu2 %4002, %v4184_v11   ;;  %v4264_v21 = vld [vmem:[%s5626_s6 + $0x8] sm:$0xff]  ;;  %v4282_v24 = vld [vmem:[%s5626_s6 + $0x20] sm:$0xff]  ;;  %v4287_v25 = vld [vmem:[%s5626_s6 + $0x18] sm:$0xff]  ;;  %s3622_s15 = scalar_lea.hbm %s5627_s7, %s3956_s9  ;;  %s3623_s16 = sshll.u32 %s5542_s8, 4  ;;  %s3624_s16 = int_to_ptr.vmem [resolvable:$true] %s3623_s16 }
  0x2b   : > { %v4294_v26 = vld [vmem:[%s5626_s6 + $0x28] sm:$0xff]  ;;  %v4300_v27 = vld [vmem:[%s5626_s6 + $0x30] sm:$0xff]  ;;  %v4308_v28 = vld [vmem:[%s5626_s6 + $0x38] sm:$0xff]  ;;  %s5584_s28 = sshll.u32 %s3622_s15, 4  ;;  %s3611_s17 = scalar_lea.sflag [#allocation4], %s4173_s22  ;;  %s3626_s28 = int_to_ptr.hbm [resolvable:$true] %s5584_s28 }
  0x2c   : > { %v3764_v41 = vld [vmem:[%s4178_s29 + $0x10] sm:$0xff]  ;;  %v4326_v46 = vld [vmem:[%s5623_s3] sm:$0xff]  ;;  %v4340_v47 = vld [vmem:[%s5623_s3 + $0x8] sm:$0xff]  ;;  %s4017_s18 = sshra.s32 %s3626_s28, 4  ;;  %s4023_s21 = scalar_lea.hbm %s5627_s7, 256  ;;  %s4018_s18 = int_to_ptr.hbm [resolvable:$true] %s4017_s18 }
  0x2d   : > { %v4352_v48 = vld [vmem:[%s5623_s3 + $0x10] sm:$0xff]  ;;  %v4364_v49 = vld [vmem:[%s5623_s3 + $0x18] sm:$0xff]  ;;  %s4019_s19 = scalar_lea.hbm %s4018_s18, 128  ;;  %p4024_p2 = scmp.lt.s32.totalorder %s4018_s18, %s5627_s7 }
  0x2e   : > { %p4020_p13 = scmp.ne.s32.totalorder %s4018_s18, %s4019_s19  ;;  %p4025_p3 = scmp.lt.s32.totalorder %s4023_s21, %s4019_s19 }
  0x30   : > { %734 = vperm.xlu1 %4001, %v4190_v12   ;;  %350 = vperm.xlu0 %4000, %v4190_v12   ;;  %p4021_p0 = pnand %p4020_p13, %p4149_p6  ;;  %p4026_p4 = por %p4025_p3, %p4024_p2 }
  0x31   : > { %v360_v15 = vld.sshfl [vmem:[#allocation1] sm:$0xff pattern:$0x75316420]  ;;  %v361_v16 = vld.sshfl [vmem:[#allocation1 + $0x8] sm:$0xff pattern:$0x75316420] }
  0x32   : > { %3703 = vmatpush.msk.msra.mxu0 %vm369_vm0, %v360_v15  ;;  %3706 = vmatpush.msk.msra.mxu1 %vm369_vm0, %v361_v16  ;;  %743 = vst [vmem:[#allocation1] ss:$2 sm:$0xff] %v3733_v13  ;;  %p4022_p1 = pneg %p4021_p0 }
  0x33   : > { %3704 = vmatmul.msk.f32.vlgmr.msra.gmra.mxu0 %vm362_vm1, %v4198_v14  ;;  %3707 = vmatmul.msk.f32.vlgmr.msra.gmra.mxu1 %vm362_vm1, %v4198_v14 }
  0x34   : > { %444 = vperm.xlu2 %4002, %v4209_v17   ;;  %p4027_p5 = pnand %p4026_p4, %p4022_p1 }
  0x38   : > { %434 = vperm.xlu1 %4001, %v4215_v18   ;;  %439 = vperm.xlu0 %4000, %v4220_v19  }
  0x39   : > { %v744_v39 = vld.sshfl [vmem:[#allocation1] sm:$0xff pattern:$0x75316420]  ;;  %v745_v40 = vld.sshfl [vmem:[#allocation1 + $0x8] sm:$0xff pattern:$0x75316420] }
  0x3a   : > { %1155 = vst [vmem:[#allocation1] ss:$2 sm:$0xff] %v3764_v41 }
  0x3b   : > { %3705 = vmatmul.msk.f32.gmra.mxu0 %vm362_vm1, %v4227_v20  ;;  %3708 = vmatmul.msk.f32.gmra.mxu1 %vm362_vm1, %v4227_v20 }
  0x3c   : > { %1151 = vperm.xlu2 %4002, %v4170_v8  }
  0x40   : > { %831 = vperm.xlu1 %4001, %v4184_v11   ;;  %1146 = vperm.xlu0 %4000, %v4190_v12  }
  0x44   : > { %826 = vperm.xlu2 %4002, %v4209_v17  }
  0x48   : > { %816 = vperm.xlu1 %4001, %v4215_v18   ;;  %821 = vperm.xlu0 %4000, %v4220_v19  }
  0x4c   : > { %1243 = vperm.xlu2 %4002, %v4184_v11  }
  0x50   : > { %1233 = vperm.xlu1 %4001, %v4220_v19   ;;  %1238 = vperm.xlu0 %4000, %v4209_v17  }
  0x54   : > { %1228 = vperm.xlu2 %4002, %v4215_v18  }
  0x58   : > { %1558 = vperm.xlu1 %4001, %v4190_v12   ;;  %1563 = vperm.xlu0 %4000, %v4170_v8  }
  0x5c   : > { %1655 = vperm.xlu2 %4002, %v4184_v11  }
  0x60   : > { %1645 = vperm.xlu1 %4001, %v4220_v19   ;;  %1650 = vperm.xlu0 %4000, %v4209_v17  }
  0x64   : > { %1640 = vperm.xlu2 %4002, %v4215_v18  }
  0x68   : > { %1970 = vperm.xlu1 %4001, %v4190_v12   ;;  %1975 = vperm.xlu0 %4000, %v4170_v8  }
  0x6c   : > { %2387 = vperm.xlu2 %4002, %v4170_v8  }
  0x70   : > { %2067 = vperm.xlu1 %4001, %v4184_v11   ;;  %2382 = vperm.xlu0 %4000, %v4190_v12  }
  0x74   : > { %2062 = vperm.xlu2 %4002, %v4209_v17  }
  0x78   : > { %2052 = vperm.xlu1 %4001, %v4215_v18   ;;  %2057 = vperm.xlu0 %4000, %v4220_v19  }
  0x7c   : > { %2479 = vperm.xlu2 %4002, %v4184_v11  }
  0x80   : > { %2469 = vperm.xlu1 %4001, %v4220_v19   ;;  %2474 = vperm.xlu0 %4000, %v4209_v17  }
  0x84   : > { %2464 = vperm.xlu2 %4002, %v4215_v18   ;;  %v450_v55 = vpop.permute.xlu2 %449 }
  0x88   : > { %554 = vperm.xlu1 %4001, %v4264_v21   ;;  %549 = vperm.xlu0 %4000, %v4269_v22  }
  0x8c   : > { %559 = vperm.xlu2 %4002, %v4276_v23  }
  0x8e   : > { %v445_v59 = vpop.permute.xlu2 %444 }
  0x90   : > { %569 = vperm.xlu1 %4001, %v4282_v24   ;;  %564 = vperm.xlu0 %4000, %v4287_v25  }
  0x94   : > { %574 = vperm.xlu2 %4002, %v4294_v26  }
  0x98   : > { %2799 = vperm.xlu1 %4001, %v4170_v8   ;;  %579 = vperm.xlu0 %4000, %v4300_v27  }
  0x9a   : > { %v356_v29 = vpop.permute.xlu0 %355  ;;  %v740_v52 = vpop.permute.xlu1 %739 }
  0x9c   : > { %2794 = vperm.xlu2 %4002, %v4190_v12  }
  0xa0   : > { %3211 = vperm.xlu1 %4001, %v4170_v8   ;;  %584 = vperm.xlu0 %4000, %v4308_v28  }
  0xa2   : > { %v351_v32 = vpop.permute.xlu0 %350  ;;  %v735_v58 = vpop.permute.xlu1 %734 }
  0xa4   : > { %3206 = vperm.xlu2 %4002, %v4190_v12  }
  0xa8   : > { %935 = vperm.xlu1 %4001, %v4264_v21   ;;  %930 = vperm.xlu0 %4000, %v4269_v22  }
  0xaa   : > { %v440_v2 = vpop.permute.xlu0 %439  ;;  %v435_v7 = vpop.permute.xlu1 %434 }
  0xac   : > { %940 = vperm.xlu2 %4002, %v4276_v23  }
  0xb0   : > { %950 = vperm.xlu1 %4001, %v4282_v24   ;;  %945 = vperm.xlu0 %4000, %v4287_v25   ;;  %v391_v30 = vpop.f32.mrf.mxu0  ;;  %v414_v31 = vpop.f32.mrf.mxu1 }
  0xb1   : > { %v392_v35 = vadd.f32 %v391_v30, %v351_v32  ;;  %v415_v36 = vadd.f32 %v414_v31, %v351_v32  ;;  %v3795_v30 = vld [vmem:[%s4178_s29 + $0x18] sm:$0xff] }
  0xb3   : > { %v420_v44 = vmax.f32 %v392_v35, 0.0  ;;  %v421_v45 = vmax.f32 %v415_v36, 0.0  ;;  %v4450_v35 = vld [vmem:[%s5625_s5 + $0x10] sm:$0xff]  ;;  %v4465_v36 = vld [vmem:[%s5625_s5 + $0x18] sm:$0xff] }
  0xb4   : > { %955 = vperm.xlu2 %4002, %v4294_v26  }
  0xb8   : > { %965 = vperm.xlu1 %4001, %v4308_v28   ;;  %960 = vperm.xlu0 %4000, %v4300_v27   ;;  %v394_v33 = vpop.f32.mrf.mxu0  ;;  %v417_v34 = vpop.f32.mrf.mxu1 }
  0xb9   : > { %v395_v37 = vadd.f32 %v394_v33, %v356_v29  ;;  %v418_v38 = vadd.f32 %v417_v34, %v356_v29  ;;  %v1157_v29 = vld.sshfl [vmem:[#allocation1 + $0x8] sm:$0xff pattern:$0x75316420] }
  0xbb   : > { %v422_v42 = vmax.f32 %v395_v37, 0.0  ;;  %v423_v43 = vmax.f32 %v418_v38, 0.0  ;;  %v4478_v37 = vld [vmem:[%s5625_s5 + $0x20] sm:$0xff]  ;;  %v4491_v38 = vld [vmem:[%s5625_s5 + $0x28] sm:$0xff] }
  0xbc   : > { %1342 = vperm.xlu2 %4002, %v4269_v22  }
  0xbd   : > { %479 = vmatpush.msra.mxu2 %v422_v42  ;;  %508 = vmatpush.msra.mxu3 %v423_v43 }
  0xbf   : > { %480 = vmatpush.msra.mxu2 %v420_v44  ;;  %509 = vmatpush.msra.mxu3 %v421_v45  ;;  %v1152_v44 = vpop.permute.xlu2 %1151  ;;  %v1147_v45 = vpop.permute.xlu0 %1146 }
  0xc0   : > { %1352 = vperm.xlu1 %4001, %v4276_v23   ;;  %1347 = vperm.xlu0 %4000, %v4264_v21  }
  0xc1   : > { %3709 = vmatmul.msk.f32.vlgmr.msra.gmra.mxu2 %vm452_vm2, %v4326_v46  ;;  %3713 = vmatmul.msk.f32.vlgmr.msra.gmra.mxu3 %vm452_vm2, %v4326_v46 }
  0xc2   : > { %3734 = vmatpush.msk.msrb.mxu2 %vm369_vm0, %v744_v39  ;;  %3737 = vmatpush.msk.msrb.mxu3 %vm369_vm0, %v745_v40  ;;  %v4504_v39 = vld [vmem:[%s5625_s5 + $0x30] sm:$0xff] }
  0xc4   : > { %1357 = vperm.xlu2 %4002, %v4287_v25  }
  0xc8   : > { %1367 = vperm.xlu1 %4001, %v4294_v26   ;;  %1362 = vperm.xlu0 %4000, %v4282_v24  }
  0xc9   : > { %3710 = vmatmul.msk.f32.gmra.mxu2 %vm452_vm2, %v4340_v47  ;;  %3714 = vmatmul.msk.f32.gmra.mxu3 %vm452_vm2, %v4340_v47 }
  0xcc   : > { %1372 = vperm.xlu2 %4002, %v4300_v27  }
  0xd0   : > { %1754 = vperm.xlu1 %4001, %v4269_v22   ;;  %1377 = vperm.xlu0 %4000, %v4308_v28  }
  0xd1   : > { %3711 = vmatmul.msk.f32.gmra.mxu2 %vm452_vm2, %v4352_v48  ;;  %3715 = vmatmul.msk.f32.gmra.mxu3 %vm452_vm2, %v4352_v48 }
  0xd4   : > { %1759 = vperm.xlu2 %4002, %v4264_v21  }
  0xd8   : > { %1769 = vperm.xlu1 %4001, %v4287_v25   ;;  %1764 = vperm.xlu0 %4000, %v4276_v23  }
  0xd9   : > { %3712 = vmatmul.msk.f32.gmra.mxu2 %vm452_vm2, %v4364_v49  ;;  %3716 = vmatmul.msk.f32.gmra.mxu3 %vm452_vm2, %v4364_v49 }
  0xdc   : > { %1774 = vperm.xlu2 %4002, %v4282_v24  }
  0xe0   : > { %2891 = vperm.xlu1 %4001, %v4184_v11   ;;  %1779 = vperm.xlu0 %4000, %v4294_v26  }
  0xe1   : > { %3735 = vmatmul.msk.f32.vlgmr.msrb.gmra.mxu2 %vm362_vm1, %v4198_v14  ;;  %3738 = vmatmul.msk.f32.vlgmr.msrb.gmra.mxu3 %vm362_vm1, %v4198_v14 }
  0xe4   : > { %2886 = vperm.xlu2 %4002, %v4209_v17  }
  0xe8   : > { %2876 = vperm.xlu1 %4001, %v4215_v18   ;;  %2881 = vperm.xlu0 %4000, %v4220_v19  }
  0xe9   : > { %3736 = vmatmul.msk.f32.gmra.mxu2 %vm362_vm1, %v4227_v20  ;;  %3739 = vmatmul.msk.f32.gmra.mxu3 %vm362_vm1, %v4227_v20 }
  0xec   : > { %3303 = vperm.xlu2 %4002, %v4184_v11  }
  0xf0   : > { %3293 = vperm.xlu1 %4001, %v4220_v19   ;;  %3298 = vperm.xlu0 %4000, %v4209_v17   ;;  %v4427_v19 = vld [vmem:[%s5625_s5] sm:$0xff] }
  0xf4   : > { %3288 = vperm.xlu2 %4002, %v4215_v18  }
  0xf8   : > { %1789 = vperm.xlu1 %4001, %v4308_v28   ;;  %1784 = vperm.xlu0 %4000, %v4300_v27  }
  0xfc   : > { %2166 = vperm.xlu2 %4002, %v4269_v22  }
 0x100   : > { %2176 = vperm.xlu1 %4001, %v4276_v23   ;;  %2171 = vperm.xlu0 %4000, %v4264_v21  }
 0x104   : > { %2181 = vperm.xlu2 %4002, %v4287_v25  }
 0x108   : > { %2191 = vperm.xlu1 %4001, %v4294_v26   ;;  %2186 = vperm.xlu0 %4000, %v4282_v24  }
 0x10c   : > { %2196 = vperm.xlu2 %4002, %v4300_v27  }
 0x110   : > { %2578 = vperm.xlu1 %4001, %v4269_v22   ;;  %2201 = vperm.xlu0 %4000, %v4308_v28  }
 0x114   : > { %2583 = vperm.xlu2 %4002, %v4264_v21  }
 0x118   : > { %2593 = vperm.xlu1 %4001, %v4287_v25   ;;  %2588 = vperm.xlu0 %4000, %v4276_v23  }
 0x11c   : > { %2598 = vperm.xlu2 %4002, %v4282_v24  }
 0x120   : > { %2608 = vperm.xlu1 %4001, %v4300_v27   ;;  %2603 = vperm.xlu0 %4000, %v4294_v26  }
 0x124   : > { %2613 = vperm.xlu2 %4002, %v4308_v28  }
 0x128   : > { %2995 = vperm.xlu1 %4001, %v4264_v21   ;;  %2990 = vperm.xlu0 %4000, %v4269_v22  }
 0x12c   : > { %3000 = vperm.xlu2 %4002, %v4276_v23  }
 0x130   : > { %3010 = vperm.xlu1 %4001, %v4282_v24   ;;  %3005 = vperm.xlu0 %4000, %v4287_v25  }
 0x134   : > { %3015 = vperm.xlu2 %4002, %v4294_v26  }
 0x138   : > { %3025 = vperm.xlu1 %4001, %v4308_v28   ;;  %3020 = vperm.xlu0 %4000, %v4300_v27  }
 0x13c   : > { %3402 = vperm.xlu2 %4002, %v4269_v22  }
 0x140   : > { %3412 = vperm.xlu1 %4001, %v4276_v23   ;;  %3407 = vperm.xlu0 %4000, %v4264_v21   ;;  %v1156_v23 = vld.sshfl [vmem:[#allocation1] sm:$0xff pattern:$0x75316420] }
 0x141   : > { %1567 = vst [vmem:[#allocation1] ss:$2 sm:$0xff] %v3795_v30 }
 0x144   : > { %v482_v50 = vpop.f32.mrf.mxu2  ;;  %v511_v51 = vpop.f32.mrf.mxu3  ;;  %3417 = vperm.xlu2 %4002, %v4287_v25  }
 0x145   : > { %v483_v8 = vadd.f32 %v482_v50, %v435_v7  ;;  %v512_v9 = vadd.f32 %v511_v51, %v435_v7 }
 0x147   : > { %v523_v17 = vmax.f32 %v483_v8, 0.0  ;;  %v524_v18 = vmax.f32 %v512_v9, 0.0 }
 0x148   : > { %3427 = vperm.xlu1 %4001, %v4294_v26   ;;  %3422 = vperm.xlu0 %4000, %v4282_v24  }
 0x14c   : > { %v485_v53 = vpop.f32.mrf.mxu2  ;;  %v514_v54 = vpop.f32.mrf.mxu3  ;;  %3432 = vperm.xlu2 %4002, %v4300_v27  }
 0x14d   : > { %v486_v3 = vadd.f32 %v485_v53, %v440_v2  ;;  %v515_v4 = vadd.f32 %v514_v54, %v440_v2 }
 0x14f   : > { %v525_v12 = vmax.f32 %v486_v3, 0.0  ;;  %v526_v13 = vmax.f32 %v515_v4, 0.0 }
 0x150   : > { %3437 = vperm.xlu0 %4000, %v4308_v28   ;;  %v4436_v28 = vld [vmem:[%s5625_s5 + $0x8] sm:$0xff] }
 0x154   : > { %v488_v56 = vpop.f32.mrf.mxu2  ;;  %v517_v57 = vpop.f32.mrf.mxu3 }
 0x155   : > { %v489_v62 = vadd.f32 %v488_v56, %v445_v59  ;;  %v518_v63 = vadd.f32 %v517_v57, %v445_v59  ;;  %v822_v59 = vpop.permute.xlu0 %821 }
 0x157   : > { %v527_v10 = vmax.f32 %v489_v62, 0.0  ;;  %v528_v11 = vmax.f32 %v518_v63, 0.0 }
 0x15c   : > { %v491_v60 = vpop.f32.mrf.mxu2  ;;  %v520_v61 = vpop.f32.mrf.mxu3 }
 0x15d   : > { %v492_v0 = vadd.f32 %v491_v60, %v450_v55  ;;  %v521_v1 = vadd.f32 %v520_v61, %v450_v55 }
 0x15f   : > { %v529_v5 = vmax.f32 %v492_v0, 0.0  ;;  %v530_v6 = vmax.f32 %v521_v1, 0.0 }
 0x161   : > { %624 = vmatpush.msrb.mxu0 %v529_v5  ;;  %665 = vmatpush.msrb.mxu1 %v530_v6 }
 0x163   : > { %625 = vmatpush.msrb.mxu0 %v527_v10  ;;  %666 = vmatpush.msrb.mxu1 %v528_v11 }
 0x164   : > { %v773_v15 = vpop.f32.mrf.mxu2  ;;  %v796_v16 = vpop.f32.mrf.mxu3 }
 0x165   : > { %626 = vmatpush.msrb.mxu0 %v525_v12  ;;  %667 = vmatpush.msrb.mxu1 %v526_v13  ;;  %v774_v24 = vadd.f32 %v773_v15, %v735_v58  ;;  %v797_v25 = vadd.f32 %v796_v16, %v735_v58 }
 0x167   : > { %627 = vmatpush.msrb.mxu0 %v523_v17  ;;  %668 = vmatpush.msrb.mxu1 %v524_v18  ;;  %v802_v33 = vmax.f32 %v774_v24, 0.0  ;;  %v803_v34 = vmax.f32 %v797_v25, 0.0  ;;  %v1568_v24 = vld.sshfl [vmem:[#allocation1] sm:$0xff pattern:$0x75316420]  ;;  %v3826_v25 = vld [vmem:[%s4178_s29 + $0x20] sm:$0xff] }
 0x168   : > { %3717 = vmatmul.msk.f32.vlgmr.msrb.gmra.mxu0 %vm587_vm3, %v4427_v19  ;;  %3725 = vmatmul.msk.f32.vlgmr.msrb.gmra.mxu1 %vm587_vm3, %v4427_v19 }
 0x16c   : > { %v776_v21 = vpop.f32.mrf.mxu2  ;;  %v799_v22 = vpop.f32.mrf.mxu3 }
 0x16d   : > { %v777_v26 = vadd.f32 %v776_v21, %v740_v52  ;;  %v800_v27 = vadd.f32 %v799_v22, %v740_v52  ;;  %v827_v52 = vpop.permute.xlu2 %826 }
 0x16f   : > { %v804_v31 = vmax.f32 %v777_v26, 0.0  ;;  %v805_v32 = vmax.f32 %v800_v27, 0.0  ;;  %v4585_v27 = vld [vmem:[%s5621_s1] sm:$0xff] }
 0x170   : > { %3718 = vmatmul.msk.f32.gmra.mxu0 %vm587_vm3, %v4436_v28  ;;  %3726 = vmatmul.msk.f32.gmra.mxu1 %vm587_vm3, %v4436_v28 }
 0x171   : > { %860 = vmatpush.msra.mxu2 %v804_v31  ;;  %889 = vmatpush.msra.mxu3 %v805_v32  ;;  %v4598_v31 = vld [vmem:[%s5621_s1 + $0x8] sm:$0xff] }
 0x173   : > { %861 = vmatpush.msra.mxu2 %v802_v33  ;;  %890 = vmatpush.msra.mxu3 %v803_v34 }
 0x174   : > { %3740 = vmatmul.msk.f32.vlgmr.msra.gmra.mxu2 %vm452_vm2, %v4326_v46  ;;  %3744 = vmatmul.msk.f32.vlgmr.msra.gmra.mxu3 %vm452_vm2, %v4326_v46 }
 0x175   : > { %3765 = vmatpush.msk.msrb.mxu2 %vm369_vm0, %v1156_v23  ;;  %3768 = vmatpush.msk.msrb.mxu3 %vm369_vm0, %v1157_v29 }
 0x178   : > { %3719 = vmatmul.msk.f32.gmra.mxu0 %vm587_vm3, %v4450_v35  ;;  %3727 = vmatmul.msk.f32.gmra.mxu1 %vm587_vm3, %v4450_v35 }
 0x17c   : > { %3741 = vmatmul.msk.f32.gmra.mxu2 %vm452_vm2, %v4340_v47  ;;  %3745 = vmatmul.msk.f32.gmra.mxu3 %vm452_vm2, %v4340_v47 }
 0x180   : > { %3720 = vmatmul.msk.f32.gmra.mxu0 %vm587_vm3, %v4465_v36  ;;  %3728 = vmatmul.msk.f32.gmra.mxu1 %vm587_vm3, %v4465_v36 }
 0x184   : > { %3742 = vmatmul.msk.f32.gmra.mxu2 %vm452_vm2, %v4352_v48  ;;  %3746 = vmatmul.msk.f32.gmra.mxu3 %vm452_vm2, %v4352_v48 }
 0x188   : > { %3721 = vmatmul.msk.f32.gmra.mxu0 %vm587_vm3, %v4478_v37  ;;  %3729 = vmatmul.msk.f32.gmra.mxu1 %vm587_vm3, %v4478_v37 }
 0x18c   : > { %3743 = vmatmul.msk.f32.gmra.mxu2 %vm452_vm2, %v4364_v49  ;;  %3747 = vmatmul.msk.f32.gmra.mxu3 %vm452_vm2, %v4364_v49 }
 0x190   : > { %3722 = vmatmul.msk.f32.gmra.mxu0 %vm587_vm3, %v4491_v38  ;;  %3730 = vmatmul.msk.f32.gmra.mxu1 %vm587_vm3, %v4491_v38 }
 0x194   : > { %3766 = vmatmul.msk.f32.vlgmr.msrb.gmra.mxu2 %vm362_vm1, %v4198_v14  ;;  %3769 = vmatmul.msk.f32.vlgmr.msrb.gmra.mxu3 %vm362_vm1, %v4198_v14  ;;  %v4517_v14 = vld [vmem:[%s5625_s5 + $0x38] sm:$0xff] }
 0x198   : > { %3723 = vmatmul.msk.f32.gmra.mxu0 %vm587_vm3, %v4504_v39  ;;  %3731 = vmatmul.msk.f32.gmra.mxu1 %vm587_vm3, %v4504_v39 }
 0x19c   : > { %3767 = vmatmul.msk.f32.gmra.mxu2 %vm362_vm1, %v4227_v20  ;;  %3770 = vmatmul.msk.f32.gmra.mxu3 %vm362_vm1, %v4227_v20  ;;  %v832_v20 = vpop.permute.xlu1 %831 }
 0x1a0   : > { %3724 = vmatmul.msk.f32.gmra.mxu0 %vm587_vm3, %v4517_v14  ;;  %3732 = vmatmul.msk.f32.gmra.mxu1 %vm587_vm3, %v4517_v14 }
 0x1a4   : > { %v817_v0 = vpop.permute.xlu1 %816 }
 0x1f7   : > { %v863_v40 = vpop.f32.mrf.mxu2  ;;  %v892_v41 = vpop.f32.mrf.mxu3 }
 0x1f8   : > { %v864_v1 = vadd.f32 %v863_v40, %v817_v0  ;;  %v893_v2 = vadd.f32 %v892_v41, %v817_v0 }
 0x1fa   : > { %v904_v9 = vmax.f32 %v864_v1, 0.0  ;;  %v905_v10 = vmax.f32 %v893_v2, 0.0  ;;  %v1244_v2 = vpop.permute.xlu2 %1243 }
 0x1ff   : > { %v866_v42 = vpop.f32.mrf.mxu2  ;;  %v895_v43 = vpop.f32.mrf.mxu3 }
 0x200   : > { %v867_v60 = vadd.f32 %v866_v42, %v822_v59  ;;  %v896_v61 = vadd.f32 %v895_v43, %v822_v59 }
 0x202   : > { %v906_v5 = vmax.f32 %v867_v60, 0.0  ;;  %v907_v6 = vmax.f32 %v896_v61, 0.0 }
 0x207   : > { %v869_v50 = vpop.f32.mrf.mxu2  ;;  %v898_v51 = vpop.f32.mrf.mxu3 }
 0x208   : > { %v870_v55 = vadd.f32 %v869_v50, %v827_v52  ;;  %v899_v56 = vadd.f32 %v898_v51, %v827_v52 }
 0x20a   : > { %v908_v3 = vmax.f32 %v870_v55, 0.0  ;;  %v909_v4 = vmax.f32 %v899_v56, 0.0 }
 0x20f   : > { %v872_v53 = vpop.f32.mrf.mxu2  ;;  %v901_v54 = vpop.f32.mrf.mxu3 }
 0x210   : > { %v873_v57 = vadd.f32 %v872_v53, %v832_v20  ;;  %v902_v58 = vadd.f32 %v901_v54, %v832_v20 }
 0x212   : > { %v910_v62 = vmax.f32 %v873_v57, 0.0  ;;  %v911_v63 = vmax.f32 %v902_v58, 0.0 }
 0x214   : > { %1004 = vmatpush.msra.mxu0 %v910_v62  ;;  %1045 = vmatpush.msra.mxu1 %v911_v63 }
 0x216   : > { %1005 = vmatpush.msra.mxu0 %v908_v3  ;;  %1046 = vmatpush.msra.mxu1 %v909_v4 }
 0x217   : > { %v1185_v7 = vpop.f32.mrf.mxu2  ;;  %v1208_v8 = vpop.f32.mrf.mxu3 }
 0x218   : > { %1006 = vmatpush.msra.mxu0 %v906_v5  ;;  %1047 = vmatpush.msra.mxu1 %v907_v6  ;;  %v1186_v13 = vadd.f32 %v1185_v7, %v1147_v45  ;;  %v1209_v15 = vadd.f32 %v1208_v8, %v1147_v45  ;;  %v1239_v5 = vpop.permute.xlu0 %1238 }
 0x21a   : > { %1007 = vmatpush.msra.mxu0 %v904_v9  ;;  %1048 = vmatpush.msra.mxu1 %v905_v10  ;;  %v1214_v22 = vmax.f32 %v1186_v13, 0.0  ;;  %v1215_v23 = vmax.f32 %v1209_v15, 0.0 }
 0x21b   : > { %3748 = vmatmul.msk.f32.vlgmr.msra.gmra.mxu0 %vm587_vm3, %v4427_v19  ;;  %3756 = vmatmul.msk.f32.vlgmr.msra.gmra.mxu1 %vm587_vm3, %v4427_v19 }
 0x21c   : > { %3796 = vmatpush.msk.msrb.mxu0 %vm369_vm0, %v1568_v24 }
 0x21f   : > { %v1188_v11 = vpop.f32.mrf.mxu2  ;;  %v1211_v12 = vpop.f32.mrf.mxu3 }
 0x220   : > { %v1189_v16 = vadd.f32 %v1188_v11, %v1152_v44  ;;  %v1212_v17 = vadd.f32 %v1211_v12, %v1152_v44  ;;  %v1234_v12 = vpop.permute.xlu1 %1233 }
 0x222   : > { %v1216_v18 = vmax.f32 %v1189_v16, 0.0  ;;  %v1217_v21 = vmax.f32 %v1212_v17, 0.0 }
 0x223   : > { %3749 = vmatmul.msk.f32.gmra.mxu0 %vm587_vm3, %v4436_v28  ;;  %3757 = vmatmul.msk.f32.gmra.mxu1 %vm587_vm3, %v4436_v28 }
 0x224   : > { %1272 = vmatpush.msra.mxu2 %v1216_v18  ;;  %1301 = vmatpush.msra.mxu3 %v1217_v21  ;;  %v1229_v18 = vpop.permute.xlu2 %1228 }
 0x226   : > { %1273 = vmatpush.msra.mxu2 %v1214_v22  ;;  %1302 = vmatpush.msra.mxu3 %v1215_v23 }
 0x227   : > { %3771 = vmatmul.msk.f32.vlgmr.msra.gmra.mxu2 %vm452_vm2, %v4326_v46  ;;  %3775 = vmatmul.msk.f32.vlgmr.msra.gmra.mxu3 %vm452_vm2, %v4326_v46  ;;  %v1569_v46 = vld.sshfl [vmem:[#allocation1 + $0x8] sm:$0xff pattern:$0x75316420] }
 0x228   : > { %3799 = vmatpush.msk.msrb.mxu1 %vm369_vm0, %v1569_v46  ;;  %1979 = vst [vmem:[#allocation1] ss:$2 sm:$0xff] %v3826_v25 }
 0x22b   : > { %3750 = vmatmul.msk.f32.gmra.mxu0 %vm587_vm3, %v4450_v35  ;;  %3758 = vmatmul.msk.f32.gmra.mxu1 %vm587_vm3, %v4450_v35 }
 0x22f   : > { %3772 = vmatmul.msk.f32.gmra.mxu2 %vm452_vm2, %v4340_v47  ;;  %3776 = vmatmul.msk.f32.gmra.mxu3 %vm452_vm2, %v4340_v47  ;;  %v4566_v47 = vpop.f32.mrf.mxu0 }
 0x233   : > { %3751 = vmatmul.msk.f32.gmra.mxu0 %vm587_vm3, %v4465_v36  ;;  %3759 = vmatmul.msk.f32.gmra.mxu1 %vm587_vm3, %v4465_v36 }
 0x237   : > { %3773 = vmatmul.msk.f32.gmra.mxu2 %vm452_vm2, %v4352_v48  ;;  %3777 = vmatmul.msk.f32.gmra.mxu3 %vm452_vm2, %v4352_v48  ;;  %v4568_v48 = vpop.f32.mrf.mxu1 }
 0x23b   : > { %3752 = vmatmul.msk.f32.gmra.mxu0 %vm587_vm3, %v4478_v37  ;;  %3760 = vmatmul.msk.f32.gmra.mxu1 %vm587_vm3, %v4478_v37 }
 0x23f   : > { %3774 = vmatmul.msk.f32.gmra.mxu2 %vm452_vm2, %v4364_v49  ;;  %3778 = vmatmul.msk.f32.gmra.mxu3 %vm452_vm2, %v4364_v49  ;;  %v4578_v49 = vpop.f32.mrf.mxu0  ;;  %v4580_v26 = vpop.f32.mrf.mxu1 }
 0x243   : > { %3753 = vmatmul.msk.f32.gmra.mxu0 %vm587_vm3, %v4491_v38  ;;  %3761 = vmatmul.msk.f32.gmra.mxu1 %vm587_vm3, %v4491_v38 }
 0x247   : > { %v4591_v29 = vpop.f32.mrf.mxu0  ;;  %v4593_v30 = vpop.f32.mrf.mxu1 }
 0x24b   : > { %3754 = vmatmul.msk.f32.gmra.mxu0 %vm587_vm3, %v4504_v39  ;;  %3762 = vmatmul.msk.f32.gmra.mxu1 %vm587_vm3, %v4504_v39 }
 0x24f   : > { %v4604_v32 = vpop.f32.mrf.mxu0  ;;  %v4606_v33 = vpop.f32.mrf.mxu1 }
 0x253   : > { %3755 = vmatmul.msk.f32.gmra.mxu0 %vm587_vm3, %v4517_v14  ;;  %3763 = vmatmul.msk.f32.gmra.mxu1 %vm587_vm3, %v4517_v14 }
 0x257   : > { %v4608_v34 = vpop.f32.mrf.mxu0  ;;  %v4610_v40 = vpop.f32.mrf.mxu1 }
 0x258   : > { %5654 = vst [vmem:[#allocation6_spill] sm:$0xff] %v4608_v34 }
 0x259   : > { %5655 = vst [vmem:[#allocation7_spill] sm:$0xff] %v4610_v40 }
 0x25b   : > { %3797 = vmatmul.msk.f32.vlgmr.msrb.gmra.mxu0 %vm362_vm1, %v4585_v27  ;;  %3800 = vmatmul.msk.f32.vlgmr.msrb.gmra.mxu1 %vm362_vm1, %v4585_v27 }
 0x25f   : > { %v4612_v41 = vpop.f32.mrf.mxu0  ;;  %v4614_v42 = vpop.f32.mrf.mxu1 }
 0x260   : > { %5656 = vst [vmem:[#allocation8_spill] sm:$0xff] %v4612_v41 }
 0x261   : > { %5657 = vst [vmem:[#allocation9_spill] sm:$0xff] %v4614_v42 }
 0x263   : > { %3798 = vmatmul.msk.f32.gmra.mxu0 %vm362_vm1, %v4598_v31  ;;  %3801 = vmatmul.msk.f32.gmra.mxu1 %vm362_vm1, %v4598_v31 }
 0x267   : > { %v4616_v43 = vpop.f32.mrf.mxu0  ;;  %v4618_v44 = vpop.f32.mrf.mxu1 }
 0x268   : > { %5658 = vst [vmem:[#allocation10_spill] sm:$0xff] %v4616_v43 }
 0x269   : > { %5659 = vst [vmem:[#allocation11_spill] sm:$0xff] %v4618_v44 }
 0x26f   : > { %v4620_v45 = vpop.f32.mrf.mxu0  ;;  %v4622_v50 = vpop.f32.mrf.mxu1 }
 0x270   : > { %5660 = vst [vmem:[#allocation12_spill] sm:$0xff] %v4620_v45 }
 0x271   : > { %5661 = vst [vmem:[#allocation13_spill] sm:$0xff] %v4622_v50 }
 0x298   : > { %v4624_v51 = vpop.f32.mrf.mxu0  ;;  %v4626_v20 = vpop.f32.mrf.mxu1 }
 0x2a0   : > { %v4628_v52 = vpop.f32.mrf.mxu0  ;;  %v4630_v53 = vpop.f32.mrf.mxu1 }
 0x2a8   : > { %v4632_v54 = vpop.f32.mrf.mxu0  ;;  %v4634_v55 = vpop.f32.mrf.mxu1 }
 0x2aa   : > { %v1275_v56 = vpop.f32.mrf.mxu2  ;;  %v1304_v57 = vpop.f32.mrf.mxu3 }
 0x2ab   : > { %v1276_v21 = vadd.f32 %v1275_v56, %v1229_v18  ;;  %v1305_v22 = vadd.f32 %v1304_v57, %v1229_v18 }
 0x2b0   : > { %v4636_v58 = vpop.f32.mrf.mxu0  ;;  %v4638_v59 = vpop.f32.mrf.mxu1 }
 0x2b1   : > { %5662 = vst [vmem:[#allocation14_spill] sm:$0xff] %v4636_v58 }
 0x2b2   : > { %5663 = vst [vmem:[#allocation15_spill] sm:$0xff] %v4638_v59  ;;  %v1278_v60 = vpop.f32.mrf.mxu2  ;;  %v1307_v61 = vpop.f32.mrf.mxu3 }
 0x2b3   : > { %v1279_v13 = vadd.f32 %v1278_v60, %v1234_v12  ;;  %v1308_v15 = vadd.f32 %v1307_v61, %v1234_v12  ;;  %v1317_v60 = vmax.f32 %v1305_v22, 0.0 }
 0x2b8   : > { %v4640_v62 = vpop.f32.mrf.mxu0  ;;  %v4642_v63 = vpop.f32.mrf.mxu1 }
 0x2b9   : > { %5664 = vst [vmem:[#allocation16_spill] sm:$0xff] %v4640_v62 }
 0x2ba   : > { %5665 = vst [vmem:[#allocation17_spill] sm:$0xff] %v4642_v63  ;;  %v1281_v0 = vpop.f32.mrf.mxu2  ;;  %v1310_v1 = vpop.f32.mrf.mxu3 }
 0x2bb   : > { %v1282_v8 = vadd.f32 %v1281_v0, %v1239_v5  ;;  %v1311_v9 = vadd.f32 %v1310_v1, %v1239_v5  ;;  %v1318_v0 = vmax.f32 %v1279_v13, 0.0  ;;  %v1319_v1 = vmax.f32 %v1308_v15, 0.0 }
 0x2bd   : > { %v1320_v23 = vmax.f32 %v1282_v8, 0.0  ;;  %v1321_v24 = vmax.f32 %v1311_v9, 0.0 }
 0x2c0   : > { %v4644_v3 = vpop.f32.mrf.mxu0  ;;  %v4646_v4 = vpop.f32.mrf.mxu1 }
 0x2c1   : > { %5666 = vst [vmem:[#allocation18_spill] sm:$0xff] %v4644_v3 }
 0x2c2   : > { %5667 = vst [vmem:[#allocation19_spill] sm:$0xff] %v4646_v4  ;;  %v1284_v6 = vpop.f32.mrf.mxu2  ;;  %v1313_v7 = vpop.f32.mrf.mxu3 }
 0x2c3   : > { %v1285_v10 = vadd.f32 %v1284_v6, %v1244_v2  ;;  %v1314_v11 = vadd.f32 %v1313_v7, %v1244_v2  ;;  %v1316_v2 = vmax.f32 %v1276_v21, 0.0  ;;  %v1559_v6 = vpop.permute.xlu1 %1558 }
 0x2c5   : > { %v1322_v16 = vmax.f32 %v1285_v10, 0.0  ;;  %v1323_v17 = vmax.f32 %v1314_v11, 0.0 }
 0x2c7   : > { %1416 = vmatpush.msrb.mxu2 %v1322_v16  ;;  %1457 = vmatpush.msrb.mxu3 %v1323_v17 }
 0x2c8   : > { %v4648_v46 = vpop.f32.mrf.mxu0  ;;  %v4650_v25 = vpop.f32.mrf.mxu1 }
 0x2c9   : > { %5668 = vst [vmem:[#allocation20_spill] sm:$0xff] %v4648_v46  ;;  %1417 = vmatpush.msrb.mxu2 %v1320_v23  ;;  %1458 = vmatpush.msrb.mxu3 %v1321_v24 }
 0x2ca   : > { %5669 = vst [vmem:[#allocation21_spill] sm:$0xff] %v4650_v25 }
 0x2cb   : > { %1418 = vmatpush.msrb.mxu2 %v1318_v0  ;;  %1459 = vmatpush.msrb.mxu3 %v1319_v1 }
 0x2cd   : > { %1419 = vmatpush.msrb.mxu2 %v1316_v2  ;;  %1460 = vmatpush.msrb.mxu3 %v1317_v60 }
 0x2ce   : > { %3779 = vmatmul.msk.f32.vlgmr.msrb.gmra.mxu2 %vm587_vm3, %v4427_v19  ;;  %3787 = vmatmul.msk.f32.vlgmr.msrb.gmra.mxu3 %vm587_vm3, %v4427_v19  ;;  %v1564_v19 = vpop.permute.xlu0 %1563 }
 0x2d0   : > { %v4656_v56 = vpop.f32.mrf.mxu0  ;;  %v4658_v57 = vpop.f32.mrf.mxu1 }
 0x2d1   : > { %5670 = vst [vmem:[#allocation22_spill] sm:$0xff] %v4656_v56 }
 0x2d2   : > { %5671 = vst [vmem:[#allocation23_spill] sm:$0xff] %v4658_v57 }
 0x2d6   : > { %3780 = vmatmul.msk.f32.gmra.mxu2 %vm587_vm3, %v4436_v28  ;;  %3788 = vmatmul.msk.f32.gmra.mxu3 %vm587_vm3, %v4436_v28 }
 0x2d8   : > { %v1597_v61 = vpop.f32.mrf.mxu0  ;;  %v1620_v5 = vpop.f32.mrf.mxu1 }
 0x2d9   : > { %v1598_v9 = vadd.f32 %v1597_v61, %v1559_v6  ;;  %v1621_v10 = vadd.f32 %v1620_v5, %v1559_v6 }
 0x2db   : > { %v1626_v16 = vmax.f32 %v1598_v9, 0.0  ;;  %v1627_v28 = vmax.f32 %v1621_v10, 0.0 }
 0x2de   : > { %3781 = vmatmul.msk.f32.gmra.mxu2 %vm587_vm3, %v4450_v35  ;;  %3789 = vmatmul.msk.f32.gmra.mxu3 %vm587_vm3, %v4450_v35  ;;  %v1980_v35 = vld.sshfl [vmem:[#allocation1] sm:$0xff pattern:$0x75316420] }
 0x2e0   : > { %v1600_v7 = vpop.f32.mrf.mxu0  ;;  %v1623_v8 = vpop.f32.mrf.mxu1 }
 0x2e1   : > { %v1601_v11 = vadd.f32 %v1600_v7, %v1564_v19  ;;  %v1624_v12 = vadd.f32 %v1623_v8, %v1564_v19 }
 0x2e3   : > { %v1628_v13 = vmax.f32 %v1601_v11, 0.0  ;;  %v1629_v15 = vmax.f32 %v1624_v12, 0.0 }
 0x2e5   : > { %1684 = vmatpush.msra.mxu2 %v1628_v13  ;;  %1713 = vmatpush.msra.mxu3 %v1629_v15 }
 0x2e6   : > { %3782 = vmatmul.msk.f32.gmra.mxu2 %vm587_vm3, %v4465_v36  ;;  %3790 = vmatmul.msk.f32.gmra.mxu3 %vm587_vm3, %v4465_v36  ;;  %v1981_v36 = vld.sshfl [vmem:[#allocation1 + $0x8] sm:$0xff pattern:$0x75316420] }
 0x2e7   : > { %1685 = vmatpush.msra.mxu2 %v1626_v16  ;;  %1714 = vmatpush.msra.mxu3 %v1627_v28  ;;  %v1656_v16 = vpop.permute.xlu2 %1655  ;;  %v1651_v28 = vpop.permute.xlu0 %1650 }
 0x2e9   : > { %3827 = vmatpush.msk.msrb.mxu2 %vm369_vm0, %v1980_v35  ;;  %3830 = vmatpush.msk.msrb.mxu3 %vm369_vm0, %v1981_v36 }
 0x2ee   : > { %3783 = vmatmul.msk.f32.gmra.mxu2 %vm587_vm3, %v4478_v37  ;;  %3791 = vmatmul.msk.f32.gmra.mxu3 %vm587_vm3, %v4478_v37  ;;  %v4693_v37 = vld [vmem:[%s5623_s3] sm:$0xff] }
 0x2ef   : > { %v1641_v46 = vpop.permute.xlu2 %1640 }
 0x2f6   : > { %3784 = vmatmul.msk.f32.gmra.mxu2 %vm587_vm3, %v4491_v38  ;;  %3792 = vmatmul.msk.f32.gmra.mxu3 %vm587_vm3, %v4491_v38  ;;  %v4702_v38 = vld [vmem:[%s5623_s3 + $0x8] sm:$0xff] }
 0x2fe   : > { %3785 = vmatmul.msk.f32.gmra.mxu2 %vm587_vm3, %v4504_v39  ;;  %3793 = vmatmul.msk.f32.gmra.mxu3 %vm587_vm3, %v4504_v39  ;;  %v4711_v39 = vld [vmem:[%s5623_s3 + $0x10] sm:$0xff] }
 0x306   : > { %3786 = vmatmul.msk.f32.gmra.mxu2 %vm587_vm3, %v4517_v14  ;;  %3794 = vmatmul.msk.f32.gmra.mxu3 %vm587_vm3, %v4517_v14  ;;  %v4720_v14 = vld [vmem:[%s5623_s3 + $0x18] sm:$0xff] }
 0x30e   : > { %3802 = vmatmul.msk.f32.vlgmr.msra.gmra.mxu2 %vm452_vm2, %v4693_v37  ;;  %3806 = vmatmul.msk.f32.vlgmr.msra.gmra.mxu3 %vm452_vm2, %v4693_v37 }
 0x316   : > { %3803 = vmatmul.msk.f32.gmra.mxu2 %vm452_vm2, %v4702_v38  ;;  %3807 = vmatmul.msk.f32.gmra.mxu3 %vm452_vm2, %v4702_v38 }
 0x31e   : > { %3804 = vmatmul.msk.f32.gmra.mxu2 %vm452_vm2, %v4711_v39  ;;  %3808 = vmatmul.msk.f32.gmra.mxu3 %vm452_vm2, %v4711_v39 }
 0x326   : > { %3805 = vmatmul.msk.f32.gmra.mxu2 %vm452_vm2, %v4720_v14  ;;  %3809 = vmatmul.msk.f32.gmra.mxu3 %vm452_vm2, %v4720_v14 }
 0x32e   : > { %3828 = vmatmul.msk.f32.vlgmr.msrb.gmra.mxu2 %vm362_vm1, %v4585_v27  ;;  %3831 = vmatmul.msk.f32.vlgmr.msrb.gmra.mxu3 %vm362_vm1, %v4585_v27 }
 0x336   : > { %3829 = vmatmul.msk.f32.gmra.mxu2 %vm362_vm1, %v4598_v31  ;;  %3832 = vmatmul.msk.f32.gmra.mxu3 %vm362_vm1, %v4598_v31 }
 0x351   : > { %v4734_v17 = vpop.f32.mrf.mxu2  ;;  %v4736_v18 = vpop.f32.mrf.mxu3 }
 0x359   : > { %v4738_v21 = vpop.f32.mrf.mxu2  ;;  %v4740_v22 = vpop.f32.mrf.mxu3 }
 0x35a   : > { %5672 = vst [vmem:[#allocation24_spill] sm:$0xff] %v4738_v21 }
 0x35b   : > { %5673 = vst [vmem:[#allocation25_spill] sm:$0xff] %v4740_v22 }
 0x361   : > { %v4742_v23 = vpop.f32.mrf.mxu2  ;;  %v4744_v24 = vpop.f32.mrf.mxu3 }
 0x362   : > { %5674 = vst [vmem:[#allocation26_spill] sm:$0xff] %v4742_v23 }
 0x363   : > { %5675 = vst [vmem:[#allocation27_spill] sm:$0xff] %v4744_v24 }
 0x369   : > { %v4746_v0 = vpop.f32.mrf.mxu2  ;;  %v4748_v1 = vpop.f32.mrf.mxu3 }
 0x36a   : > { %5676 = vst [vmem:[#allocation28_spill] sm:$0xff] %v4746_v0 }
 0x36b   : > { %5677 = vst [vmem:[#allocation29_spill] sm:$0xff] %v4748_v1 }
 0x371   : > { %v4750_v2 = vpop.f32.mrf.mxu2  ;;  %v4752_v60 = vpop.f32.mrf.mxu3 }
 0x372   : > { %5678 = vst [vmem:[#allocation30_spill] sm:$0xff] %v4750_v2 }
 0x373   : > { %5679 = vst [vmem:[#allocation31_spill] sm:$0xff] %v4752_v60 }
 0x379   : > { %v4754_v61 = vpop.f32.mrf.mxu2  ;;  %v4756_v5 = vpop.f32.mrf.mxu3 }
 0x37a   : > { %5680 = vst [vmem:[#allocation32_spill] sm:$0xff] %v4754_v61 }
 0x37b   : > { %5681 = vst [vmem:[#allocation33_spill] sm:$0xff] %v4756_v5  ;;  %v3857_v5 = vld [vmem:[%s4178_s29 + $0x28] sm:$0xff] }
 0x37c   : > { %2391 = vst [vmem:[#allocation1] ss:$2 sm:$0xff] %v3857_v5 }
 0x381   : > { %v4758_v6 = vpop.f32.mrf.mxu2  ;;  %v4760_v19 = vpop.f32.mrf.mxu3 }
 0x382   : > { %5682 = vst [vmem:[#allocation34_spill] sm:$0xff] %v4758_v6 }
 0x383   : > { %5683 = vst [vmem:[#allocation35_spill] sm:$0xff] %v4760_v19  ;;  %v1646_v19 = vpop.permute.xlu1 %1645 }
 0x389   : > { %v4762_v7 = vpop.f32.mrf.mxu2  ;;  %v4764_v8 = vpop.f32.mrf.mxu3 }
 0x38a   : > { %5684 = vst [vmem:[#allocation36_spill] sm:$0xff] %v4762_v7 }
 0x38b   : > { %5685 = vst [vmem:[#allocation37_spill] sm:$0xff] %v4764_v8 }
 0x391   : > { %v1687_v9 = vpop.f32.mrf.mxu2  ;;  %v1716_v10 = vpop.f32.mrf.mxu3 }
 0x392   : > { %v1688_v61 = vadd.f32 %v1687_v9, %v1641_v46  ;;  %v1717_v4 = vadd.f32 %v1716_v10, %v1641_v46 }
 0x399   : > { %v1690_v11 = vpop.f32.mrf.mxu2  ;;  %v1719_v12 = vpop.f32.mrf.mxu3 }
 0x39a   : > { %v1691_v6 = vadd.f32 %v1690_v11, %v1646_v19  ;;  %v1720_v7 = vadd.f32 %v1719_v12, %v1646_v19  ;;  %v1728_v11 = vmax.f32 %v1688_v61, 0.0  ;;  %v1729_v19 = vmax.f32 %v1717_v4, 0.0  ;;  %v1976_v4 = vpop.permute.xlu0 %1975  ;;  %v4795_v12 = vld [vmem:[%s5625_s5 + $0x10] sm:$0xff] }
 0x39c   : > { %v1730_v43 = vmax.f32 %v1691_v6, 0.0  ;;  %v4782_v6 = vld [vmem:[%s5625_s5 + $0x8] sm:$0xff] }
 0x3a1   : > { %v1693_v13 = vpop.f32.mrf.mxu2  ;;  %v1722_v15 = vpop.f32.mrf.mxu3 }
 0x3a2   : > { %v1694_v57 = vadd.f32 %v1693_v13, %v1651_v28  ;;  %v1723_v56 = vadd.f32 %v1722_v15, %v1651_v28  ;;  %v1731_v13 = vmax.f32 %v1720_v7, 0.0  ;;  %v4808_v28 = vld [vmem:[%s5625_s5 + $0x18] sm:$0xff] }
 0x3a4   : > { %v1732_v3 = vmax.f32 %v1694_v57, 0.0  ;;  %v1733_v44 = vmax.f32 %v1723_v56, 0.0 }
 0x3a9   : > { %v1696_v35 = vpop.f32.mrf.mxu2  ;;  %v1725_v36 = vpop.f32.mrf.mxu3 }
 0x3aa   : > { %v1697_v50 = vadd.f32 %v1696_v35, %v1656_v16  ;;  %v1726_v45 = vadd.f32 %v1725_v36, %v1656_v16  ;;  %v4821_v35 = vld [vmem:[%s5625_s5 + $0x20] sm:$0xff]  ;;  %v4834_v36 = vld [vmem:[%s5625_s5 + $0x28] sm:$0xff] }
 0x3ac   : > { %v1734_v25 = vmax.f32 %v1697_v50, 0.0  ;;  %v1735_v8 = vmax.f32 %v1726_v45, 0.0  ;;  %v4770_v45 = vld [vmem:[%s5625_s5] sm:$0xff]  ;;  %v3888_v50 = vld [vmem:[%s4178_s29 + $0x30] sm:$0xff] }
 0x3ae   : > { %1828 = vmatpush.msra.mxu0 %v1734_v25  ;;  %1869 = vmatpush.msra.mxu1 %v1735_v8 }
 0x3b0   : > { %1829 = vmatpush.msra.mxu0 %v1732_v3  ;;  %1870 = vmatpush.msra.mxu1 %v1733_v44  ;;  %v2392_v44 = vld.sshfl [vmem:[#allocation1] sm:$0xff pattern:$0x75316420]  ;;  %v2393_v3 = vld.sshfl [vmem:[#allocation1 + $0x8] sm:$0xff pattern:$0x75316420] }
 0x3b1   : > { %v2009_v15 = vpop.f32.mrf.mxu2  ;;  %v2032_v16 = vpop.f32.mrf.mxu3  ;;  %2803 = vst [vmem:[#allocation1] ss:$2 sm:$0xff] %v3888_v50 }
 0x3b2   : > { %1830 = vmatpush.msra.mxu0 %v1730_v43  ;;  %1871 = vmatpush.msra.mxu1 %v1731_v13  ;;  %v1971_v43 = vpop.permute.xlu1 %1970  ;;  %v4843_v13 = vld [vmem:[%s5625_s5 + $0x30] sm:$0xff] }
 0x3b3   : > { %v2010_v56 = vadd.f32 %v2009_v15, %v1971_v43  ;;  %v2033_v57 = vadd.f32 %v2032_v16, %v1971_v43  ;;  %v4852_v15 = vld [vmem:[%s5625_s5 + $0x38] sm:$0xff] }
 0x3b4   : > { %1831 = vmatpush.msra.mxu0 %v1728_v11  ;;  %1872 = vmatpush.msra.mxu1 %v1729_v19 }
 0x3b5   : > { %3810 = vmatmul.msk.f32.vlgmr.msra.gmra.mxu0 %vm587_vm3, %v4770_v45  ;;  %3818 = vmatmul.msk.f32.vlgmr.msra.gmra.mxu1 %vm587_vm3, %v4770_v45  ;;  %v2038_v9 = vmax.f32 %v2010_v56, 0.0  ;;  %v2039_v10 = vmax.f32 %v2033_v57, 0.0  ;;  %v2388_v56 = vpop.permute.xlu2 %2387 }
 0x3b6   : > { %3858 = vmatpush.msk.msrb.mxu0 %vm369_vm0, %v2392_v44  ;;  %3861 = vmatpush.msk.msrb.mxu1 %vm369_vm0, %v2393_v3 }
 0x3b9   : > { %v2012_v46 = vpop.f32.mrf.mxu2  ;;  %v2035_v25 = vpop.f32.mrf.mxu3 }
 0x3ba   : > { %v2013_v61 = vadd.f32 %v2012_v46, %v1976_v4  ;;  %v2036_v5 = vadd.f32 %v2035_v25, %v1976_v4 }
 0x3bc   : > { %v2040_v7 = vmax.f32 %v2013_v61, 0.0  ;;  %v2041_v8 = vmax.f32 %v2036_v5, 0.0  ;;  %v2383_v5 = vpop.permute.xlu0 %2382 }
 0x3bd   : > { %3811 = vmatmul.msk.f32.gmra.mxu0 %vm587_vm3, %v4782_v6  ;;  %3819 = vmatmul.msk.f32.gmra.mxu1 %vm587_vm3, %v4782_v6  ;;  %v2063_v2 = vpop.permute.xlu2 %2062 }
 0x3be   : > { %2096 = vmatpush.msra.mxu2 %v2040_v7  ;;  %2125 = vmatpush.msra.mxu3 %v2041_v8 }
 0x3c0   : > { %2097 = vmatpush.msra.mxu2 %v2038_v9  ;;  %2126 = vmatpush.msra.mxu3 %v2039_v10  ;;  %v2068_v9 = vpop.permute.xlu1 %2067 }
 0x3c1   : > { %3833 = vmatmul.msk.f32.vlgmr.msra.gmra.mxu2 %vm452_vm2, %v4693_v37  ;;  %3837 = vmatmul.msk.f32.vlgmr.msra.gmra.mxu3 %vm452_vm2, %v4693_v37 }
 0x3c4   : > { %v2058_v63 = vpop.permute.xlu0 %2057 }
 0x3c5   : > { %3812 = vmatmul.msk.f32.gmra.mxu0 %vm587_vm3, %v4795_v12  ;;  %3820 = vmatmul.msk.f32.gmra.mxu1 %vm587_vm3, %v4795_v12 }
 0x3c8   : > { %v2053_v58 = vpop.permute.xlu1 %2052 }
 0x3c9   : > { %3834 = vmatmul.msk.f32.gmra.mxu2 %vm452_vm2, %v4702_v38  ;;  %3838 = vmatmul.msk.f32.gmra.mxu3 %vm452_vm2, %v4702_v38 }
 0x3cd   : > { %3813 = vmatmul.msk.f32.gmra.mxu0 %vm587_vm3, %v4808_v28  ;;  %3821 = vmatmul.msk.f32.gmra.mxu1 %vm587_vm3, %v4808_v28 }
 0x3d1   : > { %3835 = vmatmul.msk.f32.gmra.mxu2 %vm452_vm2, %v4711_v39  ;;  %3839 = vmatmul.msk.f32.gmra.mxu3 %vm452_vm2, %v4711_v39 }
 0x3d5   : > { %3814 = vmatmul.msk.f32.gmra.mxu0 %vm587_vm3, %v4821_v35  ;;  %3822 = vmatmul.msk.f32.gmra.mxu1 %vm587_vm3, %v4821_v35 }
 0x3d9   : > { %3836 = vmatmul.msk.f32.gmra.mxu2 %vm452_vm2, %v4720_v14  ;;  %3840 = vmatmul.msk.f32.gmra.mxu3 %vm452_vm2, %v4720_v14 }
 0x3dd   : > { %3815 = vmatmul.msk.f32.gmra.mxu0 %vm587_vm3, %v4834_v36  ;;  %3823 = vmatmul.msk.f32.gmra.mxu1 %vm587_vm3, %v4834_v36 }
 0x3e5   : > { %3816 = vmatmul.msk.f32.gmra.mxu0 %vm587_vm3, %v4843_v13  ;;  %3824 = vmatmul.msk.f32.gmra.mxu1 %vm587_vm3, %v4843_v13 }
 0x3ed   : > { %3817 = vmatmul.msk.f32.gmra.mxu0 %vm587_vm3, %v4852_v15  ;;  %3825 = vmatmul.msk.f32.gmra.mxu1 %vm587_vm3, %v4852_v15 }
 0x3f5   : > { %3859 = vmatmul.msk.f32.vlgmr.msrb.gmra.mxu0 %vm362_vm1, %v4585_v27  ;;  %3862 = vmatmul.msk.f32.vlgmr.msrb.gmra.mxu1 %vm362_vm1, %v4585_v27 }
 0x3fd   : > { %3860 = vmatmul.msk.f32.gmra.mxu0 %vm362_vm1, %v4598_v31  ;;  %3863 = vmatmul.msk.f32.gmra.mxu1 %vm362_vm1, %v4598_v31 }
 0x432   : > { %v4866_v16 = vpop.f32.mrf.mxu0  ;;  %v4868_v11 = vpop.f32.mrf.mxu1 }
 0x43a   : > { %v4870_v19 = vpop.f32.mrf.mxu0  ;;  %v4872_v50 = vpop.f32.mrf.mxu1 }
 0x43b   : > { %5686 = vst [vmem:[#allocation38_spill] sm:$0xff] %v4870_v19 }
 0x43c   : > { %5687 = vst [vmem:[#allocation39_spill] sm:$0xff] %v4872_v50 }
 0x442   : > { %v4874_v44 = vpop.f32.mrf.mxu0  ;;  %v4876_v3 = vpop.f32.mrf.mxu1 }
 0x443   : > { %5688 = vst [vmem:[#allocation40_spill] sm:$0xff] %v4874_v44 }
 0x444   : > { %5689 = vst [vmem:[#allocation41_spill] sm:$0xff] %v4876_v3  ;;  %v2099_v43 = vpop.f32.mrf.mxu2  ;;  %v2128_v27 = vpop.f32.mrf.mxu3 }
 0x445   : > { %v2100_v3 = vadd.f32 %v2099_v43, %v2053_v58  ;;  %v2129_v44 = vadd.f32 %v2128_v27, %v2053_v58  ;;  %v3919_v27 = vld [vmem:[%s4178_s29 + $0x38] sm:$0xff] }
 0x44a   : > { %v4878_v4 = vpop.f32.mrf.mxu0  ;;  %v4880_v46 = vpop.f32.mrf.mxu1 }
 0x44b   : > { %5690 = vst [vmem:[#allocation42_spill] sm:$0xff] %v4878_v4 }
 0x44c   : > { %5691 = vst [vmem:[#allocation43_spill] sm:$0xff] %v4880_v46  ;;  %v2102_v25 = vpop.f32.mrf.mxu2  ;;  %v2131_v31 = vpop.f32.mrf.mxu3 }
 0x44d   : > { %v2103_v62 = vadd.f32 %v2102_v25, %v2058_v63 }
 0x452   : > { %v4882_v57 = vpop.f32.mrf.mxu0  ;;  %v4884_v61 = vpop.f32.mrf.mxu1 }
 0x453   : > { %5692 = vst [vmem:[#allocation44_spill] sm:$0xff] %v4882_v57  ;;  %v2132_v57 = vadd.f32 %v2131_v31, %v2058_v63  ;;  %v2804_v31 = vld.sshfl [vmem:[#allocation1] sm:$0xff pattern:$0x75316420] }
 0x454   : > { %5693 = vst [vmem:[#allocation45_spill] sm:$0xff] %v4884_v61  ;;  %v2105_v7 = vpop.f32.mrf.mxu2  ;;  %v2134_v8 = vpop.f32.mrf.mxu3 }
 0x455   : > { %v2106_v41 = vadd.f32 %v2105_v7, %v2063_v2  ;;  %v2135_v46 = vadd.f32 %v2134_v8, %v2063_v2  ;;  %v2142_v7 = vmax.f32 %v2103_v62, 0.0  ;;  %v2143_v2 = vmax.f32 %v2132_v57, 0.0  ;;  %v2805_v57 = vld.sshfl [vmem:[#allocation1 + $0x8] sm:$0xff pattern:$0x75316420] }
 0x456   : > { %3215 = vst [vmem:[#allocation1] ss:$2 sm:$0xff] %v3919_v27 }
 0x457   : > { %v2144_v24 = vmax.f32 %v2106_v41, 0.0  ;;  %v2145_v23 = vmax.f32 %v2135_v46, 0.0 }
 0x45a   : > { %v4886_v10 = vpop.f32.mrf.mxu0  ;;  %v4888_v60 = vpop.f32.mrf.mxu1 }
 0x45b   : > { %5694 = vst [vmem:[#allocation46_spill] sm:$0xff] %v4886_v10 }
 0x45c   : > { %5695 = vst [vmem:[#allocation47_spill] sm:$0xff] %v4888_v60  ;;  %v2108_v42 = vpop.f32.mrf.mxu2  ;;  %v2137_v4 = vpop.f32.mrf.mxu3 }
 0x45d   : > { %v2109_v1 = vadd.f32 %v2108_v42, %v2068_v9  ;;  %v2138_v0 = vadd.f32 %v2137_v4, %v2068_v9  ;;  %v2140_v42 = vmax.f32 %v2100_v3, 0.0  ;;  %v2141_v4 = vmax.f32 %v2129_v44, 0.0 }
 0x45f   : > { %v2146_v59 = vmax.f32 %v2109_v1, 0.0  ;;  %v2147_v61 = vmax.f32 %v2138_v0, 0.0 }
 0x461   : > { %2240 = vmatpush.msrb.mxu2 %v2146_v59  ;;  %2281 = vmatpush.msrb.mxu3 %v2147_v61 }
 0x462   : > { %v4890_v60 = vpop.f32.mrf.mxu0  ;;  %v4892_v10 = vpop.f32.mrf.mxu1 }
 0x463   : > { %5696 = vst [vmem:[#allocation48_spill] sm:$0xff] %v4890_v60  ;;  %2241 = vmatpush.msrb.mxu2 %v2144_v24  ;;  %2282 = vmatpush.msrb.mxu3 %v2145_v23 }
 0x464   : > { %5697 = vst [vmem:[#allocation49_spill] sm:$0xff] %v4892_v10 }
 0x465   : > { %2242 = vmatpush.msrb.mxu2 %v2142_v7  ;;  %2283 = vmatpush.msrb.mxu3 %v2143_v2 }
 0x467   : > { %2243 = vmatpush.msrb.mxu2 %v2140_v42  ;;  %2284 = vmatpush.msrb.mxu3 %v2141_v4 }
 0x468   : > { %3841 = vmatmul.msk.f32.vlgmr.msrb.gmra.mxu2 %vm587_vm3, %v4770_v45  ;;  %3849 = vmatmul.msk.f32.vlgmr.msrb.gmra.mxu3 %vm587_vm3, %v4770_v45 }
 0x469   : > { %3889 = vmatpush.msk.msra.mxu2 %vm369_vm0, %v2804_v31  ;;  %3892 = vmatpush.msk.msra.mxu3 %vm369_vm0, %v2805_v57 }
 0x46a   : > { %v4898_v41 = vpop.f32.mrf.mxu0  ;;  %v4900_v58 = vpop.f32.mrf.mxu1 }
 0x46b   : > { %5698 = vst [vmem:[#allocation50_spill] sm:$0xff] %v4898_v41 }
 0x46c   : > { %5699 = vst [vmem:[#allocation51_spill] sm:$0xff] %v4900_v58 }
 0x470   : > { %3842 = vmatmul.msk.f32.gmra.mxu2 %vm587_vm3, %v4782_v6  ;;  %3850 = vmatmul.msk.f32.gmra.mxu3 %vm587_vm3, %v4782_v6 }
 0x472   : > { %v2421_v59 = vpop.f32.mrf.mxu0  ;;  %v2444_v62 = vpop.f32.mrf.mxu1 }
 0x473   : > { %v2422_v24 = vadd.f32 %v2421_v59, %v2383_v5  ;;  %v2445_v0 = vadd.f32 %v2444_v62, %v2383_v5  ;;  %v2475_v5 = vpop.permute.xlu0 %2474 }
 0x475   : > { %v2450_v46 = vmax.f32 %v2422_v24, 0.0  ;;  %v2451_v25 = vmax.f32 %v2445_v0, 0.0 }
 0x478   : > { %3843 = vmatmul.msk.f32.gmra.mxu2 %vm587_vm3, %v4795_v12  ;;  %3851 = vmatmul.msk.f32.gmra.mxu3 %vm587_vm3, %v4795_v12 }
 0x47a   : > { %v2424_v63 = vpop.f32.mrf.mxu0  ;;  %v2447_v23 = vpop.f32.mrf.mxu1 }
 0x47b   : > { %v2425_v1 = vadd.f32 %v2424_v63, %v2388_v56  ;;  %v2448_v44 = vadd.f32 %v2447_v23, %v2388_v56  ;;  %v4977_v42 = vpop.permute.xlu0 %549 }
 0x47d   : > { %v2452_v3 = vmax.f32 %v2425_v1, 0.0  ;;  %v2453_v43 = vmax.f32 %v2448_v44, 0.0 }
 0x47f   : > { %2508 = vmatpush.msra.mxu0 %v2452_v3  ;;  %2537 = vmatpush.msra.mxu1 %v2453_v43 }
 0x480   : > { %3844 = vmatmul.msk.f32.gmra.mxu2 %vm587_vm3, %v4808_v28  ;;  %3852 = vmatmul.msk.f32.gmra.mxu3 %vm587_vm3, %v4808_v28 }
 0x481   : > { %2509 = vmatpush.msra.mxu0 %v2450_v46  ;;  %2538 = vmatpush.msra.mxu1 %v2451_v25 }
 0x482   : > { %3864 = vmatmul.msk.f32.vlgmr.msra.gmra.mxu0 %vm452_vm2, %v4693_v37  ;;  %3868 = vmatmul.msk.f32.vlgmr.msra.gmra.mxu1 %vm452_vm2, %v4693_v37  ;;  %v4952_v37 = vld [vmem:[%s5621_s1] sm:$0xff] }
 0x483   : > { %v4991_v44 = vpop.permute.xlu0 %564 }
 0x488   : > { %3845 = vmatmul.msk.f32.gmra.mxu2 %vm587_vm3, %v4821_v35  ;;  %3853 = vmatmul.msk.f32.gmra.mxu3 %vm587_vm3, %v4821_v35 }
 0x48a   : > { %3865 = vmatmul.msk.f32.gmra.mxu0 %vm452_vm2, %v4702_v38  ;;  %3869 = vmatmul.msk.f32.gmra.mxu1 %vm452_vm2, %v4702_v38  ;;  %v4961_v38 = vld [vmem:[%s5621_s1 + $0x8] sm:$0xff] }
 0x48b   : > { %v5001_v57 = vpop.permute.xlu0 %579 }
 0x48c   : > { %5710 = vst [vmem:[#allocation62_spill] sm:$0xff] %v5001_v57 }
 0x490   : > { %3846 = vmatmul.msk.f32.gmra.mxu2 %vm587_vm3, %v4834_v36  ;;  %3854 = vmatmul.msk.f32.gmra.mxu3 %vm587_vm3, %v4834_v36 }
 0x492   : > { %3866 = vmatmul.msk.f32.gmra.mxu0 %vm452_vm2, %v4711_v39  ;;  %3870 = vmatmul.msk.f32.gmra.mxu1 %vm452_vm2, %v4711_v39  ;;  %v2480_v39 = vpop.permute.xlu2 %2479 }
 0x498   : > { %3847 = vmatmul.msk.f32.gmra.mxu2 %vm587_vm3, %v4843_v13  ;;  %3855 = vmatmul.msk.f32.gmra.mxu3 %vm587_vm3, %v4843_v13 }
 0x49a   : > { %3867 = vmatmul.msk.f32.gmra.mxu0 %vm452_vm2, %v4720_v14  ;;  %3871 = vmatmul.msk.f32.gmra.mxu1 %vm452_vm2, %v4720_v14  ;;  %v2470_v14 = vpop.permute.xlu1 %2469  ;;  %v2465_v8 = vpop.permute.xlu2 %2464 }
 0x4a0   : > { %3848 = vmatmul.msk.f32.gmra.mxu2 %vm587_vm3, %v4852_v15  ;;  %3856 = vmatmul.msk.f32.gmra.mxu3 %vm587_vm3, %v4852_v15 }
 0x4a2   : > { %v4975_v2 = vpop.permute.xlu1 %554  ;;  %v4983_v62 = vpop.permute.xlu2 %559 }
 0x4a8   : > { %3890 = vmatmul.msk.f32.vlgmr.msra.gmra.mxu2 %vm362_vm1, %v4952_v37  ;;  %3893 = vmatmul.msk.f32.vlgmr.msra.gmra.mxu3 %vm362_vm1, %v4952_v37 }
 0x4aa   : > { %v4985_v63 = vpop.permute.xlu1 %569  ;;  %v4993_v3 = vpop.permute.xlu2 %574 }
 0x4ab   : > { %5704 = vst [vmem:[#allocation56_spill] sm:$0xff] %v4985_v63 }
 0x4ac   : > { %5707 = vst [vmem:[#allocation59_spill] sm:$0xff] %v4993_v3 }
 0x4b0   : > { %3891 = vmatmul.msk.f32.gmra.mxu2 %vm362_vm1, %v4961_v38  ;;  %3894 = vmatmul.msk.f32.gmra.mxu3 %vm362_vm1, %v4961_v38 }
 0x4b2   : > { %v4995_v46 = vpop.permute.xlu1 %2799  ;;  %v2795_v10 = vpop.permute.xlu2 %2794 }
 0x4ba   : > { %v5003_v60 = vpop.permute.xlu1 %3211 }
 0x4bb   : > { %5711 = vst [vmem:[#allocation63_spill] sm:$0xff] %v5003_v60 }
 0x4eb   : > { %v4967_v56 = vpop.f32.mrf.mxu2  ;;  %v4969_v61 = vpop.f32.mrf.mxu3 }
 0x4f3   : > { %v4971_v9 = vpop.f32.mrf.mxu2  ;;  %v4973_v7 = vpop.f32.mrf.mxu3 }
 0x4f4   : > { %5700 = vst [vmem:[#allocation52_spill] sm:$0xff] %v4971_v9 }
 0x4f5   : > { %5701 = vst [vmem:[#allocation53_spill] sm:$0xff] %v4973_v7 }
 0x4fb   : > { %v4979_v4 = vpop.f32.mrf.mxu2  ;;  %v4981_v59 = vpop.f32.mrf.mxu3 }
 0x4fc   : > { %5702 = vst [vmem:[#allocation54_spill] sm:$0xff] %v4979_v4  ;;  %v5009_v4 = vpop.permute.xlu0 %584 }
 0x4fd   : > { %5703 = vst [vmem:[#allocation55_spill] sm:$0xff] %v4981_v59 }
 0x4ff   : > { %v2511_v23 = vpop.f32.mrf.mxu0  ;;  %v2540_v24 = vpop.f32.mrf.mxu1 }
 0x503   : > { %v4987_v0 = vpop.f32.mrf.mxu2  ;;  %v4989_v1 = vpop.f32.mrf.mxu3 }
 0x504   : > { %5705 = vst [vmem:[#allocation57_spill] sm:$0xff] %v4987_v0 }
 0x505   : > { %5706 = vst [vmem:[#allocation58_spill] sm:$0xff] %v4989_v1 }
 0x507   : > { %v2514_v43 = vpop.f32.mrf.mxu0  ;;  %v2543_v27 = vpop.f32.mrf.mxu1 }
 0x508   : > { %v2515_v57 = vadd.f32 %v2514_v43, %v2470_v14  ;;  %v2544_v19 = vadd.f32 %v2543_v27, %v2470_v14 }
 0x50b   : > { %v4997_v25 = vpop.f32.mrf.mxu2  ;;  %v4999_v31 = vpop.f32.mrf.mxu3 }
 0x50c   : > { %5708 = vst [vmem:[#allocation60_spill] sm:$0xff] %v4997_v25 }
 0x50d   : > { %5709 = vst [vmem:[#allocation61_spill] sm:$0xff] %v4999_v31  ;;  %v5011_v31 = vpop.permute.xlu2 %3206 }
 0x50e   : > { %5714 = vst [vmem:[#allocation66_spill] sm:$0xff] %v5011_v31 }
 0x50f   : > { %v2517_v58 = vpop.f32.mrf.mxu0  ;;  %v2546_v41 = vpop.f32.mrf.mxu1 }
 0x510   : > { %v2518_v7 = vadd.f32 %v2517_v58, %v2475_v5  ;;  %v2547_v9 = vadd.f32 %v2546_v41, %v2475_v5  ;;  %v5017_v58 = vpop.permute.xlu1 %935  ;;  %v2554_v41 = vmax.f32 %v2515_v57, 0.0 }
 0x512   : > { %v2556_v22 = vmax.f32 %v2518_v7, 0.0  ;;  %v2557_v21 = vmax.f32 %v2547_v9, 0.0 }
 0x513   : > { %v5005_v1 = vpop.f32.mrf.mxu2  ;;  %v5007_v0 = vpop.f32.mrf.mxu3 }
 0x514   : > { %5712 = vst [vmem:[#allocation64_spill] sm:$0xff] %v5005_v1  ;;  %v2512_v1 = vadd.f32 %v2511_v23, %v2465_v8 }
 0x515   : > { %5713 = vst [vmem:[#allocation65_spill] sm:$0xff] %v5007_v0  ;;  %v2541_v0 = vadd.f32 %v2540_v24, %v2465_v8 }
 0x516   : > { %v2552_v5 = vmax.f32 %v2512_v1, 0.0 }
 0x517   : > { %v2520_v3 = vpop.f32.mrf.mxu0  ;;  %v2549_v59 = vpop.f32.mrf.mxu1  ;;  %v2553_v14 = vmax.f32 %v2541_v0, 0.0 }
 0x518   : > { %v2521_v25 = vadd.f32 %v2520_v3, %v2480_v39  ;;  %v2550_v50 = vadd.f32 %v2549_v59, %v2480_v39  ;;  %v2555_v39 = vmax.f32 %v2544_v19, 0.0  ;;  %v3217_v59 = vld.sshfl [vmem:[#allocation1 + $0x8] sm:$0xff pattern:$0x75316420]  ;;  %v5019_v3 = vpop.permute.xlu0 %930 }
 0x51a   : > { %v2558_v40 = vmax.f32 %v2521_v25, 0.0  ;;  %v2559_v34 = vmax.f32 %v2550_v50, 0.0  ;;  %v3216_v50 = vld.sshfl [vmem:[#allocation1] sm:$0xff pattern:$0x75316420] }
 0x51b   : > { %v5013_v63 = vpop.f32.mrf.mxu2  ;;  %v5015_v60 = vpop.f32.mrf.mxu3 }
 0x51c   : > { %2652 = vmatpush.msrb.mxu0 %v2558_v40  ;;  %2693 = vmatpush.msrb.mxu1 %v2559_v34  ;;  %v5031_v34 = vpop.permute.xlu2 %940 }
 0x51e   : > { %2653 = vmatpush.msrb.mxu0 %v2556_v22  ;;  %2694 = vmatpush.msrb.mxu1 %v2557_v21  ;;  %v5033_v21 = vpop.permute.xlu1 %950 }
 0x520   : > { %2654 = vmatpush.msrb.mxu0 %v2554_v41  ;;  %2695 = vmatpush.msrb.mxu1 %v2555_v39  ;;  %v5039_v9 = vpop.permute.xlu0 %945 }
 0x522   : > { %2655 = vmatpush.msrb.mxu0 %v2552_v5  ;;  %2696 = vmatpush.msrb.mxu1 %v2553_v14  ;;  %v5075_v14 = vld [vmem:[%s5623_s3 + $0x8] sm:$0xff] }
 0x523   : > { %v5021_v8 = vpop.f32.mrf.mxu2  ;;  %v5023_v40 = vpop.f32.mrf.mxu3  ;;  %3872 = vmatmul.msk.f32.vlgmr.msrb.gmra.mxu0 %vm587_vm3, %v4770_v45  ;;  %3880 = vmatmul.msk.f32.vlgmr.msrb.gmra.mxu1 %vm587_vm3, %v4770_v45  ;;  %5719 = vst [vmem:[#allocation71_spill] sm:$0xff] %v5075_v14 }
 0x524   : > { %5715 = vst [vmem:[#allocation67_spill] sm:$0xff] %v5021_v8  ;;  %3920 = vmatpush.msk.msra.mxu0 %vm369_vm0, %v3216_v50  ;;  %3923 = vmatpush.msk.msra.mxu1 %vm369_vm0, %v3217_v59  ;;  %v5041_v7 = vpop.permute.xlu2 %955  ;;  %v5092_v59 = vld [vmem:[%s5623_s3 + $0x10] sm:$0xff] }
 0x525   : > { %5716 = vst [vmem:[#allocation68_spill] sm:$0xff] %v5023_v40 }
 0x526   : > { %v5043_v45 = vpop.permute.xlu1 %965  ;;  %5720 = vst [vmem:[#allocation72_spill] sm:$0xff] %v5092_v59 }
 0x527   : > { %5717 = vst [vmem:[#allocation69_spill] sm:$0xff] %v5043_v45 }
 0x528   : > { %v5051_v57 = vpop.permute.xlu0 %960 }
 0x52b   : > { %3873 = vmatmul.msk.f32.gmra.mxu0 %vm587_vm3, %v4782_v6  ;;  %3881 = vmatmul.msk.f32.gmra.mxu1 %vm587_vm3, %v4782_v6  ;;  %v2833_v22 = vpop.f32.mrf.mxu2  ;;  %v2856_v19 = vpop.f32.mrf.mxu3 }
 0x52c   : > { %v2834_v0 = vadd.f32 %v2833_v22, %v2795_v10  ;;  %v2857_v1 = vadd.f32 %v2856_v19, %v2795_v10  ;;  %v5053_v5 = vpop.permute.xlu2 %1342 }
 0x52e   : > { %v2862_v41 = vmax.f32 %v2834_v0, 0.0  ;;  %v2863_v39 = vmax.f32 %v2857_v1, 0.0  ;;  %v5060_v10 = vpop.permute.xlu1 %1352 }
 0x533   : > { %3874 = vmatmul.msk.f32.gmra.mxu0 %vm587_vm3, %v4795_v12  ;;  %3882 = vmatmul.msk.f32.gmra.mxu1 %vm587_vm3, %v4795_v12  ;;  %v2836_v23 = vpop.f32.mrf.mxu2  ;;  %v2859_v24 = vpop.f32.mrf.mxu3  ;;  %v5058_v12 = vld [vmem:[%s5623_s3] sm:$0xff] }
 0x534   : > { %v2837_v6 = vadd.f32 %v2836_v23, %v4995_v46  ;;  %v2860_v43 = vadd.f32 %v2859_v24, %v4995_v46  ;;  %5718 = vst [vmem:[#allocation70_spill] sm:$0xff] %v5058_v12  ;;  %v5070_v46 = vpop.permute.xlu0 %1347  ;;  %v5077_v50 = vpop.permute.xlu2 %1357  ;;  %v5109_v23 = vld [vmem:[%s5623_s3 + $0x18] sm:$0xff] }
 0x535   : > { %5721 = vst [vmem:[#allocation73_spill] sm:$0xff] %v5109_v23 }
 0x536   : > { %v2864_v27 = vmax.f32 %v2837_v6, 0.0  ;;  %v2865_v25 = vmax.f32 %v2860_v43, 0.0 }
 0x538   : > { %2920 = vmatpush.msrb.mxu2 %v2864_v27  ;;  %2949 = vmatpush.msrb.mxu3 %v2865_v25 }
 0x53a   : > { %2921 = vmatpush.msrb.mxu2 %v2862_v41  ;;  %2950 = vmatpush.msrb.mxu3 %v2863_v39 }
 0x53b   : > { %3875 = vmatmul.msk.f32.gmra.mxu0 %vm587_vm3, %v4808_v28  ;;  %3883 = vmatmul.msk.f32.gmra.mxu1 %vm587_vm3, %v4808_v28  ;;  %v5087_v28 = vpop.permute.xlu1 %1367 }
 0x53c   : > { %3895 = vmatmul.msk.f32.vlgmr.msrb.gmra.mxu2 %vm452_vm2, %v5058_v12  ;;  %3899 = vmatmul.msk.f32.vlgmr.msrb.gmra.mxu3 %vm452_vm2, %v5058_v12  ;;  %v5094_v22 = vpop.permute.xlu0 %1362 }
 0x543   : > { %3876 = vmatmul.msk.f32.gmra.mxu0 %vm587_vm3, %v4821_v35  ;;  %3884 = vmatmul.msk.f32.gmra.mxu1 %vm587_vm3, %v4821_v35  ;;  %v5104_v35 = vpop.permute.xlu2 %1372  ;;  %v1755_v19 = vpop.permute.xlu1 %1754 }
 0x544   : > { %3896 = vmatmul.msk.f32.gmra.mxu2 %vm452_vm2, %v5075_v14  ;;  %3900 = vmatmul.msk.f32.gmra.mxu3 %vm452_vm2, %v5075_v14 }
 0x54b   : > { %3877 = vmatmul.msk.f32.gmra.mxu0 %vm587_vm3, %v4834_v36  ;;  %3885 = vmatmul.msk.f32.gmra.mxu1 %vm587_vm3, %v4834_v36  ;;  %v5119_v36 = vpop.permute.xlu0 %1377  ;;  %v5121_v24 = vpop.permute.xlu2 %1759 }
 0x54c   : > { %3897 = vmatmul.msk.f32.gmra.mxu2 %vm452_vm2, %v5092_v59  ;;  %3901 = vmatmul.msk.f32.gmra.mxu3 %vm452_vm2, %v5092_v59  ;;  %5722 = vst [vmem:[#allocation74_spill] sm:$0xff] %v5119_v36  ;;  %v5123_v0 = vpop.permute.xlu1 %1769 }
 0x553   : > { %3878 = vmatmul.msk.f32.gmra.mxu0 %vm587_vm3, %v4843_v13  ;;  %3886 = vmatmul.msk.f32.gmra.mxu1 %vm587_vm3, %v4843_v13  ;;  %v5129_v1 = vpop.permute.xlu0 %1764  ;;  %v5131_v13 = vpop.permute.xlu2 %1774 }
 0x554   : > { %3898 = vmatmul.msk.f32.gmra.mxu2 %vm452_vm2, %v5109_v23  ;;  %3902 = vmatmul.msk.f32.gmra.mxu3 %vm452_vm2, %v5109_v23  ;;  %v5133_v6 = vpop.permute.xlu1 %2891 }
 0x555   : > { %5723 = vst [vmem:[#allocation75_spill] sm:$0xff] %v5133_v6  ;;  %v5183_v6 = vadd.f32 %v4580_v26, %v4975_v2 }
 0x557   : > { %v697_v40 = vmax.f32 %v5183_v6, 0.0 }
 0x55b   : > { %3879 = vmatmul.msk.f32.gmra.mxu0 %vm587_vm3, %v4852_v15  ;;  %3887 = vmatmul.msk.f32.gmra.mxu1 %vm587_vm3, %v4852_v15  ;;  %v5139_v43 = vpop.permute.xlu0 %1779  ;;  %v5141_v27 = vpop.permute.xlu2 %2886 }
 0x55c   : > { %5724 = vst [vmem:[#allocation76_spill] sm:$0xff] %v5141_v27  ;;  %v5147_v15 = vpop.permute.xlu1 %2876 }
 0x55d   : > { %5725 = vst [vmem:[#allocation77_spill] sm:$0xff] %v5147_v15 }
 0x563   : > { %3921 = vmatmul.msk.f32.vlgmr.msra.gmra.mxu0 %vm362_vm1, %v4952_v37  ;;  %3924 = vmatmul.msk.f32.vlgmr.msra.gmra.mxu1 %vm362_vm1, %v4952_v37  ;;  %v5149_v25 = vpop.permute.xlu0 %2881  ;;  %v5151_v41 = vpop.permute.xlu2 %3303 }
 0x564   : > { %5726 = vst [vmem:[#allocation78_spill] sm:$0xff] %v5149_v25  ;;  %v5153_v39 = vpop.permute.xlu1 %3293  ;;  %v5179_v25 = vadd.f32 %v4578_v49, %v4975_v2  ;;  %v5197_v49 = vadd.f32 %v4593_v30, %v4983_v62  ;;  %v5209_v30 = vadd.f32 %v4606_v33, %v4991_v44  ;;  %v1054_v33 = vadd.f32 %v4630_v53, %v5017_v58  ;;  %v5733_v53 = vld [vmem:[#allocation25_spill] sm:$0xff] }
 0x565   : > { %5727 = vst [vmem:[#allocation79_spill] sm:$0xff] %v5151_v41  ;;  %v630_v41 = vadd.f32 %v4566_v47, %v4977_v42  ;;  %v1422_v47 = vadd.f32 %v4734_v17, %v5053_v5  ;;  %v1834_v17 = vadd.f32 %v4866_v16, %v1755_v19 }
 0x566   : > { %5728 = vst [vmem:[#allocation80_spill] sm:$0xff] %v5153_v39  ;;  %v671_v39 = vadd.f32 %v4568_v48, %v4977_v42  ;;  %v1463_v48 = vadd.f32 %v4736_v18, %v5053_v5  ;;  %v1875_v18 = vadd.f32 %v4868_v11, %v1755_v19 }
 0x568   : > { %v695_v42 = vmax.f32 %v671_v39, 0.0  ;;  %v1487_v5 = vmax.f32 %v1463_v48, 0.0  ;;  %v1057_v39 = vadd.f32 %v4634_v55, %v5031_v34  ;;  %v5734_v55 = vld [vmem:[#allocation56_spill] sm:$0xff] }
 0x56b   : > { %3922 = vmatmul.msk.f32.gmra.mxu0 %vm362_vm1, %v4961_v38  ;;  %3925 = vmatmul.msk.f32.gmra.mxu1 %vm362_vm1, %v4961_v38  ;;  %v5155_v23 = vpop.permute.xlu0 %3298  ;;  %v5157_v37 = vpop.permute.xlu2 %3288 }
 0x56c   : > { %5729 = vst [vmem:[#allocation81_spill] sm:$0xff] %v5155_v23  ;;  %v5159_v59 = vpop.permute.xlu1 %1789  ;;  %v1051_v23 = vadd.f32 %v4626_v20, %v5019_v3  ;;  %v694_v20 = vmax.f32 %v630_v41, 0.0 }
 0x56d   : > { %5730 = vst [vmem:[#allocation82_spill] sm:$0xff] %v5157_v37  ;;  %v1010_v37 = vadd.f32 %v4624_v51, %v5019_v3  ;;  %v5193_v51 = vadd.f32 %v4591_v29, %v4983_v62  ;;  %v696_v3 = vmax.f32 %v5179_v25, 0.0  ;;  %v5205_v29 = vadd.f32 %v4604_v32, %v4991_v44 }
 0x56e   : > { %5731 = vst [vmem:[#allocation83_spill] sm:$0xff] %v5159_v59  ;;  %v1075_v2 = vmax.f32 %v1051_v23, 0.0  ;;  %v1486_v62 = vmax.f32 %v1422_v47, 0.0  ;;  %v699_v25 = vmax.f32 %v5197_v49, 0.0  ;;  %v1013_v32 = vadd.f32 %v4628_v52, %v5017_v58  ;;  %v5732_v52 = vld [vmem:[#allocation24_spill] sm:$0xff] }
 0x56f   : > { %v1074_v26 = vmax.f32 %v1010_v37, 0.0  ;;  %v698_v23 = vmax.f32 %v5193_v51, 0.0  ;;  %v1016_v44 = vadd.f32 %v4632_v54, %v5031_v34  ;;  %v1898_v37 = vmax.f32 %v1834_v17, 0.0  ;;  %v5735_v34 = vld [vmem:[#allocation6_spill] sm:$0xff] }
 0x570   : > { %v1107_v19 = vmax.f32 %v695_v42, %v1075_v2  ;;  %v1425_v49 = vadd.f32 %v5732_v52, %v5070_v46  ;;  %v1466_v58 = vadd.f32 %v5733_v53, %v5070_v46  ;;  %v5736_v2 = vld [vmem:[#allocation7_spill] sm:$0xff]  ;;  %v5737_v46 = vld [vmem:[#allocation38_spill] sm:$0xff] }
 0x571   : > { %v1106_v11 = vmax.f32 %v694_v20, %v1074_v26  ;;  %v5235_v26 = vadd.f32 %v5735_v34, %v5734_v55  ;;  %v5239_v17 = vadd.f32 %v5736_v2, %v5734_v55 }
 0x572   : > { %v1519_v51 = vmax.f32 %v1107_v19, %v1487_v5  ;;  %v1078_v5 = vmax.f32 %v1016_v44, 0.0  ;;  %v1488_v59 = vmax.f32 %v1425_v49, 0.0  ;;  %v1489_v36 = vmax.f32 %v1466_v58, 0.0  ;;  %v5740_v44 = vld [vmem:[#allocation53_spill] sm:$0xff] }
 0x573   : > { %v5161_v14 = vpop.permute.xlu0 %1784  ;;  %v2167_v12 = vpop.permute.xlu2 %2166  ;;  %v1518_v48 = vmax.f32 %v1106_v11, %v1486_v62  ;;  %v1077_v62 = vmax.f32 %v1054_v33, 0.0  ;;  %v1079_v11 = vmax.f32 %v1057_v39, 0.0 }
 0x574   : > { %v5163_v31 = vpop.permute.xlu1 %2176  ;;  %v2246_v6 = vadd.f32 %v4967_v56, %v2167_v12  ;;  %v2287_v16 = vadd.f32 %v4969_v61, %v2167_v12  ;;  %v1899_v56 = vmax.f32 %v1875_v18, 0.0  ;;  %v1076_v18 = vmax.f32 %v1013_v32, 0.0  ;;  %v5739_v32 = vld [vmem:[#allocation52_spill] sm:$0xff] }
 0x575   : > { %v1930_v19 = vmax.f32 %v1518_v48, %v1898_v37 }
 0x576   : > { %v2310_v54 = vmax.f32 %v2246_v6, 0.0  ;;  %v2311_v20 = vmax.f32 %v2287_v16, 0.0  ;;  %v1931_v52 = vmax.f32 %v1519_v51, %v1899_v56  ;;  %v1837_v6 = vadd.f32 %v5737_v46, %v5121_v24  ;;  %v5738_v16 = vld [vmem:[#allocation39_spill] sm:$0xff]  ;;  %v5741_v46 = vld [vmem:[#allocation26_spill] sm:$0xff] }
 0x577   : > { %v1878_v53 = vadd.f32 %v5738_v16, %v5121_v24  ;;  %v1108_v48 = vmax.f32 %v696_v3, %v1076_v18  ;;  %v1109_v51 = vmax.f32 %v697_v40, %v1077_v62  ;;  %v1428_v45 = vadd.f32 %v5741_v46, %v5060_v10  ;;  %v5742_v24 = vld [vmem:[#allocation27_spill] sm:$0xff] }
 0x578   : > { %v2342_v55 = vmax.f32 %v1930_v19, %v2310_v54  ;;  %v2343_v2 = vmax.f32 %v1931_v52, %v2311_v20  ;;  %v1900_v49 = vmax.f32 %v1837_v6, 0.0  ;;  %v1110_v3 = vmax.f32 %v698_v23, %v1078_v5  ;;  %v5743_v6 = vld [vmem:[#allocation40_spill] sm:$0xff] }
 0x579   : > { %v1901_v58 = vmax.f32 %v1878_v53, 0.0  ;;  %v1111_v40 = vmax.f32 %v699_v25, %v1079_v11  ;;  %v1520_v18 = vmax.f32 %v1108_v48, %v1488_v59  ;;  %v1521_v62 = vmax.f32 %v1109_v51, %v1489_v36  ;;  %v5745_v25 = vld [vmem:[#allocation14_spill] sm:$0xff]  ;;  %v5746_v36 = vld [vmem:[#allocation15_spill] sm:$0xff] }
 0x57a   : > { %v1840_v53 = vadd.f32 %v5743_v6, %v5129_v1  ;;  %v1019_v59 = vadd.f32 %v5745_v25, %v5039_v9  ;;  %v1060_v5 = vadd.f32 %v5746_v36, %v5039_v9 }
 0x57b   : > { %v5165_v38 = vpop.permute.xlu0 %2171  ;;  %v5167_v15 = vpop.permute.xlu2 %2181 }
 0x57c   : > { %v5185_v27 = vpop.permute.xlu1 %2191  ;;  %v2249_v33 = vadd.f32 %v5739_v32, %v5165_v38  ;;  %v2290_v39 = vadd.f32 %v5740_v44, %v5165_v38  ;;  %v702_v38 = vmax.f32 %v5235_v26, 0.0  ;;  %v1932_v44 = vmax.f32 %v1520_v18, %v1900_v49  ;;  %v5750_v49 = vld [vmem:[#allocation17_spill] sm:$0xff] }
 0x57e   : > { %v2312_v19 = vmax.f32 %v2249_v33, 0.0  ;;  %v2313_v52 = vmax.f32 %v2290_v39, 0.0  ;;  %v5748_v33 = vld [vmem:[#allocation55_spill] sm:$0xff] }
 0x57f   : > { %v2293_v39 = vadd.f32 %v5748_v33, %v5163_v31 }
 0x580   : > { %v2344_v48 = vmax.f32 %v1932_v44, %v2312_v19 }
 0x581   : > { %v2315_v44 = vmax.f32 %v2293_v39, 0.0  ;;  %v5757_v39 = vld [vmem:[#allocation43_spill] sm:$0xff] }
 0x583   : > { %v5215_v41 = vpop.permute.xlu0 %2186  ;;  %v5225_v47 = vpop.permute.xlu2 %2196 }
 0x584   : > { %v2579_v42 = vpop.permute.xlu1 %2578 }
 0x5a0   : > { %v2657_v12 = vpop.f32.mrf.mxu0  ;;  %v2698_v61 = vpop.f32.mrf.mxu1 }
 0x5a1   : > { %v2658_v34 = vadd.f32 %v2657_v12, %v2579_v42  ;;  %v2699_v8 = vadd.f32 %v2698_v61, %v2579_v42  ;;  %v1469_v61 = vadd.f32 %v5742_v24, %v5060_v10  ;;  %v5253_v12 = vpop.permute.xlu0 %2201  ;;  %v2584_v42 = vpop.permute.xlu2 %2583  ;;  %v1490_v10 = vmax.f32 %v1428_v45, 0.0  ;;  %v5747_v45 = vld [vmem:[#allocation54_spill] sm:$0xff]  ;;  %v5749_v24 = vld [vmem:[#allocation16_spill] sm:$0xff] }
 0x5a2   : > { %v2252_v11 = vadd.f32 %v5747_v45, %v5163_v31  ;;  %v5751_v31 = vld [vmem:[#allocation28_spill] sm:$0xff] }
 0x5a3   : > { %v2722_v37 = vmax.f32 %v2658_v34, 0.0  ;;  %v2723_v56 = vmax.f32 %v2699_v8, 0.0  ;;  %v703_v8 = vmax.f32 %v5239_v17, 0.0  ;;  %v1491_v16 = vmax.f32 %v1469_v61, 0.0  ;;  %v5744_v34 = vld [vmem:[#allocation41_spill] sm:$0xff] }
 0x5a4   : > { %v1022_v61 = vadd.f32 %v5749_v24, %v5033_v21  ;;  %v1431_v19 = vadd.f32 %v5751_v31, %v5077_v50 }
 0x5a5   : > { %v5255_v54 = vmax.f32 %v2342_v55, %v2722_v37  ;;  %v5257_v20 = vmax.f32 %v2343_v2, %v2723_v56  ;;  %v1881_v55 = vadd.f32 %v5744_v34, %v5129_v1  ;;  %v1933_v37 = vmax.f32 %v1521_v62, %v1901_v58 }
 0x5a6   : > { %v1063_v58 = vadd.f32 %v5750_v49, %v5033_v21  ;;  %v1522_v62 = vmax.f32 %v1110_v3, %v1490_v10  ;;  %v1523_v9 = vmax.f32 %v1111_v40, %v1491_v16  ;;  %v5755_v3 = vld [vmem:[#allocation9_spill] sm:$0xff]  ;;  %v1080_v10 = vmax.f32 %v1019_v59, 0.0 }
 0x5a7   : > { %v2345_v1 = vmax.f32 %v1933_v37, %v2313_v52  ;;  %v1903_v18 = vmax.f32 %v1881_v55, 0.0  ;;  %v5752_v52 = vld [vmem:[#allocation29_spill] sm:$0xff]  ;;  %v1081_v16 = vmax.f32 %v1060_v5, 0.0 }
 0x5a8   : > { %v2660_v2 = vpop.f32.mrf.mxu0  ;;  %v2701_v32 = vpop.f32.mrf.mxu1  ;;  %v1083_v55 = vmax.f32 %v1063_v58, 0.0  ;;  %v5758_v59 = vld [vmem:[#allocation57_spill] sm:$0xff] }
 0x5a9   : > { %v2661_v56 = vadd.f32 %v2660_v2, %v2584_v42  ;;  %v2702_v23 = vadd.f32 %v2701_v32, %v2584_v42  ;;  %v1902_v42 = vmax.f32 %v1840_v53, 0.0  ;;  %v1472_v2 = vadd.f32 %v5752_v52, %v5077_v50  ;;  %v2589_v37 = vpop.permute.xlu0 %2588  ;;  %v5756_v50 = vld [vmem:[#allocation42_spill] sm:$0xff] }
 0x5aa   : > { %v2314_v32 = vmax.f32 %v2252_v11, 0.0  ;;  %v1082_v53 = vmax.f32 %v1022_v61, 0.0  ;;  %v1935_v36 = vmax.f32 %v1523_v9, %v1903_v18  ;;  %v1843_v11 = vadd.f32 %v5756_v50, %v5123_v0  ;;  %v5759_v61 = vld [vmem:[#allocation58_spill] sm:$0xff] }
 0x5ab   : > { %v2724_v51 = vmax.f32 %v2661_v56, 0.0  ;;  %v2725_v46 = vmax.f32 %v2702_v23, 0.0  ;;  %v5753_v56 = vld [vmem:[#allocation59_spill] sm:$0xff]  ;;  %v5754_v23 = vld [vmem:[#allocation8_spill] sm:$0xff]  ;;  %v1934_v25 = vmax.f32 %v1522_v62, %v1902_v42  ;;  %v1493_v24 = vmax.f32 %v1472_v2, 0.0 }
 0x5ac   : > { %v5287_v21 = vadd.f32 %v5754_v23, %v5753_v56  ;;  %v5291_v40 = vadd.f32 %v5755_v3, %v5753_v56  ;;  %v2347_v31 = vmax.f32 %v1935_v36, %v2315_v44  ;;  %v2255_v5 = vadd.f32 %v5758_v59, %v5167_v15  ;;  %v5763_v2 = vld [vmem:[#allocation31_spill] sm:$0xff] }
 0x5ad   : > { %v5277_v6 = vmax.f32 %v2344_v48, %v2724_v51  ;;  %v5279_v34 = vmax.f32 %v2345_v1, %v2725_v46  ;;  %v1884_v48 = vadd.f32 %v5757_v39, %v5123_v0  ;;  %v1492_v46 = vmax.f32 %v1431_v19, 0.0 }
 0x5ae   : > { %v2346_v49 = vmax.f32 %v1934_v25, %v2314_v32  ;;  %v2296_v58 = vadd.f32 %v5759_v61, %v5167_v15  ;;  %v5760_v62 = vmax.f32 %v5205_v29, 0.0  ;;  %v5761_v52 = vmax.f32 %v5209_v30, 0.0  ;;  %v5764_v15 = vld [vmem:[#allocation62_spill] sm:$0xff]  ;;  %v5766_v29 = vld [vmem:[#allocation11_spill] sm:$0xff] }
 0x5af   : > { %v1475_v32 = vadd.f32 %v5763_v2, %v5094_v22  ;;  %v1904_v44 = vmax.f32 %v1843_v11, 0.0  ;;  %v1905_v56 = vmax.f32 %v1884_v48, 0.0  ;;  %v5765_v25 = vld [vmem:[#allocation10_spill] sm:$0xff]  ;;  %v5319_v30 = vadd.f32 %v5766_v29, %v5764_v15  ;;  %v5774_v29 = vld [vmem:[#allocation33_spill] sm:$0xff] }
 0x5b0   : > { %v2663_v45 = vpop.f32.mrf.mxu0  ;;  %v2704_v33 = vpop.f32.mrf.mxu1  ;;  %v1112_v9 = vmax.f32 %v5760_v62, %v1080_v10  ;;  %v1113_v0 = vmax.f32 %v5761_v52, %v1081_v16  ;;  %v5315_v36 = vadd.f32 %v5765_v25, %v5764_v15  ;;  %v1114_v10 = vmax.f32 %v702_v38, %v1082_v53  ;;  %v5773_v25 = vld [vmem:[#allocation32_spill] sm:$0xff] }
 0x5b1   : > { %v2664_v1 = vadd.f32 %v2663_v45, %v2589_v37  ;;  %v2705_v51 = vadd.f32 %v2704_v33, %v2589_v37  ;;  %v5762_v37 = vld [vmem:[#allocation30_spill] sm:$0xff]  ;;  %v2594_v16 = vpop.permute.xlu1 %2593  ;;  %v2316_v50 = vmax.f32 %v2255_v5, 0.0  ;;  %v2317_v11 = vmax.f32 %v2296_v58, 0.0  ;;  %v5771_v5 = vld [vmem:[#allocation60_spill] sm:$0xff]  ;;  %v2599_v15 = vpop.permute.xlu2 %2598 }
 0x5b2   : > { %v1434_v19 = vadd.f32 %v5762_v37, %v5094_v22  ;;  %v1115_v22 = vmax.f32 %v703_v8, %v1083_v55  ;;  %v1524_v45 = vmax.f32 %v1112_v9, %v1492_v46  ;;  %v1525_v33 = vmax.f32 %v1113_v0, %v1493_v24  ;;  %v5769_v8 = vld [vmem:[#allocation18_spill] sm:$0xff]  ;;  %v5770_v46 = vld [vmem:[#allocation19_spill] sm:$0xff] }
 0x5b3   : > { %v2726_v42 = vmax.f32 %v2664_v1, 0.0  ;;  %v2727_v18 = vmax.f32 %v2705_v51, 0.0  ;;  %v1495_v48 = vmax.f32 %v1475_v32, 0.0  ;;  %v5767_v1 = vld [vmem:[#allocation44_spill] sm:$0xff]  ;;  %v1025_v55 = vadd.f32 %v5769_v8, %v5041_v7 }
 0x5b4   : > { %v1494_v39 = vmax.f32 %v1434_v19, 0.0  ;;  %v1846_v51 = vadd.f32 %v5767_v1, %v5131_v13  ;;  %v1936_v26 = vmax.f32 %v1524_v45, %v1904_v44  ;;  %v1937_v38 = vmax.f32 %v1525_v33, %v1905_v56  ;;  %v5776_v1 = vld [vmem:[#allocation21_spill] sm:$0xff] }
 0x5b5   : > { %v5309_v23 = vmax.f32 %v2346_v49, %v2726_v42  ;;  %v5311_v3 = vmax.f32 %v2347_v31, %v2727_v18  ;;  %v5768_v49 = vld [vmem:[#allocation45_spill] sm:$0xff]  ;;  %v1066_v24 = vadd.f32 %v5770_v46, %v5041_v7  ;;  %v2258_v58 = vadd.f32 %v5771_v5, %v5215_v41 }
 0x5b6   : > { %v1887_v31 = vadd.f32 %v5768_v49, %v5131_v13  ;;  %v5772_v42 = vld [vmem:[#allocation61_spill] sm:$0xff]  ;;  %v2348_v62 = vmax.f32 %v1936_v26, %v2316_v50  ;;  %v2349_v13 = vmax.f32 %v1937_v38, %v2317_v11  ;;  %v704_v0 = vmax.f32 %v5287_v21, 0.0 }
 0x5b7   : > { %v2299_v18 = vadd.f32 %v5772_v42, %v5215_v41  ;;  %v705_v37 = vmax.f32 %v5291_v40, 0.0  ;;  %v1906_v19 = vmax.f32 %v1846_v51, 0.0  ;;  %v1526_v32 = vmax.f32 %v1114_v10, %v1494_v39  ;;  %v5775_v39 = vld [vmem:[#allocation20_spill] sm:$0xff] }
 0x5b8   : > { %v2666_v59 = vpop.f32.mrf.mxu0  ;;  %v2707_v61 = vpop.f32.mrf.mxu1  ;;  %v1907_v2 = vmax.f32 %v1887_v31, 0.0  ;;  %v1527_v44 = vmax.f32 %v1115_v22, %v1495_v48  ;;  %v1437_v41 = vadd.f32 %v5773_v25, %v5087_v28  ;;  %v2318_v45 = vmax.f32 %v2258_v58, 0.0 }
 0x5b9   : > { %v2667_v53 = vadd.f32 %v2666_v59, %v2594_v16  ;;  %v2708_v17 = vadd.f32 %v2707_v61, %v2594_v16  ;;  %v1478_v16 = vadd.f32 %v5774_v29, %v5087_v28  ;;  %v2319_v33 = vmax.f32 %v2299_v18, 0.0  ;;  %v2604_v25 = vpop.permute.xlu0 %2603 }
 0x5ba   : > { %v706_v21 = vmax.f32 %v5315_v36, 0.0  ;;  %v707_v40 = vmax.f32 %v5319_v30, 0.0  ;;  %v1084_v50 = vmax.f32 %v1025_v55, 0.0  ;;  %v1085_v10 = vmax.f32 %v1066_v24, 0.0  ;;  %v5777_v36 = vld [vmem:[#allocation46_spill] sm:$0xff]  ;;  %v5778_v30 = vld [vmem:[#allocation47_spill] sm:$0xff] }
 0x5bb   : > { %v2728_v9 = vmax.f32 %v2667_v53, 0.0  ;;  %v2729_v52 = vmax.f32 %v2708_v17, 0.0  ;;  %v1028_v48 = vadd.f32 %v5775_v39, %v5051_v57  ;;  %v1069_v51 = vadd.f32 %v5776_v1, %v5051_v57  ;;  %v5779_v24 = vld [vmem:[#allocation64_spill] sm:$0xff]  ;;  %v5780_v57 = vld [vmem:[#allocation65_spill] sm:$0xff] }
 0x5bc   : > { %v1938_v49 = vmax.f32 %v1526_v32, %v1906_v19  ;;  %v1939_v28 = vmax.f32 %v1527_v44, %v1907_v2  ;;  %v1849_v61 = vadd.f32 %v5777_v36, %v5139_v43  ;;  %v1890_v26 = vadd.f32 %v5778_v30, %v5139_v43  ;;  %v5782_v43 = vld [vmem:[#allocation35_spill] sm:$0xff] }
 0x5bd   : > { %v5339_v56 = vmax.f32 %v2348_v62, %v2728_v9  ;;  %v5341_v7 = vmax.f32 %v2349_v13, %v2729_v52  ;;  %v1496_v17 = vmax.f32 %v1437_v41, 0.0  ;;  %v1497_v8 = vmax.f32 %v1478_v16, 0.0  ;;  %v5781_v9 = vld [vmem:[#allocation34_spill] sm:$0xff]  ;;  %v5783_v41 = vld [vmem:[#allocation12_spill] sm:$0xff] }
 0x5be   : > { %v2350_v55 = vmax.f32 %v1938_v49, %v2318_v45  ;;  %v2351_v46 = vmax.f32 %v1939_v28, %v2319_v33  ;;  %v2261_v5 = vadd.f32 %v5779_v24, %v5185_v27  ;;  %v2302_v58 = vadd.f32 %v5780_v57, %v5185_v27  ;;  %v5785_v28 = vld [vmem:[#allocation48_spill] sm:$0xff]  ;;  %v5787_v57 = vld [vmem:[#allocation69_spill] sm:$0xff] }
 0x5bf   : > { %v5349_v22 = vpop.f32.mrf.mxu2  ;;  %v5351_v11 = vpop.f32.mrf.mxu3  ;;  %v1116_v62 = vmax.f32 %v704_v0, %v1084_v50  ;;  %v1117_v13 = vmax.f32 %v705_v37, %v1085_v10  ;;  %v1440_v52 = vadd.f32 %v5781_v9, %v5104_v35  ;;  %v1481_v19 = vadd.f32 %v5782_v43, %v5104_v35  ;;  %v5784_v0 = vld [vmem:[#allocation13_spill] sm:$0xff] }
 0x5c0   : > { %v2669_v31 = vpop.f32.mrf.mxu0  ;;  %v2710_v59 = vpop.f32.mrf.mxu1  ;;  %v1908_v2 = vmax.f32 %v1849_v61, 0.0  ;;  %v1909_v32 = vmax.f32 %v1890_v26, 0.0  ;;  %v5375_v27 = vadd.f32 %v5783_v41, %v5009_v4  ;;  %v5379_v37 = vadd.f32 %v5784_v0, %v5009_v4 }
 0x5c1   : > { %v2670_v38 = vadd.f32 %v2669_v31, %v2599_v15  ;;  %v2711_v53 = vadd.f32 %v2710_v59, %v2599_v15  ;;  %v1086_v29 = vmax.f32 %v1028_v48, 0.0  ;;  %v1087_v16 = vmax.f32 %v1069_v51, 0.0  ;;  %v5786_v59 = vld [vmem:[#allocation49_spill] sm:$0xff] }
 0x5c2   : > { %v1528_v45 = vmax.f32 %v1116_v62, %v1496_v17  ;;  %v1529_v33 = vmax.f32 %v1117_v13, %v1497_v8  ;;  %v2320_v35 = vmax.f32 %v2261_v5, 0.0  ;;  %v2321_v50 = vmax.f32 %v2302_v58, 0.0 }
 0x5c3   : > { %v2730_v42 = vmax.f32 %v2670_v38, 0.0  ;;  %v2731_v18 = vmax.f32 %v2711_v53, 0.0  ;;  %v1498_v1 = vmax.f32 %v1440_v52, 0.0  ;;  %v1499_v49 = vmax.f32 %v1481_v19, 0.0  ;;  %v2609_v52 = vpop.permute.xlu1 %2608  ;;  %v5792_v19 = vld [vmem:[#allocation37_spill] sm:$0xff] }
 0x5c4   : > { %v1852_v31 = vadd.f32 %v5785_v28, %v5161_v14  ;;  %v1893_v36 = vadd.f32 %v5786_v59, %v5161_v14  ;;  %v1940_v48 = vmax.f32 %v1528_v45, %v1908_v2  ;;  %v1941_v51 = vmax.f32 %v1529_v33, %v1909_v32  ;;  %v5788_v14 = vld [vmem:[#allocation22_spill] sm:$0xff]  ;;  %v5793_v28 = vld [vmem:[#allocation83_spill] sm:$0xff] }
 0x5c5   : > { %v5369_v44 = vmax.f32 %v2350_v55, %v2730_v42  ;;  %v5371_v15 = vmax.f32 %v2351_v46, %v2731_v18  ;;  %v1118_v38 = vmax.f32 %v706_v21, %v1086_v29  ;;  %v1119_v53 = vmax.f32 %v707_v40, %v1087_v16  ;;  %v5789_v42 = vld [vmem:[#allocation23_spill] sm:$0xff] }
 0x5c6   : > { %v2264_v17 = vadd.f32 %v5013_v63, %v5225_v47  ;;  %v2305_v8 = vadd.f32 %v5015_v60, %v5225_v47  ;;  %v2352_v55 = vmax.f32 %v1940_v48, %v2320_v35  ;;  %v2353_v46 = vmax.f32 %v1941_v51, %v2321_v50  ;;  %v5790_v60 = vld [vmem:[#allocation74_spill] sm:$0xff]  ;;  %v5791_v47 = vld [vmem:[#allocation36_spill] sm:$0xff] }
 0x5c7   : > { %v5381_v10 = vpop.f32.mrf.mxu2  ;;  %v5383_v39 = vpop.f32.mrf.mxu3  ;;  %v1031_v58 = vadd.f32 %v5788_v14, %v5787_v57  ;;  %v1072_v18 = vadd.f32 %v5789_v42, %v5787_v57  ;;  %v1910_v62 = vmax.f32 %v1852_v31, 0.0  ;;  %v1911_v13 = vmax.f32 %v1893_v36, 0.0  ;;  %v5794_v31 = vld [vmem:[#allocation50_spill] sm:$0xff]  ;;  %v5795_v36 = vld [vmem:[#allocation51_spill] sm:$0xff] }
 0x5c8   : > { %v2672_v4 = vpop.f32.mrf.mxu0  ;;  %v2713_v61 = vpop.f32.mrf.mxu1  ;;  %v1530_v21 = vmax.f32 %v1118_v38, %v1498_v1  ;;  %v1531_v40 = vmax.f32 %v1119_v53, %v1499_v49  ;;  %v1443_v43 = vadd.f32 %v5791_v47, %v5790_v60  ;;  %v1484_v2 = vadd.f32 %v5792_v19, %v5790_v60  ;;  %v5797_v53 = vld [vmem:[#allocation68_spill] sm:$0xff] }
 0x5c9   : > { %v2673_v30 = vadd.f32 %v2672_v4, %v2604_v25  ;;  %v2714_v26 = vadd.f32 %v2713_v61, %v2604_v25  ;;  %v2322_v32 = vmax.f32 %v2264_v17, 0.0  ;;  %v2323_v25 = vmax.f32 %v2305_v8, 0.0  ;;  %v2614_v42 = vpop.permute.xlu2 %2613  ;;  %v5798_v60 = vld [vmem:[#allocation76_spill] sm:$0xff] }
 0x5ca   : > { %v708_v41 = vmax.f32 %v5375_v27, 0.0  ;;  %v709_v0 = vmax.f32 %v5379_v37, 0.0  ;;  %v1088_v45 = vmax.f32 %v1031_v58, 0.0  ;;  %v1089_v33 = vmax.f32 %v1072_v18, 0.0 }
 0x5cb   : > { %v2732_v24 = vmax.f32 %v2673_v30, 0.0  ;;  %v2733_v5 = vmax.f32 %v2714_v26, 0.0  ;;  %v1942_v35 = vmax.f32 %v1530_v21, %v1910_v62  ;;  %v1943_v50 = vmax.f32 %v1531_v40, %v1911_v13  ;;  %v5796_v26 = vld [vmem:[#allocation67_spill] sm:$0xff] }
 0x5cc   : > { %v1855_v59 = vadd.f32 %v5794_v31, %v5793_v28  ;;  %v1896_v4 = vadd.f32 %v5795_v36, %v5793_v28  ;;  %v1500_v51 = vmax.f32 %v1443_v43, 0.0  ;;  %v1501_v27 = vmax.f32 %v1484_v2, 0.0  ;;  %v5799_v43 = vld [vmem:[#allocation75_spill] sm:$0xff]  ;;  %v5801_v36 = vld [vmem:[#allocation77_spill] sm:$0xff] }
 0x5cd   : > { %v5397_v9 = vmax.f32 %v2352_v55, %v2732_v24  ;;  %v5399_v63 = vmax.f32 %v2353_v46, %v2733_v5  ;;  %v2354_v30 = vmax.f32 %v1942_v35, %v2322_v32  ;;  %v2355_v37 = vmax.f32 %v1943_v50, %v2323_v25  ;;  %v5800_v35 = vld [vmem:[#allocation78_spill] sm:$0xff] }
 0x5ce   : > { %v2267_v38 = vadd.f32 %v5796_v26, %v5253_v12  ;;  %v2308_v17 = vadd.f32 %v5797_v53, %v5253_v12  ;;  %v1120_v46 = vmax.f32 %v708_v41, %v1088_v45  ;;  %v1121_v24 = vmax.f32 %v709_v0, %v1089_v33 }
 0x5cf   : > { %v2929_v29 = vpop.f32.mrf.mxu2  ;;  %v2958_v16 = vpop.f32.mrf.mxu3  ;;  %v1912_v5 = vmax.f32 %v1855_v59, 0.0  ;;  %v1913_v57 = vmax.f32 %v1896_v4, 0.0  ;;  %v2927_v50 = vadd.f32 %v5381_v10, %v5800_v35  ;;  %v2924_v4 = vadd.f32 %v5349_v22, %v5801_v36 }
 0x5d0   : > { %v2675_v1 = vpop.f32.mrf.mxu0  ;;  %v2716_v49 = vpop.f32.mrf.mxu1  ;;  %v1532_v18 = vmax.f32 %v1120_v46, %v1500_v51  ;;  %v1533_v62 = vmax.f32 %v1121_v24, %v1501_v27  ;;  %v2324_v13 = vmax.f32 %v2267_v38, 0.0  ;;  %v2325_v21 = vmax.f32 %v2308_v17, 0.0 }
 0x5d1   : > { %v2676_v61 = vadd.f32 %v2675_v1, %v2609_v52  ;;  %v2717_v48 = vadd.f32 %v2716_v49, %v2609_v52  ;;  %v2930_v47 = vadd.f32 %v2929_v29, %v5798_v60  ;;  %v2959_v12 = vadd.f32 %v2958_v16, %v5798_v60  ;;  %v5805_v60 = vld [vmem:[#allocation71_spill] sm:$0xff] }
 0x5d2   : > { %v1944_v41 = vmax.f32 %v1532_v18, %v1912_v5  ;;  %v1945_v0 = vmax.f32 %v1533_v62, %v1913_v57  ;;  %v2956_v1 = vadd.f32 %v5383_v39, %v5800_v35  ;;  %v2966_v39 = vmax.f32 %v2927_v50, 0.0  ;;  %v5803_v5 = vld [vmem:[#allocation63_spill] sm:$0xff] }
 0x5d3   : > { %v2734_v8 = vmax.f32 %v2676_v61, 0.0  ;;  %v2735_v55 = vmax.f32 %v2717_v48, 0.0  ;;  %v2953_v61 = vadd.f32 %v5351_v11, %v5801_v36  ;;  %v2968_v48 = vmax.f32 %v2930_v47, 0.0  ;;  %v5438_v11 = vld [vmem:[%s5625_s5] sm:$0xff]  ;;  %v2975_v47 = vld [vmem:[%s5625_s5 + $0x18] sm:$0xff] }
 0x5d4   : > { %v2356_v28 = vmax.f32 %v1944_v41, %v2324_v13  ;;  %v2357_v16 = vmax.f32 %v1945_v0, %v2325_v21  ;;  %v2969_v51 = vmax.f32 %v2959_v12, 0.0  ;;  %v5806_v12 = vld [vmem:[#allocation72_spill] sm:$0xff] }
 0x5d5   : > { %v5415_v14 = vmax.f32 %v2354_v30, %v2734_v8  ;;  %v5417_v58 = vmax.f32 %v2355_v37, %v2735_v55  ;;  %v2967_v30 = vmax.f32 %v2956_v1, 0.0  ;;  %v2964_v37 = vmax.f32 %v2924_v4, 0.0  ;;  %v5447_v8 = vld [vmem:[%s5625_s5 + $0x8] sm:$0xff]  ;;  %v5810_v4 = vld [vmem:[#allocation80_spill] sm:$0xff] }
 0x5d6   : > { %v2965_v26 = vmax.f32 %v2953_v61, 0.0  ;;  %v5802_v55 = vld [vmem:[#allocation66_spill] sm:$0xff] }
 0x5d7   : > { %v2932_v40 = vpop.f32.mrf.mxu2  ;;  %v2961_v52 = vpop.f32.mrf.mxu3 }
 0x5d8   : > { %v2933_v19 = vadd.f32 %v2932_v40, %v5799_v43  ;;  %v2962_v2 = vadd.f32 %v2961_v52, %v5799_v43  ;;  %v2678_v32 = vpop.f32.mrf.mxu0  ;;  %v2719_v25 = vpop.f32.mrf.mxu1  ;;  %v5804_v40 = vld [vmem:[#allocation70_spill] sm:$0xff]  ;;  %v2974_v52 = vld [vmem:[%s5625_s5 + $0x10] sm:$0xff]  ;;  %v2976_v43 = vld [vmem:[%s5625_s5 + $0x20] sm:$0xff] }
 0x5d9   : > { %v2679_v45 = vadd.f32 %v2678_v32, %v2614_v42  ;;  %v2720_v33 = vadd.f32 %v2719_v25, %v2614_v42  ;;  %v2978_v32 = vld [vmem:[%s5625_s5 + $0x30] sm:$0xff]  ;;  %v2979_v25 = vld [vmem:[%s5625_s5 + $0x38] sm:$0xff] }
 0x5da   : > { %v2970_v49 = vmax.f32 %v2933_v19, 0.0  ;;  %v2971_v29 = vmax.f32 %v2962_v2, 0.0  ;;  %v5807_v19 = vld [vmem:[#allocation73_spill] sm:$0xff]  ;;  %v2977_v2 = vld [vmem:[%s5625_s5 + $0x28] sm:$0xff] }
 0x5db   : > { %v2736_v31 = vmax.f32 %v2679_v45, 0.0  ;;  %v2737_v59 = vmax.f32 %v2720_v33, 0.0 }
 0x5dc   : > { %3064 = vmatpush.msra.mxu2 %v2970_v49  ;;  %3105 = vmatpush.msra.mxu3 %v2971_v29  ;;  %v5808_v29 = vld [vmem:[#allocation81_spill] sm:$0xff] }
 0x5dd   : > { %v5431_v10 = vmax.f32 %v2356_v28, %v2736_v31  ;;  %v5433_v27 = vmax.f32 %v2357_v16, %v2737_v59  ;;  %v5809_v31 = vld [vmem:[#allocation79_spill] sm:$0xff] }
 0x5de   : > { %3065 = vmatpush.msra.mxu2 %v2968_v48  ;;  %3106 = vmatpush.msra.mxu3 %v2969_v51 }
 0x5e0   : > { %3066 = vmatpush.msra.mxu2 %v2966_v39  ;;  %3107 = vmatpush.msra.mxu3 %v2967_v30  ;;  %v3245_v22 = vpop.f32.mrf.mxu0  ;;  %v3268_v38 = vpop.f32.mrf.mxu1  ;;  %v5811_v30 = vld [vmem:[#allocation82_spill] sm:$0xff] }
 0x5e1   : > { %v3246_v46 = vadd.f32 %v3245_v22, %v5802_v55  ;;  %v3269_v24 = vadd.f32 %v3268_v38, %v5802_v55 }
 0x5e2   : > { %3067 = vmatpush.msra.mxu2 %v2964_v37  ;;  %3108 = vmatpush.msra.mxu3 %v2965_v26 }
 0x5e3   : > { %3903 = vmatmul.msk.f32.vlgmr.msra.gmra.mxu2 %vm587_vm3, %v5438_v11  ;;  %3911 = vmatmul.msk.f32.vlgmr.msra.gmra.mxu3 %vm587_vm3, %v5438_v11  ;;  %v3274_v13 = vmax.f32 %v3246_v46, 0.0  ;;  %v3275_v21 = vmax.f32 %v3269_v24, 0.0 }
 0x5e8   : > { %v3248_v53 = vpop.f32.mrf.mxu0  ;;  %v3271_v17 = vpop.f32.mrf.mxu1 }
 0x5e9   : > { %v3249_v57 = vadd.f32 %v3248_v53, %v5803_v5  ;;  %v3272_v42 = vadd.f32 %v3271_v17, %v5803_v5  ;;  %v3001_v5 = vpop.permute.xlu2 %3000 }
 0x5eb   : > { %v3276_v18 = vmax.f32 %v3249_v57, 0.0  ;;  %v3277_v62 = vmax.f32 %v3272_v42, 0.0  ;;  %3904 = vmatmul.msk.f32.gmra.mxu2 %vm587_vm3, %v5447_v8  ;;  %3912 = vmatmul.msk.f32.gmra.mxu3 %vm587_vm3, %v5447_v8  ;;  %v2996_v57 = vpop.permute.xlu1 %2995 }
 0x5ed   : > { %3332 = vmatpush.msrb.mxu0 %v3276_v18  ;;  %3361 = vmatpush.msrb.mxu1 %v3277_v62 }
 0x5ef   : > { %3333 = vmatpush.msrb.mxu0 %v3274_v13  ;;  %3362 = vmatpush.msrb.mxu1 %v3275_v21 }
 0x5f0   : > { %3926 = vmatmul.msk.f32.vlgmr.msrb.gmra.mxu0 %vm452_vm2, %v5804_v40  ;;  %3930 = vmatmul.msk.f32.vlgmr.msrb.gmra.mxu1 %vm452_vm2, %v5804_v40 }
 0x5f1   : > { %v5531_v13 = vpop.permute.xlu2 %3015 }
 0x5f3   : > { %3905 = vmatmul.msk.f32.gmra.mxu2 %vm587_vm3, %v2974_v52  ;;  %3913 = vmatmul.msk.f32.gmra.mxu3 %vm587_vm3, %v2974_v52 }
 0x5f8   : > { %3927 = vmatmul.msk.f32.gmra.mxu0 %vm452_vm2, %v5805_v60  ;;  %3931 = vmatmul.msk.f32.gmra.mxu1 %vm452_vm2, %v5805_v60 }
 0x5fb   : > { %3906 = vmatmul.msk.f32.gmra.mxu2 %vm587_vm3, %v2975_v47  ;;  %3914 = vmatmul.msk.f32.gmra.mxu3 %vm587_vm3, %v2975_v47 }
 0x600   : > { %3928 = vmatmul.msk.f32.gmra.mxu0 %vm452_vm2, %v5806_v12  ;;  %3932 = vmatmul.msk.f32.gmra.mxu1 %vm452_vm2, %v5806_v12 }
 0x603   : > { %3907 = vmatmul.msk.f32.gmra.mxu2 %vm587_vm3, %v2976_v43  ;;  %3915 = vmatmul.msk.f32.gmra.mxu3 %vm587_vm3, %v2976_v43 }
 0x608   : > { %3929 = vmatmul.msk.f32.gmra.mxu0 %vm452_vm2, %v5807_v19  ;;  %3933 = vmatmul.msk.f32.gmra.mxu1 %vm452_vm2, %v5807_v19 }
 0x60b   : > { %3908 = vmatmul.msk.f32.gmra.mxu2 %vm587_vm3, %v2977_v2  ;;  %3916 = vmatmul.msk.f32.gmra.mxu3 %vm587_vm3, %v2977_v2 }
 0x613   : > { %3909 = vmatmul.msk.f32.gmra.mxu2 %vm587_vm3, %v2978_v32  ;;  %3917 = vmatmul.msk.f32.gmra.mxu3 %vm587_vm3, %v2978_v32 }
 0x61b   : > { %3910 = vmatmul.msk.f32.gmra.mxu2 %vm587_vm3, %v2979_v25  ;;  %3918 = vmatmul.msk.f32.gmra.mxu3 %vm587_vm3, %v2979_v25 }
 0x666   : > { %v3110_v24 = vpop.f32.mrf.mxu3 }
 0x66d   : > { %v3335_v41 = vpop.f32.mrf.mxu0  ;;  %v3364_v0 = vpop.f32.mrf.mxu1 }
 0x66e   : > { %v3336_v37 = vadd.f32 %v3335_v41, %v5811_v30  ;;  %v3365_v26 = vadd.f32 %v3364_v0, %v5811_v30  ;;  %v3113_v62 = vpop.f32.mrf.mxu3 }
 0x670   : > { %v3376_v55 = vmax.f32 %v3336_v37, 0.0  ;;  %v3377_v46 = vmax.f32 %v3365_v26, 0.0 }
 0x675   : > { %v3338_v45 = vpop.f32.mrf.mxu0  ;;  %v3367_v33 = vpop.f32.mrf.mxu1 }
 0x676   : > { %v3339_v61 = vadd.f32 %v3338_v45, %v5810_v4  ;;  %v3368_v48 = vadd.f32 %v3367_v33, %v5810_v4  ;;  %v3116_v12 = vpop.f32.mrf.mxu3 }
 0x677   : > { %v3117_v30 = vadd.f32 %v3116_v12, %v3001_v5 }
 0x678   : > { %v3378_v53 = vmax.f32 %v3339_v61, 0.0  ;;  %v3379_v17 = vmax.f32 %v3368_v48, 0.0 }
 0x67d   : > { %v3341_v35 = vpop.f32.mrf.mxu0  ;;  %v3370_v50 = vpop.f32.mrf.mxu1 }
 0x67e   : > { %v3342_v28 = vadd.f32 %v3341_v35, %v5808_v29  ;;  %v3371_v16 = vadd.f32 %v3370_v50, %v5808_v29  ;;  %v3114_v50 = vadd.f32 %v3113_v62, %v2996_v57  ;;  %v3119_v61 = vpop.f32.mrf.mxu3 }
 0x680   : > { %v3380_v22 = vmax.f32 %v3342_v28, 0.0  ;;  %v3381_v38 = vmax.f32 %v3371_v16, 0.0 }
 0x685   : > { %v3344_v1 = vpop.f32.mrf.mxu0  ;;  %v3373_v49 = vpop.f32.mrf.mxu1 }
 0x686   : > { %v3345_v59 = vadd.f32 %v3344_v1, %v5809_v31  ;;  %v3374_v36 = vadd.f32 %v3373_v49, %v5809_v31 }
 0x688   : > { %v3382_v51 = vmax.f32 %v3345_v59, 0.0  ;;  %v3383_v39 = vmax.f32 %v3374_v36, 0.0  ;;  %v3137_v36 = vmax.f32 %v3114_v50, 0.0 }
 0x68a   : > { %3476 = vmatpush.msra.mxu0 %v3382_v51  ;;  %3517 = vmatpush.msra.mxu1 %v3383_v39  ;;  %v3169_v26 = vmax.f32 %v5279_v34, %v3137_v36 }
 0x68c   : > { %3477 = vmatpush.msra.mxu0 %v3380_v22  ;;  %3518 = vmatpush.msra.mxu1 %v3381_v38 }
 0x68e   : > { %3478 = vmatpush.msra.mxu0 %v3378_v53  ;;  %3519 = vmatpush.msra.mxu1 %v3379_v17 }
 0x690   : > { %3479 = vmatpush.msra.mxu0 %v3376_v55  ;;  %3520 = vmatpush.msra.mxu1 %v3377_v46  ;;  %v3139_v46 = vmax.f32 %v3117_v30, 0.0 }
 0x691   : > { %3934 = vmatmul.msk.f32.vlgmr.msra.gmra.mxu0 %vm587_vm3, %v5438_v11  ;;  %3942 = vmatmul.msk.f32.vlgmr.msra.gmra.mxu1 %vm587_vm3, %v5438_v11  ;;  %v2991_v11 = vpop.permute.xlu0 %2990 }
 0x692   : > { %v3111_v40 = vadd.f32 %v3110_v24, %v2991_v11  ;;  %v3171_v34 = vmax.f32 %v5311_v3, %v3139_v46 }
 0x694   : > { %v3135_v19 = vmax.f32 %v3111_v40, 0.0 }
 0x696   : > { %v3167_v33 = vmax.f32 %v5257_v20, %v3135_v19 }
 0x699   : > { %3935 = vmatmul.msk.f32.gmra.mxu0 %vm587_vm3, %v5447_v8  ;;  %3943 = vmatmul.msk.f32.gmra.mxu1 %vm587_vm3, %v5447_v8  ;;  %v3069_v8 = vpop.f32.mrf.mxu2  ;;  %v3006_v42 = vpop.permute.xlu0 %3005 }
 0x69a   : > { %v3070_v21 = vadd.f32 %v3069_v8, %v2991_v11  ;;  %v3120_v40 = vadd.f32 %v3119_v61, %v3006_v42 }
 0x6a1   : > { %3936 = vmatmul.msk.f32.gmra.mxu0 %vm587_vm3, %v2974_v52  ;;  %3944 = vmatmul.msk.f32.gmra.mxu1 %vm587_vm3, %v2974_v52  ;;  %v3072_v18 = vpop.f32.mrf.mxu2  ;;  %v5533_v52 = vpop.permute.xlu1 %3010 }
 0x6a2   : > { %v5535_v60 = vpop.permute.xlu0 %3020  ;;  %v3073_v35 = vadd.f32 %v3072_v18, %v2996_v57  ;;  %v3122_v18 = vpop.f32.mrf.mxu3 }
 0x6a3   : > { %v3123_v3 = vadd.f32 %v3122_v18, %v5533_v52 }
 0x6a4   : > { %v3136_v59 = vmax.f32 %v3073_v35, 0.0 }
 0x6a5   : > { %v3143_v36 = vmax.f32 %v3123_v3, 0.0 }
 0x6a6   : > { %v3168_v37 = vmax.f32 %v5277_v6, %v3136_v59 }
 0x6a9   : > { %3937 = vmatmul.msk.f32.gmra.mxu0 %vm587_vm3, %v2975_v47  ;;  %3945 = vmatmul.msk.f32.gmra.mxu1 %vm587_vm3, %v2975_v47  ;;  %v3075_v47 = vpop.f32.mrf.mxu2  ;;  %v5540_v29 = vpop.permute.xlu1 %3025 }
 0x6aa   : > { %v3408_v31 = vpop.permute.xlu0 %3407  ;;  %v3076_v39 = vadd.f32 %v3075_v47, %v3001_v5 }
 0x6ac   : > { %v3138_v55 = vmax.f32 %v3076_v39, 0.0 }
 0x6ae   : > { %v3170_v6 = vmax.f32 %v5309_v23, %v3138_v55 }
 0x6b1   : > { %3938 = vmatmul.msk.f32.gmra.mxu0 %vm587_vm3, %v2976_v43  ;;  %3946 = vmatmul.msk.f32.gmra.mxu1 %vm587_vm3, %v2976_v43  ;;  %v3134_v43 = vmax.f32 %v3070_v21, 0.0  ;;  %v3078_v4 = vpop.f32.mrf.mxu2  ;;  %v3413_v11 = vpop.permute.xlu1 %3412 }
 0x6b2   : > { %v3079_v21 = vadd.f32 %v3078_v4, %v3006_v42  ;;  %v3423_v4 = vpop.permute.xlu0 %3422 }
 0x6b3   : > { %v3166_v45 = vmax.f32 %v5255_v54, %v3134_v43 }
 0x6b9   : > { %3939 = vmatmul.msk.f32.gmra.mxu0 %vm587_vm3, %v2977_v2  ;;  %3947 = vmatmul.msk.f32.gmra.mxu1 %vm587_vm3, %v2977_v2  ;;  %v3403_v2 = vpop.permute.xlu2 %3402  ;;  %v3081_v57 = vpop.f32.mrf.mxu2 }
 0x6ba   : > { %v3082_v23 = vadd.f32 %v3081_v57, %v5533_v52 }
 0x6bc   : > { %v3142_v59 = vmax.f32 %v3082_v23, 0.0  ;;  %v3438_v23 = vpop.permute.xlu0 %3437 }
 0x6c1   : > { %3940 = vmatmul.msk.f32.gmra.mxu0 %vm587_vm3, %v2978_v32  ;;  %3948 = vmatmul.msk.f32.gmra.mxu1 %vm587_vm3, %v2978_v32  ;;  %v3084_v50 = vpop.f32.mrf.mxu2 }
 0x6c9   : > { %3941 = vmatmul.msk.f32.gmra.mxu0 %vm587_vm3, %v2979_v25  ;;  %3949 = vmatmul.msk.f32.gmra.mxu1 %vm587_vm3, %v2979_v25 }
 0x70e   : > { %v3481_v32 = vpop.f32.mrf.mxu0  ;;  %v3522_v25 = vpop.f32.mrf.mxu1 }
 0x70f   : > { %v3482_v41 = vadd.f32 %v3481_v32, %v3403_v2  ;;  %v3523_v0 = vadd.f32 %v3522_v25, %v3403_v2  ;;  %v3418_v2 = vpop.permute.xlu2 %3417  ;;  %v3140_v32 = vmax.f32 %v3079_v21, 0.0  ;;  %v3141_v25 = vmax.f32 %v3120_v40, 0.0 }
 0x711   : > { %v3546_v1 = vmax.f32 %v3482_v41, 0.0  ;;  %v3547_v49 = vmax.f32 %v3523_v0, 0.0  ;;  %v3172_v42 = vmax.f32 %v5339_v56, %v3140_v32  ;;  %v3173_v35 = vmax.f32 %v5341_v7, %v3141_v25 }
 0x712   : > { %v3174_v56 = vmax.f32 %v5369_v44, %v3142_v59  ;;  %v3175_v7 = vmax.f32 %v5371_v15, %v3143_v36 }
 0x713   : > { %v3578_v28 = vmax.f32 %v3166_v45, %v3546_v1  ;;  %v3579_v16 = vmax.f32 %v3167_v33, %v3547_v49  ;;  %v3125_v1 = vpop.f32.mrf.mxu3 }
 0x715   : > { %3594 = vst [vmem:[%s5542_s8] sm:$0xff] %v3578_v28 }
 0x716   : > { %3595 = vst [vmem:[%s5542_s8 + $0x8] sm:$0xff] %v3579_v16  ;;  %v3484_v54 = vpop.f32.mrf.mxu0  ;;  %v3525_v20 = vpop.f32.mrf.mxu1 }
 0x717   : > { %v3485_v48 = vadd.f32 %v3484_v54, %v3408_v31  ;;  %v3526_v51 = vadd.f32 %v3525_v20, %v3408_v31 }
 0x719   : > { %v3548_v22 = vmax.f32 %v3485_v48, 0.0  ;;  %v3549_v38 = vmax.f32 %v3526_v51, 0.0  ;;  %v3085_v48 = vadd.f32 %v3084_v50, %v5531_v13  ;;  %v3126_v51 = vadd.f32 %v3125_v1, %v5531_v13 }
 0x71b   : > { %v3580_v53 = vmax.f32 %v3168_v37, %v3548_v22  ;;  %v3581_v17 = vmax.f32 %v3169_v26, %v3549_v38  ;;  %v3087_v37 = vpop.f32.mrf.mxu2  ;;  %v3128_v26 = vpop.f32.mrf.mxu3  ;;  %v3145_v55 = vmax.f32 %v3126_v51, 0.0 }
 0x71c   : > { %v3129_v13 = vadd.f32 %v3128_v26, %v5535_v60 }
 0x71d   : > { %3596 = vst [vmem:[%s5542_s8 + $0x10] sm:$0xff] %v3580_v53  ;;  %v3428_v53 = vpop.permute.xlu1 %3427  ;;  %v3177_v57 = vmax.f32 %v5399_v63, %v3145_v55 }
 0x71e   : > { %3597 = vst [vmem:[%s5542_s8 + $0x18] sm:$0xff] %v3581_v17  ;;  %v3487_v8 = vpop.f32.mrf.mxu0  ;;  %v3528_v24 = vpop.f32.mrf.mxu1  ;;  %v3144_v17 = vmax.f32 %v3085_v48, 0.0  ;;  %v3147_v40 = vmax.f32 %v3129_v13, 0.0 }
 0x71f   : > { %v3488_v5 = vadd.f32 %v3487_v8, %v3413_v11  ;;  %v3529_v62 = vadd.f32 %v3528_v24, %v3413_v11  ;;  %v3088_v8 = vadd.f32 %v3087_v37, %v5535_v60 }
 0x720   : > { %v3176_v24 = vmax.f32 %v5397_v9, %v3144_v17 }
 0x721   : > { %v3550_v47 = vmax.f32 %v3488_v5, 0.0  ;;  %v3551_v12 = vmax.f32 %v3529_v62, 0.0  ;;  %v3146_v21 = vmax.f32 %v3088_v8, 0.0 }
 0x723   : > { %v3582_v43 = vmax.f32 %v3170_v6, %v3550_v47  ;;  %v3583_v19 = vmax.f32 %v3171_v34, %v3551_v12  ;;  %v3433_v34 = vpop.permute.xlu2 %3432  ;;  %v3090_v47 = vpop.f32.mrf.mxu2  ;;  %v3178_v63 = vmax.f32 %v5415_v14, %v3146_v21 }
 0x724   : > { %v3131_v12 = vpop.f32.mrf.mxu3  ;;  %v3091_v32 = vadd.f32 %v3090_v47, %v5540_v29 }
 0x725   : > { %3598 = vst [vmem:[%s5542_s8 + $0x20] sm:$0xff] %v3582_v43  ;;  %v3132_v25 = vadd.f32 %v3131_v12, %v5540_v29 }
 0x726   : > { %3599 = vst [vmem:[%s5542_s8 + $0x28] sm:$0xff] %v3583_v19  ;;  %v3490_v41 = vpop.f32.mrf.mxu0  ;;  %v3531_v0 = vpop.f32.mrf.mxu1  ;;  %v3148_v3 = vmax.f32 %v3091_v32, 0.0 }
 0x727   : > { %v3491_v45 = vadd.f32 %v3490_v41, %v3418_v2  ;;  %v3532_v33 = vadd.f32 %v3531_v0, %v3418_v2  ;;  %v3179_v2 = vmax.f32 %v5417_v58, %v3147_v40 }
 0x728   : > { %v3180_v50 = vmax.f32 %v5431_v10, %v3148_v3 }
 0x729   : > { %v3552_v49 = vmax.f32 %v3491_v45, 0.0  ;;  %v3553_v28 = vmax.f32 %v3532_v33, 0.0 }
 0x72b   : > { %v3584_v16 = vmax.f32 %v3172_v42, %v3552_v49  ;;  %v3585_v31 = vmax.f32 %v3173_v35, %v3553_v28  ;;  %v3149_v42 = vmax.f32 %v3132_v25, 0.0 }
 0x72d   : > { %3600 = vst [vmem:[%s5542_s8 + $0x30] sm:$0xff] %v3584_v16  ;;  %v3181_v1 = vmax.f32 %v5433_v27, %v3149_v42 }
 0x72e   : > { %3601 = vst [vmem:[%s5542_s8 + $0x38] sm:$0xff] %v3585_v31  ;;  %v3493_v61 = vpop.f32.mrf.mxu0  ;;  %v3534_v54 = vpop.f32.mrf.mxu1 }
 0x72f   : > { %v3494_v20 = vadd.f32 %v3493_v61, %v3423_v4  ;;  %v3535_v52 = vadd.f32 %v3534_v54, %v3423_v4 }
 0x731   : > { %v3554_v39 = vmax.f32 %v3494_v20, 0.0  ;;  %v3555_v30 = vmax.f32 %v3535_v52, 0.0 }
 0x733   : > { %v3586_v22 = vmax.f32 %v3174_v56, %v3554_v39  ;;  %v3587_v38 = vmax.f32 %v3175_v7, %v3555_v30 }
 0x735   : > { %3602 = vst [vmem:[%s5542_s8 + $0x40] sm:$0xff] %v3586_v22 }
 0x736   : > { %3603 = vst [vmem:[%s5542_s8 + $0x48] sm:$0xff] %v3587_v38  ;;  %v3496_v46 = vpop.f32.mrf.mxu0  ;;  %v3537_v11 = vpop.f32.mrf.mxu1 }
 0x737   : > { %v3497_v44 = vadd.f32 %v3496_v46, %v3428_v53  ;;  %v3538_v15 = vadd.f32 %v3537_v11, %v3428_v53 }
 0x739   : > { %v3556_v18 = vmax.f32 %v3497_v44, 0.0  ;;  %v3557_v5 = vmax.f32 %v3538_v15, 0.0 }
 0x73b   : > { %v3588_v62 = vmax.f32 %v3176_v24, %v3556_v18  ;;  %v3589_v6 = vmax.f32 %v3177_v57, %v3557_v5 }
 0x73d   : > { %3604 = vst [vmem:[%s5542_s8 + $0x50] sm:$0xff] %v3588_v62 }
 0x73e   : > { %3605 = vst [vmem:[%s5542_s8 + $0x58] sm:$0xff] %v3589_v6  ;;  %v3499_v43 = vpop.f32.mrf.mxu0  ;;  %v3540_v19 = vpop.f32.mrf.mxu1 }
 0x73f   : > { %v3500_v60 = vadd.f32 %v3499_v43, %v3433_v34  ;;  %v3541_v9 = vadd.f32 %v3540_v19, %v3433_v34 }
 0x741   : > { %v3558_v41 = vmax.f32 %v3500_v60, 0.0  ;;  %v3559_v0 = vmax.f32 %v3541_v9, 0.0 }
 0x743   : > { %v3590_v45 = vmax.f32 %v3178_v63, %v3558_v41  ;;  %v3591_v33 = vmax.f32 %v3179_v2, %v3559_v0 }
 0x745   : > { %3606 = vst [vmem:[%s5542_s8 + $0x60] sm:$0xff] %v3590_v45 }
 0x746   : > { %3607 = vst [vmem:[%s5542_s8 + $0x68] sm:$0xff] %v3591_v33  ;;  %v3502_v14 = vpop.f32.mrf.mxu0  ;;  %v3543_v58 = vpop.f32.mrf.mxu1 }
 0x747   : > { %v3503_v29 = vadd.f32 %v3502_v14, %v3438_v23  ;;  %v3544_v35 = vadd.f32 %v3543_v58, %v3438_v23 }
 0x749   : > { %v3560_v49 = vmax.f32 %v3503_v29, 0.0  ;;  %v3561_v28 = vmax.f32 %v3544_v35, 0.0 }
 0x74b   : > { %v3592_v16 = vmax.f32 %v3180_v50, %v3560_v49  ;;  %v3593_v31 = vmax.f32 %v3181_v1, %v3561_v28 }
 0x74d   : > { %3608 = vst [vmem:[%s5542_s8 + $0x70] sm:$0xff] %v3592_v16 }
 0x74e   : > { %3609 = vst [vmem:[%s5542_s8 + $0x78] sm:$0xff] %v3593_v31 }
 0x74f   : > { %4030 = shalt.err (!%p4027_p5)
}
 0x750   : > { %s4068_s22 = smov 256   ;;  %s4069_s8 = smov 512  }
 0x751   : > { %s4070_s13 = smov 16  }
 0x752   : > { %3957 = dma.vmem_to_hbm [thread:$0]  (%p4149_p6), %s3624_s16, 2048, %s3626_s28, %s3611_s17, %s4068_s22, %s4069_s8, %s4070_s13  }
 0x753 PF: > { %s3640_s14 = sand.u32 1, %s4053_s24   ;;  %p3960_p7 = pnand %p3696_p9, %p4153_p8 }
 0x754   : > { %s3641_s15 = scalar_lea.sflag [#allocation4], %s3640_s14 }
 0x755   : > { %p3961_p10 = pneg %p3960_p7 }
 0x757   : > { %4048 = dma.done.wait (%p3961_p10), %s3641_s15, 2048  }
 0x758   : > { %4050 = vsyncadd (%p3961_p10), %s3641_s15, 4294965248  ;;  %p17_p11 = scmp.ge.s32.totalorder %s4134_s30, 4   ;;  %s5812_s24 = smov %s4057_s25 }
 0x759   : > { %s5813_s25 = smov %s4061_s26  ;;  %s5814_s26 = smov %s4147_s10 }
 0x75a   : > { %s5815_s27 = smov %s4134_s30  ;;  %19 = sbr.rel (!%p17_p11) target bundleno = 3 (0x3), region = 133 }
 0x75f   :  { %3647 = vsyncpa [#allocation4], 1 }
 0x760   :  { %3649 = vsyncpa [#allocation4 + $0x1], 1 }

</bundles_post_ra>
